<compile_context>
chip_gen: v5e
topology: v5e:2x2
jax: 0.10.0
libtpu: 0.0.40
codegen_flags: <defaults>
</compile_context>

<pallas_src>
import jax
import jax.numpy as jnp
from jax import lax
from jax.experimental import pallas as pl
from jax.experimental.pallas import tpu as pltpu


# Width-axis halo padding.  8 columns per side keeps every piece of the
# sublane-dim concatenation aligned to the native (8, 128) tiling.
_PW = 8


# ---------------------------------------------------------------------------
# In-kernel helpers
# ---------------------------------------------------------------------------
def _pad_for_3x3(x):
    """(H, W, C) -> (H+2, W+2*_PW, C); x sits at rows [1, H+1), cols [_PW, _PW+W)."""
    h, w, c = x.shape
    zw = jnp.zeros((h, _PW, c), x.dtype)
    x = jnp.concatenate([zw, x, zw], axis=1)          # sublane-aligned concat
    zh = jnp.zeros((1, w + 2 * _PW, c), x.dtype)
    return jnp.concatenate([zh, x, zh], axis=0)       # leading-dim concat


def _conv3x3(xp, w_ref, h, w):
    """3x3 conv as 9 shifted MXU matmuls accumulated in f32.

    xp:    padded canvas (H+2, W+2*_PW, Cin), any float dtype
    w_ref: (3, 3, Cin, Cout) weight ref (f32 or bf16)
    returns (H*W, Cout) float32
    """
    cin = xp.shape[-1]
    acc = None
    for dh in range(3):
        for dw in range(3):
            patch = xp[dh:dh + h, _PW - 1 + dw:_PW - 1 + dw + w, :]
            patch = patch.reshape(h * w, cin).astype(w_ref.dtype)
            contrib = jnp.dot(patch, w_ref[dh, dw],
                              preferred_element_type=jnp.float32)
            acc = contrib if acc is None else acc + contrib   # first tap inits
    return acc


# ---------------------------------------------------------------------------
# Fused Pallas kernel (one batch element per grid step)
# ---------------------------------------------------------------------------
def _fused_block_kernel(x_ref, w1_ref, s1_ref, b1_ref,
                        w2_ref, s2_ref, b2_ref, o_ref):
    _, h, w, cin = x_ref.shape
    cout1 = w1_ref.shape[3]
    cout2 = w2_ref.shape[3]

    x = x_ref[0]                                      # (H, W, Cin), f32

    # conv1 + bn1 + relu --- intermediate stays resident in VMEM / vregs
    xp1 = _pad_for_3x3(x)
    acc1 = _conv3x3(xp1, w1_ref, h, w)                # (H*W, Cout1) f32
    a1 = jnp.maximum(acc1 * s1_ref[0] + b1_ref[0], 0.0)

    # conv2 + bn2 + residual + relu
    xp2 = _pad_for_3x3(a1.reshape(h, w, cout1))
    acc2 = _conv3x3(xp2, w2_ref, h, w)                # (H*W, Cout2) f32
    y = acc2 * s2_ref[0] + b2_ref[0]
    y = y + x.reshape(h * w, cin)                     # identity (downsample=None)
    y = jnp.maximum(y, 0.0)

    o_ref[...] = y.reshape(1, h, w, cout2).astype(o_ref.dtype)


# ---------------------------------------------------------------------------
# Wrapper
# ---------------------------------------------------------------------------
def _fold_bn(gamma, beta, mean, var, conv_bias, eps=1e-5):
    scale = gamma / jnp.sqrt(var + eps)
    bias = beta + scale * (conv_bias - mean)
    return scale[None, :].astype(jnp.float32), bias[None, :].astype(jnp.float32)


def block_forward(x_nchw, params, *, matmul_dtype=jnp.float32):
    """Block.forward with stride=1, expansion=1, downsample=None. NCHW in/out.

    matmul_dtype=jnp.bfloat16 casts only the matmul operands (recommended on
    v6e/v7x); accumulation and the elementwise epilogue stay in float32.
    """
    b, cin, h, w = x_nchw.shape

    w1 = jnp.transpose(params["conv1_w"], (2, 3, 1, 0)).astype(matmul_dtype)  # OIHW->HWIO
    w2 = jnp.transpose(params["conv2_w"], (2, 3, 1, 0)).astype(matmul_dtype)
    s1, b1 = _fold_bn(params["bn1_gamma"], params["bn1_beta"],
                      params["bn1_mean"], params["bn1_var"], params["conv1_b"])
    s2, b2 = _fold_bn(params["bn2_gamma"], params["bn2_beta"],
                      params["bn2_mean"], params["bn2_var"], params["conv2_b"])
    cout1 = w1.shape[3]
    cout2 = w2.shape[3]
    if cout2 != cin:
        raise ValueError("residual path requires out_channels*expansion == in_channels "
                         "when downsample is None")

    x_nhwc = jnp.transpose(x_nchw, (0, 2, 3, 1))

    out_nhwc = pl.pallas_call(
        _fused_block_kernel,
        out_shape=jax.ShapeDtypeStruct((b, h, w, cout2), jnp.float32),
        grid_spec=pltpu.PrefetchScalarGridSpec(
            num_scalar_prefetch=0,
            grid=(b,),
            in_specs=[
                pl.BlockSpec((1, h, w, cin), lambda i: (i, 0, 0, 0)),
                pl.BlockSpec((3, 3, cin, cout1), lambda i: (0, 0, 0, 0)),
                pl.BlockSpec((1, cout1), lambda i: (0, 0)),
                pl.BlockSpec((1, cout1), lambda i: (0, 0)),
                pl.BlockSpec((3, 3, cout1, cout2), lambda i: (0, 0, 0, 0)),
                pl.BlockSpec((1, cout2), lambda i: (0, 0)),
                pl.BlockSpec((1, cout2), lambda i: (0, 0)),
            ],
            out_specs=pl.BlockSpec((1, h, w, cout2), lambda i: (i, 0, 0, 0)),
        ),
        compiler_params=pltpu.CompilerParams(dimension_semantics=("parallel",)),
    )(x_nhwc, w1, s1, b1, w2, s2, b2)

    return jnp.transpose(out_nhwc, (0, 3, 1, 2))


# ---------------------------------------------------------------------------
# Pure-JAX reference (for verification)
# ---------------------------------------------------------------------------
def _ref_block(x, params, eps=1e-5):
    def conv(x, w, b):
        y = lax.conv_general_dilated(x, w, (1, 1), ((1, 1), (1, 1)),
                                     dimension_numbers=("NCHW", "OIHW", "NCHW"))
        return y + b[None, :, None, None]

    def bn(x, g, be, m, v):
        return g[None, :, None, None] * (x - m[None, :, None, None]) / \
            jnp.sqrt(v[None, :, None, None] + eps) + be[None, :, None, None]

    identity = x
    y = conv(x, params["conv1_w"], params["conv1_b"])
    y = jnp.maximum(bn(y, params["bn1_gamma"], params["bn1_beta"],
                       params["bn1_mean"], params["bn1_var"]), 0.0)
    y = conv(y, params["conv2_w"], params["conv2_b"])
    y = bn(y, params["bn2_gamma"], params["bn2_beta"],
           params["bn2_mean"], params["bn2_var"])
    return jnp.maximum(y + identity, 0.0)


# ---------------------------------------------------------------------------
if __name__ == "__main__":
    B, Cin, H, W = 2, 4, 16, 16
    Cout, expansion = 4, 1                               # Cout*expansion == Cin

    ks = jax.random.split(jax.random.PRNGKey(0), 13)
    params = {
        "conv1_w": 0.1 * jax.random.normal(ks[0], (Cout, Cin, 3, 3), jnp.float32),
        "conv1_b": 0.1 * jax.random.normal(ks[1], (Cout,), jnp.float32),
        "bn1_gamma": 1.0 + 0.1 * jax.random.normal(ks[2], (Cout,), jnp.float32),
        "bn1_beta": 0.1 * jax.random.normal(ks[3], (Cout,), jnp.float32),
        "bn1_mean": 0.1 * jax.random.normal(ks[4], (Cout,), jnp.float32),
        "bn1_var": jnp.abs(jax.random.normal(ks[5], (Cout,), jnp.float32)) + 0.5,
        "conv2_w": 0.1 * jax.random.normal(ks[6], (Cout * expansion, Cout, 3, 3), jnp.float32),
        "conv2_b": 0.1 * jax.random.normal(ks[7], (Cout * expansion,), jnp.float32),
        "bn2_gamma": 1.0 + 0.1 * jax.random.normal(ks[8], (Cout * expansion,), jnp.float32),
        "bn2_beta": 0.1 * jax.random.normal(ks[9], (Cout * expansion,), jnp.float32),
        "bn2_mean": 0.1 * jax.random.normal(ks[10], (Cout * expansion,), jnp.float32),
        "bn2_var": jnp.abs(jax.random.normal(ks[11], (Cout * expansion,), jnp.float32)) + 0.5,
    }
    x = jax.random.normal(ks[12], (B, Cin, H, W), jnp.float32)

    ref = jax.block_until_ready(_ref_block(x, params))

    # f32 matmul operands: exact-mode check.
    out = jax.block_until_ready(block_forward(x, params))
    assert out.shape == (B, Cout * expansion, H, W)
    assert jnp.allclose(out, ref, atol=1e-4, rtol=1e-4), \
        f"f32 max err {jnp.max(jnp.abs(out - ref))}"

    # bf16 matmul operands (v6e/v7x fast path): loose-tolerance sanity check.
    out_bf16 = jax.block_until_ready(
        block_forward(x, params, matmul_dtype=jnp.bfloat16))
    assert jnp.allclose(out_bf16, ref, atol=1e-1, rtol=1e-1), \
        f"bf16 max err {jnp.max(jnp.abs(out_bf16 - ref))}"

    print("KERNEL_OK")
</pallas_src>

<mosaic_0001>
module attributes {stable_mosaic.version = 11 : i64} {
  func.func @_fused_block_kernel(%arg0: i32, %arg1: memref<1x16x16x4xf32, #tpu.memory_space<vmem>>, %arg2: memref<3x3x4x4xf32, #tpu.memory_space<vmem>>, %arg3: memref<1x4xf32, #tpu.memory_space<vmem>>, %arg4: memref<1x4xf32, #tpu.memory_space<vmem>>, %arg5: memref<3x3x4x4xf32, #tpu.memory_space<vmem>>, %arg6: memref<1x4xf32, #tpu.memory_space<vmem>>, %arg7: memref<1x4xf32, #tpu.memory_space<vmem>>, %arg8: memref<1x16x16x4xf32, #tpu.memory_space<vmem>>) attributes {dimension_semantics = [#tpu.dimension_semantics<parallel>], iteration_bounds = array<i64: 2>, scalar_prefetch = 0 : i64, scratch_operands = 0 : i64, tpu.core_type = #tpu.core_type<tc>, window_params = [{transform_indices = @transform_0, window_bounds = array<i64: 1, 16, 16, 4>}, {pipeline_mode = #tpu.pipeline_mode<synchronous>, transform_indices = @transform_1, window_bounds = array<i64: 3, 3, 4, 4>}, {pipeline_mode = #tpu.pipeline_mode<synchronous>, transform_indices = @transform_2, window_bounds = array<i64: 1, 4>}, {pipeline_mode = #tpu.pipeline_mode<synchronous>, transform_indices = @transform_3, window_bounds = array<i64: 1, 4>}, {pipeline_mode = #tpu.pipeline_mode<synchronous>, transform_indices = @transform_4, window_bounds = array<i64: 3, 3, 4, 4>}, {pipeline_mode = #tpu.pipeline_mode<synchronous>, transform_indices = @transform_5, window_bounds = array<i64: 1, 4>}, {pipeline_mode = #tpu.pipeline_mode<synchronous>, transform_indices = @transform_6, window_bounds = array<i64: 1, 4>}, {transform_indices = @transform_7, window_bounds = array<i64: 1, 16, 16, 4>}]} {
    %c0 = arith.constant 0 : index
    %c0_0 = arith.constant 0 : index
    %c0_1 = arith.constant 0 : index
    %c0_2 = arith.constant 0 : index
    %0 = vector.load %arg1[%c0, %c0_0, %c0_1, %c0_2] : memref<1x16x16x4xf32, #tpu.memory_space<vmem>>, vector<1x16x16x4xf32>
    %1 = vector.shape_cast %0 : vector<1x16x16x4xf32> to vector<16x16x4xf32>
    %cst = arith.constant 0.000000e+00 : f32
    %2 = vector.broadcast %cst : f32 to vector<16x8x4xf32>
    %3 = tpu.concatenate %2, %1, %2 in 1 : vector<16x8x4xf32>, vector<16x16x4xf32>, vector<16x8x4xf32> -> vector<16x32x4xf32>
    %cst_3 = arith.constant 0.000000e+00 : f32
    %4 = vector.broadcast %cst_3 : f32 to vector<1x32x4xf32>
    %5 = tpu.concatenate %4, %3, %4 in 0 : vector<1x32x4xf32>, vector<16x32x4xf32>, vector<1x32x4xf32> -> vector<18x32x4xf32>
    %6 = vector.extract_strided_slice %5 {offsets = [0, 7, 0], sizes = [16, 16, 4], strides = [1, 1, 1]} : vector<18x32x4xf32> to vector<16x16x4xf32>
    %7 = vector.shape_cast %6 : vector<16x16x4xf32> to vector<256x4xf32>
    %c0_4 = arith.constant 0 : index
    %c0_5 = arith.constant 0 : index
    %c0_6 = arith.constant 0 : index
    %c0_7 = arith.constant 0 : index
    %8 = vector.load %arg2[%c0_4, %c0_5, %c0_6, %c0_7] : memref<3x3x4x4xf32, #tpu.memory_space<vmem>>, vector<1x1x4x4xf32>
    %9 = vector.shape_cast %8 : vector<1x1x4x4xf32> to vector<4x4xf32>
    %cst_8 = arith.constant dense<0.000000e+00> : vector<256x4xf32>
    %10 = tpu.matmul %7, %9, %cst_8 {dimension_numbers = #tpu.dot_dimension_numbers<[1], [0], [0], [1], [0, 0, 1, 1], [], []>} : vector<256x4xf32>, vector<4x4xf32>, vector<256x4xf32> -> vector<256x4xf32>
    %11 = vector.extract_strided_slice %5 {offsets = [0, 8, 0], sizes = [16, 16, 4], strides = [1, 1, 1]} : vector<18x32x4xf32> to vector<16x16x4xf32>
    %12 = vector.shape_cast %11 : vector<16x16x4xf32> to vector<256x4xf32>
    %c0_9 = arith.constant 0 : index
    %c1 = arith.constant 1 : index
    %c0_10 = arith.constant 0 : index
    %c0_11 = arith.constant 0 : index
    %13 = vector.load %arg2[%c0_9, %c1, %c0_10, %c0_11] : memref<3x3x4x4xf32, #tpu.memory_space<vmem>>, vector<1x1x4x4xf32>
    %14 = vector.shape_cast %13 : vector<1x1x4x4xf32> to vector<4x4xf32>
    %cst_12 = arith.constant dense<0.000000e+00> : vector<256x4xf32>
    %15 = tpu.matmul %12, %14, %cst_12 {dimension_numbers = #tpu.dot_dimension_numbers<[1], [0], [0], [1], [0, 0, 1, 1], [], []>} : vector<256x4xf32>, vector<4x4xf32>, vector<256x4xf32> -> vector<256x4xf32>
    %16 = arith.addf %10, %15 : vector<256x4xf32>
    %17 = vector.extract_strided_slice %5 {offsets = [0, 9, 0], sizes = [16, 16, 4], strides = [1, 1, 1]} : vector<18x32x4xf32> to vector<16x16x4xf32>
    %18 = vector.shape_cast %17 : vector<16x16x4xf32> to vector<256x4xf32>
    %c0_13 = arith.constant 0 : index
    %c2 = arith.constant 2 : index
    %c0_14 = arith.constant 0 : index
    %c0_15 = arith.constant 0 : index
    %19 = vector.load %arg2[%c0_13, %c2, %c0_14, %c0_15] : memref<3x3x4x4xf32, #tpu.memory_space<vmem>>, vector<1x1x4x4xf32>
    %20 = vector.shape_cast %19 : vector<1x1x4x4xf32> to vector<4x4xf32>
    %cst_16 = arith.constant dense<0.000000e+00> : vector<256x4xf32>
    %21 = tpu.matmul %18, %20, %cst_16 {dimension_numbers = #tpu.dot_dimension_numbers<[1], [0], [0], [1], [0, 0, 1, 1], [], []>} : vector<256x4xf32>, vector<4x4xf32>, vector<256x4xf32> -> vector<256x4xf32>
    %22 = arith.addf %16, %21 : vector<256x4xf32>
    %23 = vector.extract_strided_slice %5 {offsets = [1, 7, 0], sizes = [16, 16, 4], strides = [1, 1, 1]} : vector<18x32x4xf32> to vector<16x16x4xf32>
    %24 = vector.shape_cast %23 : vector<16x16x4xf32> to vector<256x4xf32>
    %c1_17 = arith.constant 1 : index
    %c0_18 = arith.constant 0 : index
    %c0_19 = arith.constant 0 : index
    %c0_20 = arith.constant 0 : index
    %25 = vector.load %arg2[%c1_17, %c0_18, %c0_19, %c0_20] : memref<3x3x4x4xf32, #tpu.memory_space<vmem>>, vector<1x1x4x4xf32>
    %26 = vector.shape_cast %25 : vector<1x1x4x4xf32> to vector<4x4xf32>
    %cst_21 = arith.constant dense<0.000000e+00> : vector<256x4xf32>
    %27 = tpu.matmul %24, %26, %cst_21 {dimension_numbers = #tpu.dot_dimension_numbers<[1], [0], [0], [1], [0, 0, 1, 1], [], []>} : vector<256x4xf32>, vector<4x4xf32>, vector<256x4xf32> -> vector<256x4xf32>
    %28 = arith.addf %22, %27 : vector<256x4xf32>
    %29 = vector.extract_strided_slice %5 {offsets = [1, 8, 0], sizes = [16, 16, 4], strides = [1, 1, 1]} : vector<18x32x4xf32> to vector<16x16x4xf32>
    %30 = vector.shape_cast %29 : vector<16x16x4xf32> to vector<256x4xf32>
    %c1_22 = arith.constant 1 : index
    %c1_23 = arith.constant 1 : index
    %c0_24 = arith.constant 0 : index
    %c0_25 = arith.constant 0 : index
    %31 = vector.load %arg2[%c1_22, %c1_23, %c0_24, %c0_25] : memref<3x3x4x4xf32, #tpu.memory_space<vmem>>, vector<1x1x4x4xf32>
    %32 = vector.shape_cast %31 : vector<1x1x4x4xf32> to vector<4x4xf32>
    %cst_26 = arith.constant dense<0.000000e+00> : vector<256x4xf32>
    %33 = tpu.matmul %30, %32, %cst_26 {dimension_numbers = #tpu.dot_dimension_numbers<[1], [0], [0], [1], [0, 0, 1, 1], [], []>} : vector<256x4xf32>, vector<4x4xf32>, vector<256x4xf32> -> vector<256x4xf32>
    %34 = arith.addf %28, %33 : vector<256x4xf32>
    %35 = vector.extract_strided_slice %5 {offsets = [1, 9, 0], sizes = [16, 16, 4], strides = [1, 1, 1]} : vector<18x32x4xf32> to vector<16x16x4xf32>
    %36 = vector.shape_cast %35 : vector<16x16x4xf32> to vector<256x4xf32>
    %c1_27 = arith.constant 1 : index
    %c2_28 = arith.constant 2 : index
    %c0_29 = arith.constant 0 : index
    %c0_30 = arith.constant 0 : index
    %37 = vector.load %arg2[%c1_27, %c2_28, %c0_29, %c0_30] : memref<3x3x4x4xf32, #tpu.memory_space<vmem>>, vector<1x1x4x4xf32>
    %38 = vector.shape_cast %37 : vector<1x1x4x4xf32> to vector<4x4xf32>
    %cst_31 = arith.constant dense<0.000000e+00> : vector<256x4xf32>
    %39 = tpu.matmul %36, %38, %cst_31 {dimension_numbers = #tpu.dot_dimension_numbers<[1], [0], [0], [1], [0, 0, 1, 1], [], []>} : vector<256x4xf32>, vector<4x4xf32>, vector<256x4xf32> -> vector<256x4xf32>
    %40 = arith.addf %34, %39 : vector<256x4xf32>
    %41 = vector.extract_strided_slice %5 {offsets = [2, 7, 0], sizes = [16, 16, 4], strides = [1, 1, 1]} : vector<18x32x4xf32> to vector<16x16x4xf32>
    %42 = vector.shape_cast %41 : vector<16x16x4xf32> to vector<256x4xf32>
    %c2_32 = arith.constant 2 : index
    %c0_33 = arith.constant 0 : index
    %c0_34 = arith.constant 0 : index
    %c0_35 = arith.constant 0 : index
    %43 = vector.load %arg2[%c2_32, %c0_33, %c0_34, %c0_35] : memref<3x3x4x4xf32, #tpu.memory_space<vmem>>, vector<1x1x4x4xf32>
    %44 = vector.shape_cast %43 : vector<1x1x4x4xf32> to vector<4x4xf32>
    %cst_36 = arith.constant dense<0.000000e+00> : vector<256x4xf32>
    %45 = tpu.matmul %42, %44, %cst_36 {dimension_numbers = #tpu.dot_dimension_numbers<[1], [0], [0], [1], [0, 0, 1, 1], [], []>} : vector<256x4xf32>, vector<4x4xf32>, vector<256x4xf32> -> vector<256x4xf32>
    %46 = arith.addf %40, %45 : vector<256x4xf32>
    %47 = vector.extract_strided_slice %5 {offsets = [2, 8, 0], sizes = [16, 16, 4], strides = [1, 1, 1]} : vector<18x32x4xf32> to vector<16x16x4xf32>
    %48 = vector.shape_cast %47 : vector<16x16x4xf32> to vector<256x4xf32>
    %c2_37 = arith.constant 2 : index
    %c1_38 = arith.constant 1 : index
    %c0_39 = arith.constant 0 : index
    %c0_40 = arith.constant 0 : index
    %49 = vector.load %arg2[%c2_37, %c1_38, %c0_39, %c0_40] : memref<3x3x4x4xf32, #tpu.memory_space<vmem>>, vector<1x1x4x4xf32>
    %50 = vector.shape_cast %49 : vector<1x1x4x4xf32> to vector<4x4xf32>
    %cst_41 = arith.constant dense<0.000000e+00> : vector<256x4xf32>
    %51 = tpu.matmul %48, %50, %cst_41 {dimension_numbers = #tpu.dot_dimension_numbers<[1], [0], [0], [1], [0, 0, 1, 1], [], []>} : vector<256x4xf32>, vector<4x4xf32>, vector<256x4xf32> -> vector<256x4xf32>
    %52 = arith.addf %46, %51 : vector<256x4xf32>
    %53 = vector.extract_strided_slice %5 {offsets = [2, 9, 0], sizes = [16, 16, 4], strides = [1, 1, 1]} : vector<18x32x4xf32> to vector<16x16x4xf32>
    %54 = vector.shape_cast %53 : vector<16x16x4xf32> to vector<256x4xf32>
    %c2_42 = arith.constant 2 : index
    %c2_43 = arith.constant 2 : index
    %c0_44 = arith.constant 0 : index
    %c0_45 = arith.constant 0 : index
    %55 = vector.load %arg2[%c2_42, %c2_43, %c0_44, %c0_45] : memref<3x3x4x4xf32, #tpu.memory_space<vmem>>, vector<1x1x4x4xf32>
    %56 = vector.shape_cast %55 : vector<1x1x4x4xf32> to vector<4x4xf32>
    %cst_46 = arith.constant dense<0.000000e+00> : vector<256x4xf32>
    %57 = tpu.matmul %54, %56, %cst_46 {dimension_numbers = #tpu.dot_dimension_numbers<[1], [0], [0], [1], [0, 0, 1, 1], [], []>} : vector<256x4xf32>, vector<4x4xf32>, vector<256x4xf32> -> vector<256x4xf32>
    %58 = arith.addf %52, %57 : vector<256x4xf32>
    %c0_47 = arith.constant 0 : index
    %c0_48 = arith.constant 0 : index
    %59 = vector.load %arg3[%c0_47, %c0_48] : memref<1x4xf32, #tpu.memory_space<vmem>>, vector<1x4xf32>
    %60 = vector.shape_cast %59 : vector<1x4xf32> to vector<4xf32>
    %61 = vector.shape_cast %60 : vector<4xf32> to vector<1x4xf32>
    %62 = vector.broadcast %61 : vector<1x4xf32> to vector<256x4xf32>
    %63 = arith.mulf %58, %62 : vector<256x4xf32>
    %c0_49 = arith.constant 0 : index
    %c0_50 = arith.constant 0 : index
    %64 = vector.load %arg4[%c0_49, %c0_50] : memref<1x4xf32, #tpu.memory_space<vmem>>, vector<1x4xf32>
    %65 = vector.shape_cast %64 : vector<1x4xf32> to vector<4xf32>
    %66 = vector.shape_cast %65 : vector<4xf32> to vector<1x4xf32>
    %67 = vector.broadcast %66 : vector<1x4xf32> to vector<256x4xf32>
    %68 = arith.addf %63, %67 : vector<256x4xf32>
    %cst_51 = arith.constant 0.000000e+00 : f32
    %69 = vector.broadcast %cst_51 : f32 to vector<256x4xf32>
    %70 = arith.maximumf %68, %69 : vector<256x4xf32>
    %71 = vector.shape_cast %70 : vector<256x4xf32> to vector<16x16x4xf32>
    %cst_52 = arith.constant 0.000000e+00 : f32
    %72 = vector.broadcast %cst_52 : f32 to vector<16x8x4xf32>
    %73 = tpu.concatenate %72, %71, %72 in 1 : vector<16x8x4xf32>, vector<16x16x4xf32>, vector<16x8x4xf32> -> vector<16x32x4xf32>
    %cst_53 = arith.constant 0.000000e+00 : f32
    %74 = vector.broadcast %cst_53 : f32 to vector<1x32x4xf32>
    %75 = tpu.concatenate %74, %73, %74 in 0 : vector<1x32x4xf32>, vector<16x32x4xf32>, vector<1x32x4xf32> -> vector<18x32x4xf32>
    %76 = vector.extract_strided_slice %75 {offsets = [0, 7, 0], sizes = [16, 16, 4], strides = [1, 1, 1]} : vector<18x32x4xf32> to vector<16x16x4xf32>
    %77 = vector.shape_cast %76 : vector<16x16x4xf32> to vector<256x4xf32>
    %c0_54 = arith.constant 0 : index
    %c0_55 = arith.constant 0 : index
    %c0_56 = arith.constant 0 : index
    %c0_57 = arith.constant 0 : index
    %78 = vector.load %arg5[%c0_54, %c0_55, %c0_56, %c0_57] : memref<3x3x4x4xf32, #tpu.memory_space<vmem>>, vector<1x1x4x4xf32>
    %79 = vector.shape_cast %78 : vector<1x1x4x4xf32> to vector<4x4xf32>
    %cst_58 = arith.constant dense<0.000000e+00> : vector<256x4xf32>
    %80 = tpu.matmul %77, %79, %cst_58 {dimension_numbers = #tpu.dot_dimension_numbers<[1], [0], [0], [1], [0, 0, 1, 1], [], []>} : vector<256x4xf32>, vector<4x4xf32>, vector<256x4xf32> -> vector<256x4xf32>
    %81 = vector.extract_strided_slice %75 {offsets = [0, 8, 0], sizes = [16, 16, 4], strides = [1, 1, 1]} : vector<18x32x4xf32> to vector<16x16x4xf32>
    %82 = vector.shape_cast %81 : vector<16x16x4xf32> to vector<256x4xf32>
    %c0_59 = arith.constant 0 : index
    %c1_60 = arith.constant 1 : index
    %c0_61 = arith.constant 0 : index
    %c0_62 = arith.constant 0 : index
    %83 = vector.load %arg5[%c0_59, %c1_60, %c0_61, %c0_62] : memref<3x3x4x4xf32, #tpu.memory_space<vmem>>, vector<1x1x4x4xf32>
    %84 = vector.shape_cast %83 : vector<1x1x4x4xf32> to vector<4x4xf32>
    %cst_63 = arith.constant dense<0.000000e+00> : vector<256x4xf32>
    %85 = tpu.matmul %82, %84, %cst_63 {dimension_numbers = #tpu.dot_dimension_numbers<[1], [0], [0], [1], [0, 0, 1, 1], [], []>} : vector<256x4xf32>, vector<4x4xf32>, vector<256x4xf32> -> vector<256x4xf32>
    %86 = arith.addf %80, %85 : vector<256x4xf32>
    %87 = vector.extract_strided_slice %75 {offsets = [0, 9, 0], sizes = [16, 16, 4], strides = [1, 1, 1]} : vector<18x32x4xf32> to vector<16x16x4xf32>
    %88 = vector.shape_cast %87 : vector<16x16x4xf32> to vector<256x4xf32>
    %c0_64 = arith.constant 0 : index
    %c2_65 = arith.constant 2 : index
    %c0_66 = arith.constant 0 : index
    %c0_67 = arith.constant 0 : index
    %89 = vector.load %arg5[%c0_64, %c2_65, %c0_66, %c0_67] : memref<3x3x4x4xf32, #tpu.memory_space<vmem>>, vector<1x1x4x4xf32>
    %90 = vector.shape_cast %89 : vector<1x1x4x4xf32> to vector<4x4xf32>
    %cst_68 = arith.constant dense<0.000000e+00> : vector<256x4xf32>
    %91 = tpu.matmul %88, %90, %cst_68 {dimension_numbers = #tpu.dot_dimension_numbers<[1], [0], [0], [1], [0, 0, 1, 1], [], []>} : vector<256x4xf32>, vector<4x4xf32>, vector<256x4xf32> -> vector<256x4xf32>
    %92 = arith.addf %86, %91 : vector<256x4xf32>
    %93 = vector.extract_strided_slice %75 {offsets = [1, 7, 0], sizes = [16, 16, 4], strides = [1, 1, 1]} : vector<18x32x4xf32> to vector<16x16x4xf32>
    %94 = vector.shape_cast %93 : vector<16x16x4xf32> to vector<256x4xf32>
    %c1_69 = arith.constant 1 : index
    %c0_70 = arith.constant 0 : index
    %c0_71 = arith.constant 0 : index
    %c0_72 = arith.constant 0 : index
    %95 = vector.load %arg5[%c1_69, %c0_70, %c0_71, %c0_72] : memref<3x3x4x4xf32, #tpu.memory_space<vmem>>, vector<1x1x4x4xf32>
    %96 = vector.shape_cast %95 : vector<1x1x4x4xf32> to vector<4x4xf32>
    %cst_73 = arith.constant dense<0.000000e+00> : vector<256x4xf32>
    %97 = tpu.matmul %94, %96, %cst_73 {dimension_numbers = #tpu.dot_dimension_numbers<[1], [0], [0], [1], [0, 0, 1, 1], [], []>} : vector<256x4xf32>, vector<4x4xf32>, vector<256x4xf32> -> vector<256x4xf32>
    %98 = arith.addf %92, %97 : vector<256x4xf32>
    %99 = vector.extract_strided_slice %75 {offsets = [1, 8, 0], sizes = [16, 16, 4], strides = [1, 1, 1]} : vector<18x32x4xf32> to vector<16x16x4xf32>
    %100 = vector.shape_cast %99 : vector<16x16x4xf32> to vector<256x4xf32>
    %c1_74 = arith.constant 1 : index
    %c1_75 = arith.constant 1 : index
    %c0_76 = arith.constant 0 : index
    %c0_77 = arith.constant 0 : index
    %101 = vector.load %arg5[%c1_74, %c1_75, %c0_76, %c0_77] : memref<3x3x4x4xf32, #tpu.memory_space<vmem>>, vector<1x1x4x4xf32>
    %102 = vector.shape_cast %101 : vector<1x1x4x4xf32> to vector<4x4xf32>
    %cst_78 = arith.constant dense<0.000000e+00> : vector<256x4xf32>
    %103 = tpu.matmul %100, %102, %cst_78 {dimension_numbers = #tpu.dot_dimension_numbers<[1], [0], [0], [1], [0, 0, 1, 1], [], []>} : vector<256x4xf32>, vector<4x4xf32>, vector<256x4xf32> -> vector<256x4xf32>
    %104 = arith.addf %98, %103 : vector<256x4xf32>
    %105 = vector.extract_strided_slice %75 {offsets = [1, 9, 0], sizes = [16, 16, 4], strides = [1, 1, 1]} : vector<18x32x4xf32> to vector<16x16x4xf32>
    %106 = vector.shape_cast %105 : vector<16x16x4xf32> to vector<256x4xf32>
    %c1_79 = arith.constant 1 : index
    %c2_80 = arith.constant 2 : index
    %c0_81 = arith.constant 0 : index
    %c0_82 = arith.constant 0 : index
    %107 = vector.load %arg5[%c1_79, %c2_80, %c0_81, %c0_82] : memref<3x3x4x4xf32, #tpu.memory_space<vmem>>, vector<1x1x4x4xf32>
    %108 = vector.shape_cast %107 : vector<1x1x4x4xf32> to vector<4x4xf32>
    %cst_83 = arith.constant dense<0.000000e+00> : vector<256x4xf32>
    %109 = tpu.matmul %106, %108, %cst_83 {dimension_numbers = #tpu.dot_dimension_numbers<[1], [0], [0], [1], [0, 0, 1, 1], [], []>} : vector<256x4xf32>, vector<4x4xf32>, vector<256x4xf32> -> vector<256x4xf32>
    %110 = arith.addf %104, %109 : vector<256x4xf32>
    %111 = vector.extract_strided_slice %75 {offsets = [2, 7, 0], sizes = [16, 16, 4], strides = [1, 1, 1]} : vector<18x32x4xf32> to vector<16x16x4xf32>
    %112 = vector.shape_cast %111 : vector<16x16x4xf32> to vector<256x4xf32>
    %c2_84 = arith.constant 2 : index
    %c0_85 = arith.constant 0 : index
    %c0_86 = arith.constant 0 : index
    %c0_87 = arith.constant 0 : index
    %113 = vector.load %arg5[%c2_84, %c0_85, %c0_86, %c0_87] : memref<3x3x4x4xf32, #tpu.memory_space<vmem>>, vector<1x1x4x4xf32>
    %114 = vector.shape_cast %113 : vector<1x1x4x4xf32> to vector<4x4xf32>
    %cst_88 = arith.constant dense<0.000000e+00> : vector<256x4xf32>
    %115 = tpu.matmul %112, %114, %cst_88 {dimension_numbers = #tpu.dot_dimension_numbers<[1], [0], [0], [1], [0, 0, 1, 1], [], []>} : vector<256x4xf32>, vector<4x4xf32>, vector<256x4xf32> -> vector<256x4xf32>
    %116 = arith.addf %110, %115 : vector<256x4xf32>
    %117 = vector.extract_strided_slice %75 {offsets = [2, 8, 0], sizes = [16, 16, 4], strides = [1, 1, 1]} : vector<18x32x4xf32> to vector<16x16x4xf32>
    %118 = vector.shape_cast %117 : vector<16x16x4xf32> to vector<256x4xf32>
    %c2_89 = arith.constant 2 : index
    %c1_90 = arith.constant 1 : index
    %c0_91 = arith.constant 0 : index
    %c0_92 = arith.constant 0 : index
    %119 = vector.load %arg5[%c2_89, %c1_90, %c0_91, %c0_92] : memref<3x3x4x4xf32, #tpu.memory_space<vmem>>, vector<1x1x4x4xf32>
    %120 = vector.shape_cast %119 : vector<1x1x4x4xf32> to vector<4x4xf32>
    %cst_93 = arith.constant dense<0.000000e+00> : vector<256x4xf32>
    %121 = tpu.matmul %118, %120, %cst_93 {dimension_numbers = #tpu.dot_dimension_numbers<[1], [0], [0], [1], [0, 0, 1, 1], [], []>} : vector<256x4xf32>, vector<4x4xf32>, vector<256x4xf32> -> vector<256x4xf32>
    %122 = arith.addf %116, %121 : vector<256x4xf32>
    %123 = vector.extract_strided_slice %75 {offsets = [2, 9, 0], sizes = [16, 16, 4], strides = [1, 1, 1]} : vector<18x32x4xf32> to vector<16x16x4xf32>
    %124 = vector.shape_cast %123 : vector<16x16x4xf32> to vector<256x4xf32>
    %c2_94 = arith.constant 2 : index
    %c2_95 = arith.constant 2 : index
    %c0_96 = arith.constant 0 : index
    %c0_97 = arith.constant 0 : index
    %125 = vector.load %arg5[%c2_94, %c2_95, %c0_96, %c0_97] : memref<3x3x4x4xf32, #tpu.memory_space<vmem>>, vector<1x1x4x4xf32>
    %126 = vector.shape_cast %125 : vector<1x1x4x4xf32> to vector<4x4xf32>
    %cst_98 = arith.constant dense<0.000000e+00> : vector<256x4xf32>
    %127 = tpu.matmul %124, %126, %cst_98 {dimension_numbers = #tpu.dot_dimension_numbers<[1], [0], [0], [1], [0, 0, 1, 1], [], []>} : vector<256x4xf32>, vector<4x4xf32>, vector<256x4xf32> -> vector<256x4xf32>
    %128 = arith.addf %122, %127 : vector<256x4xf32>
    %c0_99 = arith.constant 0 : index
    %c0_100 = arith.constant 0 : index
    %129 = vector.load %arg6[%c0_99, %c0_100] : memref<1x4xf32, #tpu.memory_space<vmem>>, vector<1x4xf32>
    %130 = vector.shape_cast %129 : vector<1x4xf32> to vector<4xf32>
    %131 = vector.shape_cast %130 : vector<4xf32> to vector<1x4xf32>
    %132 = vector.broadcast %131 : vector<1x4xf32> to vector<256x4xf32>
    %133 = arith.mulf %128, %132 : vector<256x4xf32>
    %c0_101 = arith.constant 0 : index
    %c0_102 = arith.constant 0 : index
    %134 = vector.load %arg7[%c0_101, %c0_102] : memref<1x4xf32, #tpu.memory_space<vmem>>, vector<1x4xf32>
    %135 = vector.shape_cast %134 : vector<1x4xf32> to vector<4xf32>
    %136 = vector.shape_cast %135 : vector<4xf32> to vector<1x4xf32>
    %137 = vector.broadcast %136 : vector<1x4xf32> to vector<256x4xf32>
    %138 = arith.addf %133, %137 : vector<256x4xf32>
    %139 = vector.shape_cast %1 : vector<16x16x4xf32> to vector<256x4xf32>
    %140 = arith.addf %138, %139 : vector<256x4xf32>
    %cst_103 = arith.constant 0.000000e+00 : f32
    %141 = vector.broadcast %cst_103 : f32 to vector<256x4xf32>
    %142 = arith.maximumf %140, %141 : vector<256x4xf32>
    %143 = vector.shape_cast %142 : vector<256x4xf32> to vector<1x16x16x4xf32>
    %c0_104 = arith.constant 0 : index
    %c0_105 = arith.constant 0 : index
    %c0_106 = arith.constant 0 : index
    %c0_107 = arith.constant 0 : index
    %144 = vector.load %arg8[%c0_104, %c0_105, %c0_106, %c0_107] : memref<1x16x16x4xf32, #tpu.memory_space<vmem>>, vector<1x16x16x4xf32>
    tpu.vector_store %arg8[%c0_104, %c0_105, %c0_106, %c0_107], %143 {strides = array<i32>} : memref<1x16x16x4xf32, #tpu.memory_space<vmem>>, vector<1x16x16x4xf32>,
    return
  }
  func.func @transform_0(%arg0: i32) -> (i32, i32, i32, i32) {
    %c0_i32 = arith.constant 0 : i32
    %c0_i32_0 = arith.constant 0 : i32
    %c0_i32_1 = arith.constant 0 : i32
    %c0_i32_2 = arith.constant 0 : i32
    return %arg0, %c0_i32, %c0_i32_0, %c0_i32_1 : i32, i32, i32, i32
  }
  func.func @transform_1(%arg0: i32) -> (i32, i32, i32, i32) {
    %c0_i32 = arith.constant 0 : i32
    %c0_i32_0 = arith.constant 0 : i32
    %c0_i32_1 = arith.constant 0 : i32
    %c0_i32_2 = arith.constant 0 : i32
    %c0_i32_3 = arith.constant 0 : i32
    return %c0_i32, %c0_i32_0, %c0_i32_1, %c0_i32_2 : i32, i32, i32, i32
  }
  func.func @transform_2(%arg0: i32) -> (i32, i32) {
    %c0_i32 = arith.constant 0 : i32
    %c0_i32_0 = arith.constant 0 : i32
    %c0_i32_1 = arith.constant 0 : i32
    return %c0_i32, %c0_i32_0 : i32, i32
  }
  func.func @transform_3(%arg0: i32) -> (i32, i32) {
    %c0_i32 = arith.constant 0 : i32
    %c0_i32_0 = arith.constant 0 : i32
    %c0_i32_1 = arith.constant 0 : i32
    return %c0_i32, %c0_i32_0 : i32, i32
  }
  func.func @transform_4(%arg0: i32) -> (i32, i32, i32, i32) {
    %c0_i32 = arith.constant 0 : i32
    %c0_i32_0 = arith.constant 0 : i32
    %c0_i32_1 = arith.constant 0 : i32
    %c0_i32_2 = arith.constant 0 : i32
    %c0_i32_3 = arith.constant 0 : i32
    return %c0_i32, %c0_i32_0, %c0_i32_1, %c0_i32_2 : i32, i32, i32, i32
  }
  func.func @transform_5(%arg0: i32) -> (i32, i32) {
    %c0_i32 = arith.constant 0 : i32
    %c0_i32_0 = arith.constant 0 : i32
    %c0_i32_1 = arith.constant 0 : i32
    return %c0_i32, %c0_i32_0 : i32, i32
  }
  func.func @transform_6(%arg0: i32) -> (i32, i32) {
    %c0_i32 = arith.constant 0 : i32
    %c0_i32_0 = arith.constant 0 : i32
    %c0_i32_1 = arith.constant 0 : i32
    return %c0_i32, %c0_i32_0 : i32, i32
  }
  func.func @transform_7(%arg0: i32) -> (i32, i32, i32, i32) {
    %c0_i32 = arith.constant 0 : i32
    %c0_i32_0 = arith.constant 0 : i32
    %c0_i32_1 = arith.constant 0 : i32
    %c0_i32_2 = arith.constant 0 : i32
    return %arg0, %c0_i32, %c0_i32_0, %c0_i32_1 : i32, i32, i32, i32
  }
}

</mosaic_0001>

<bundles_post_ra>
// kernel: tpu_custom_call.1
= control target key start
LH: loop header
LB: loop body
LE: loop exit
PB: predicated region body
PF: predicated region fallthrough
CT: control target
= control target key end

     0   :  { %s4668_s24 = smov 0   ;;  %s7597_s0 = inlined_call_operand.vmem [shape: f32[2,16,16,4], index: 0, kind: input, shape index: {}]   ;;  %s7598_s1 = inlined_call_operand.vmem [shape: f32[3,3,4,4], index: 1, kind: input, shape index: {}]   ;;  %s7599_s2 = inlined_call_operand.vmem [shape: f32[1,4], index: 2, kind: input, shape index: {}]   ;;  %s7600_s3 = inlined_call_operand.vmem [shape: f32[1,4], index: 3, kind: input, shape index: {}]   ;;  %s7601_s4 = inlined_call_operand.vmem [shape: f32[3,3,4,4], index: 4, kind: input, shape index: {}]   ;;  %s7602_s5 = inlined_call_operand.vmem [shape: f32[1,4], index: 5, kind: input, shape index: {}]   ;;  %s7603_s6 = inlined_call_operand.vmem [shape: f32[1,4], index: 6, kind: input, shape index: {}]   ;;  %s7604_s7 = inlined_call_operand.vmem [shape: f32[2,16,16,4], index: 7, kind: output, shape index: {}]  }
   0x1 LB: > { %s3927_s25 = sadd.s32 4294967295, %s4625_s24   ;;  %p3931_p0 = scmp.ge.s32.totalorder %s4625_s24, 1  ;;  %s4625_s24 = sphi %s4668_s24, %s17_s24  }
   0x2   : > { %p237_p1 = scmp.lt.s32.totalorder %s4625_s24, 3 }
   0x4   : > { %p238_p2 = pnand %p3931_p0, %p237_p1 }
   0x6   : > { %241 = sbr.rel (%p238_p2) target bundleno = 1427 (0x593), region = 48 }
   0xb   : > { %v3936_v0 = vld [vmem:[%s7598_s1 + $0x4] sm:$0xf]  ;;  %vm471_vm0 = vcmask 1043456   ;;  %p269_p3 = scmp.lt.s32.totalorder %s3927_s25, 1  ;;  %vm408_vm1 = vcmask 31744   ;;  %v7605_v3 = vmov 0.0  }
   0xc   : > { %3937 = vmatpush.msk.msra.mxu0 %vm471_vm0, %v3936_v0  ;;  %4542 = vmatpush.msk.msra.mxu2 %vm471_vm0, %v3936_v0  ;;  %v4001_v1 = vld [vmem:[%s7598_s1 + $0x8] sm:$0xf]  ;;  %v405_v2 = vld [vmem:[%s7598_s1] sm:$0xf]  ;;  %v4688_v4 = vrot.slane %v7605_v3, 7  ;;  %vm342_vm2 = vcmask 1040384  }
   0xd   : > { %491 = vmatmul.f32.vlgmr.msra.gmra.mxu0 %v7605_v3  ;;  %s8106_s25 = smov (!%p269_p3, %s3927_s25), 1  ;;  %v4035_v5 = vld [vmem:[%s7598_s1 + $0xc] sm:$0xf]  ;;  %v4069_v6 = vld [vmem:[%s7598_s1 + $0x10] sm:$0xf]  ;;  %4543 = vmatpush.msk.msra.mxu3 %vm471_vm0, %v405_v2  ;;  %vm766_vm3 = vcmask 1046528  }
   0xe   : > { %7748 = vst [vmem:[#allocation2_spill] sm:$0xff] %v4688_v4  ;;  %4002 = vmatpush.msk.msrb.mxu2 %vm471_vm0, %v4001_v1  ;;  %3968 = vmatpush.msk.msra.mxu1 %vm471_vm0, %v405_v2  ;;  %s4540_s13 = sshll.u32 %s8106_s25, 8 }
   0xf   : > { %4036 = vmatpush.msk.msrb.mxu3 %vm471_vm0, %v4035_v5  ;;  %3969 = vmatmul.msk.f32.vlgmr.msra.gmra.mxu1 %vm408_vm1, %v4688_v4  ;;  %s4711_s16 = scalar_lea.vmem %s7597_s0, %s4540_s13  ;;  %s7277_s19 = scalar_lea.vmem %s7604_s7, %s4540_s13 }
  0x10   : > { %4070 = vmatpush.msk.msrb.mxu0 %vm471_vm0, %v4069_v6  ;;  %v4715_v7 = vld [vmem:[%s4711_s16 + $0x70] sm:$0xff]  ;;  %v4721_v9 = vld [vmem:[%s4711_s16 + $0x78] sm:$0xff]  ;;  %v4732_v12 = vld [vmem:[%s4711_s16] sm:$0xff] }
  0x11   : > { %3952 = vmatmul.msk.f32.vlgmr.msra.gmra.mxu2 %vm408_vm1, %v4715_v7  ;;  %v373_v8 = vrot.slane %v4715_v7, 7  ;;  %v375_v11 = vrot.slane %v4721_v9, 7  ;;  %v345_v13 = vrot.slane %v4732_v12, 7  ;;  %v4743_v15 = vld [vmem:[%s4711_s16 + $0x80] sm:$0xff]  ;;  %v4755_v18 = vld [vmem:[%s4711_s16 + $0x8] sm:$0xff]  ;;  %v4778_v24 = vld [vmem:[%s4711_s16 + $0x10] sm:$0xff] }
  0x12   : > { %v377_v17 = vrot.slane %v4743_v15, 7  ;;  %v347_v19 = vrot.slane %v4755_v18, 7  ;;  %v4767_v21 = vld [vmem:[%s4711_s16 + $0x88] sm:$0xff]  ;;  %v349_v25 = vrot.slane %v4778_v24, 7  ;;  %v4789_v27 = vld [vmem:[%s4711_s16 + $0x90] sm:$0xff]  ;;  %v4801_v30 = vld [vmem:[%s4711_s16 + $0x18] sm:$0xff] }
  0x13   : > { %v4725_v10 = vsel %vm342_vm2, %v4688_v4, %v373_v8  ;;  %v4740_v14 = vsel %vm342_vm2, %v373_v8, %v375_v11  ;;  %v4747_v16 = vsel %vm342_vm2, %v4688_v4, %v345_v13  ;;  %v379_v23 = vrot.slane %v4767_v21, 7  ;;  %v4813_v33 = vld [vmem:[%s4711_s16 + $0x98] sm:$0xff]  ;;  %v4824_v36 = vld [vmem:[%s4711_s16 + $0x20] sm:$0xff]  ;;  %v4847_v42 = vld [vmem:[%s4711_s16 + $0x28] sm:$0xff] }
  0x14   : > { %7749 = vst [vmem:[#allocation3_spill] sm:$0xff] %v4725_v10  ;;  %3985 = vmatmul.msk.f32.vlgmr.msra.gmra.mxu3 %vm408_vm1, %v4725_v10  ;;  %v4764_v20 = vsel %vm342_vm2, %v4688_v4, %v377_v17  ;;  %v4770_v22 = vsel %vm342_vm2, %v345_v13, %v347_v19  ;;  %v4793_v28 = vsel %vm342_vm2, %v4688_v4, %v349_v25  ;;  %v381_v29 = vrot.slane %v4789_v27, 7  ;;  %v4835_v39 = vld [vmem:[%s4711_s16 + $0xa0] sm:$0xff]  ;;  %v4859_v45 = vld [vmem:[%s4711_s16 + $0xa8] sm:$0xff]  ;;  %v4870_v48 = vld [vmem:[%s4711_s16 + $0x30] sm:$0xff] }
  0x15   : > { %494 = vmatmul.f32.gmra.mxu0 %v7605_v3  ;;  %7750 = vst [vmem:[#allocation4_spill] sm:$0xff] %v4740_v14  ;;  %v4786_v26 = vsel %vm342_vm2, %v377_v17, %v379_v23  ;;  %v351_v31 = vrot.slane %v4801_v30, 7  ;;  %v383_v35 = vrot.slane %v4813_v33, 7  ;;  %v353_v37 = vrot.slane %v4824_v36, 7  ;;  %v4881_v51 = vld [vmem:[%s4711_s16 + $0xb0] sm:$0xff]  ;;  %v4893_v54 = vld [vmem:[%s4711_s16 + $0x38] sm:$0xff] }
  0x16   : > { %7751 = vst [vmem:[#allocation5_spill] sm:$0xff] %v4764_v20  ;;  %v4810_v32 = vsel %vm342_vm2, %v4688_v4, %v381_v29  ;;  %v385_v41 = vrot.slane %v4835_v39, 7  ;;  %v355_v43 = vrot.slane %v4847_v42, 7  ;;  %v387_v47 = vrot.slane %v4859_v45, 7  ;;  %v4905_v57 = vld [vmem:[%s4711_s16 + $0xb8] sm:$0xff]  ;;  %v4916_v60 = vld [vmem:[%s4711_s16 + $0x40] sm:$0xff] }
  0x17   : > { %3970 = vmatmul.msk.f32.gmra.mxu1 %vm408_vm1, %v4688_v4  ;;  %7752 = vst [vmem:[#allocation6_spill] sm:$0xff] %v4793_v28  ;;  %v4816_v34 = vsel %vm342_vm2, %v349_v25, %v351_v31  ;;  %v4832_v38 = vsel %vm342_vm2, %v381_v29, %v383_v35  ;;  %v4839_v40 = vsel %vm342_vm2, %v4688_v4, %v353_v37  ;;  %v357_v49 = vrot.slane %v4870_v48, 7  ;;  %v4927_v63 = vld [vmem:[%s4711_s16 + $0xc0] sm:$0xff]  ;;  %v4939_v2 = vld [vmem:[%s4711_s16 + $0x48] sm:$0xff]  ;;  %v4962_v17 = vld [vmem:[%s4711_s16 + $0x50] sm:$0xff] }
  0x18   : > { %7753 = vst [vmem:[#allocation7_spill] sm:$0xff] %v4816_v34  ;;  %v4856_v44 = vsel %vm342_vm2, %v4688_v4, %v385_v41  ;;  %v4862_v46 = vsel %vm342_vm2, %v353_v37, %v355_v43  ;;  %v4878_v50 = vsel %vm342_vm2, %v385_v41, %v387_v47  ;;  %v389_v53 = vrot.slane %v4881_v51, 7  ;;  %v4951_v8 = vld [vmem:[%s4711_s16 + $0xc8] sm:$0xff]  ;;  %v4973_v25 = vld [vmem:[%s4711_s16 + $0xd0] sm:$0xff]  ;;  %v4985_v35 = vld [vmem:[%s4711_s16 + $0x58] sm:$0xff] }
  0x19   : > { %3953 = vmatmul.msk.f32.gmra.mxu2 %vm408_vm1, %v4721_v9  ;;  %7754 = vst [vmem:[#allocation8_spill] sm:$0xff] %v4839_v40  ;;  %v4885_v52 = vsel %vm342_vm2, %v4688_v4, %v357_v49  ;;  %v359_v55 = vrot.slane %v4893_v54, 7  ;;  %v391_v59 = vrot.slane %v4905_v57, 7  ;;  %v361_v61 = vrot.slane %v4916_v60, 7  ;;  %v4103_v43 = vld [vmem:[%s7598_s1 + $0x14] sm:$0xf] }
  0x1a   : > { %7755 = vst [vmem:[#allocation9_spill] sm:$0xff] %v4862_v46  ;;  %v4902_v56 = vsel %vm342_vm2, %v4688_v4, %v389_v53  ;;  %v393_v1 = vrot.slane %v4927_v63, 7  ;;  %v363_v5 = vrot.slane %v4939_v2, 7  ;;  %v395_v13 = vrot.slane %v4951_v8, 7  ;;  %v4137_v47 = vld [vmem:[%s7598_s1 + $0x18] sm:$0xf]  ;;  %4104 = vmatpush.msk.msrb.mxu1 %vm471_vm0, %v4103_v43 }
  0x1b   : > { %7756 = vst [vmem:[#allocation10_spill] sm:$0xff] %v4885_v52  ;;  %v4908_v58 = vsel %vm342_vm2, %v357_v49, %v359_v55  ;;  %v4924_v62 = vsel %vm342_vm2, %v389_v53, %v391_v59  ;;  %v4931_v0 = vsel %vm342_vm2, %v4688_v4, %v361_v61  ;;  %v365_v19 = vrot.slane %v4962_v17, 7  ;;  %v5003_v49 = vld [vmem:[%s4711_s16 + $0xd8] sm:$0xff]  ;;  %4138 = vmatpush.msk.msra.mxu2 %vm471_vm0, %v4137_v47 }
  0x1c   : > { %3986 = vmatmul.msk.f32.gmra.mxu3 %vm408_vm1, %v4740_v14  ;;  %7757 = vst [vmem:[#allocation11_spill] sm:$0xff] %v4908_v58  ;;  %v4948_v6 = vsel %vm342_vm2, %v4688_v4, %v393_v1  ;;  %v4954_v11 = vsel %vm342_vm2, %v361_v61, %v363_v5  ;;  %v4970_v23 = vsel %vm342_vm2, %v393_v1, %v395_v13  ;;  %v397_v31 = vrot.slane %v4973_v25, 7  ;;  %v4171_v55 = vld [vmem:[%s7598_s1 + $0x1c] sm:$0xf]  ;;  %v5020_v61 = vld [vmem:[%s4711_s16 + $0x60] sm:$0xff] }
  0x1d   : > { %3938 = vmatmul.msk.f32.gmra.mxu0 %vm408_vm1, %v4732_v12  ;;  %7758 = vst [vmem:[#allocation12_spill] sm:$0xff] %v4931_v0  ;;  %v4977_v29 = vsel %vm342_vm2, %v4688_v4, %v365_v19  ;;  %v367_v37 = vrot.slane %v4985_v35, 7  ;;  %v399_v59 = vrot.slane %v5003_v49, 7  ;;  %4172 = vmatpush.msk.msra.mxu3 %vm471_vm0, %v4171_v55  ;;  %v369_v1 = vrot.slane %v5020_v61, 7  ;;  %v5031_v13 = vld [vmem:[%s4711_s16 + $0xe0] sm:$0xff] }
  0x1e   : > { %7759 = vst [vmem:[#allocation13_spill] sm:$0xff] %v4948_v6  ;;  %v4994_v41 = vsel %vm342_vm2, %v4688_v4, %v397_v31  ;;  %v401_v43 = vrot.slane %v5031_v13, 7 }
  0x1f   : > { %3971 = vmatmul.msk.f32.gmra.mxu1 %vm408_vm1, %v4747_v16  ;;  %7760 = vst [vmem:[#allocation14_spill] sm:$0xff] %v4954_v11  ;;  %v5008_v53 = vsel %vm342_vm2, %v365_v19, %v367_v37  ;;  %v5028_v5 = vsel %vm342_vm2, %v397_v31, %v399_v59  ;;  %v5035_v19 = vsel %vm342_vm2, %v4688_v4, %v369_v1  ;;  %v4203_v37 = vld [vmem:[%s7598_s1 + $0x20] sm:$0xf]  ;;  %v5047_v31 = vld [vmem:[%s4711_s16 + $0x68] sm:$0xff] }
  0x20   : > { %7761 = vst [vmem:[#allocation15_spill] sm:$0xff] %v4970_v23  ;;  %4204 = vmatpush.msk.msra.mxu0 %vm471_vm0, %v4203_v37  ;;  %v371_v47 = vrot.slane %v5047_v31, 7  ;;  %v5056_v55 = vsel %vm342_vm2, %v4688_v4, %v401_v43  ;;  %v5059_v59 = vld [vmem:[%s4711_s16 + $0xe8] sm:$0xff]  ;;  %v770_v4 = vrot.slane %v4755_v18, 1 }
  0x21   : > { %3954 = vmatmul.msk.f32.gmra.mxu2 %vm408_vm1, %v4743_v15  ;;  %7762 = vst [vmem:[#allocation16_spill] sm:$0xff] %v4973_v25  ;;  %v403_v37 = vrot.slane %v5059_v59, 7 }
  0x22   : > { %7763 = vst [vmem:[#allocation17_spill] sm:$0xff] %v4977_v29  ;;  %v5062_v3 = vsel %vm342_vm2, %v369_v1, %v371_v47 }
  0x23   : > { %7764 = vst [vmem:[#allocation18_spill] sm:$0xff] %v4994_v41  ;;  %v5078_v1 = vsel %vm342_vm2, %v401_v43, %v403_v37 }
  0x24   : > { %3987 = vmatmul.msk.f32.gmra.mxu3 %vm408_vm1, %v4764_v20  ;;  %7765 = vst [vmem:[#allocation19_spill] sm:$0xff] %v5003_v49 }
  0x25   : > { %3939 = vmatmul.msk.f32.gmra.mxu0 %vm408_vm1, %v4755_v18  ;;  %7766 = vst [vmem:[#allocation20_spill] sm:$0xff] %v5008_v53 }
  0x26   : > { %7767 = vst [vmem:[#allocation21_spill] sm:$0xff] %v5028_v5 }
  0x27   : > { %3972 = vmatmul.msk.f32.gmra.mxu1 %vm408_vm1, %v4770_v22  ;;  %7768 = vst [vmem:[#allocation22_spill] sm:$0xff] %v5031_v13 }
  0x28   : > { %7769 = vst [vmem:[#allocation23_spill] sm:$0xff] %v5035_v19 }
  0x29   : > { %3955 = vmatmul.msk.f32.gmra.mxu2 %vm408_vm1, %v4767_v21  ;;  %7770 = vst [vmem:[#allocation24_spill] sm:$0xff] %v5056_v55 }
  0x2a   : > { %7771 = vst [vmem:[#allocation25_spill] sm:$0xff] %v5059_v59 }
  0x2b   : > { %7772 = vst [vmem:[#allocation26_spill] sm:$0xff] %v5062_v3 }
  0x2c   : > { %3988 = vmatmul.msk.f32.gmra.mxu3 %vm408_vm1, %v4786_v26  ;;  %7773 = vst [vmem:[#allocation27_spill] sm:$0xff] %v5078_v1 }
  0x2d   : > { %3940 = vmatmul.msk.f32.gmra.mxu0 %vm408_vm1, %v4778_v24 }
  0x2f   : > { %3973 = vmatmul.msk.f32.gmra.mxu1 %vm408_vm1, %v4793_v28 }
  0x31   : > { %3956 = vmatmul.msk.f32.gmra.mxu2 %vm408_vm1, %v4789_v27 }
  0x34   : > { %3989 = vmatmul.msk.f32.gmra.mxu3 %vm408_vm1, %v4810_v32 }
  0x35   : > { %3941 = vmatmul.msk.f32.gmra.mxu0 %vm408_vm1, %v4801_v30 }
  0x37   : > { %3974 = vmatmul.msk.f32.gmra.mxu1 %vm408_vm1, %v4816_v34 }
  0x39   : > { %3957 = vmatmul.msk.f32.gmra.mxu2 %vm408_vm1, %v4813_v33 }
  0x3c   : > { %3990 = vmatmul.msk.f32.gmra.mxu3 %vm408_vm1, %v4832_v38 }
  0x3d   : > { %3942 = vmatmul.msk.f32.gmra.mxu0 %vm408_vm1, %v4824_v36 }
  0x3f   : > { %3975 = vmatmul.msk.f32.gmra.mxu1 %vm408_vm1, %v4839_v40 }
  0x41   : > { %3958 = vmatmul.msk.f32.gmra.mxu2 %vm408_vm1, %v4835_v39 }
  0x44   : > { %3991 = vmatmul.msk.f32.gmra.mxu3 %vm408_vm1, %v4856_v44 }
  0x45   : > { %3943 = vmatmul.msk.f32.gmra.mxu0 %vm408_vm1, %v4847_v42 }
  0x47   : > { %3976 = vmatmul.msk.f32.gmra.mxu1 %vm408_vm1, %v4862_v46 }
  0x49   : > { %3959 = vmatmul.msk.f32.gmra.mxu2 %vm408_vm1, %v4859_v45 }
  0x4c   : > { %3992 = vmatmul.msk.f32.gmra.mxu3 %vm408_vm1, %v4878_v50 }
  0x4d   : > { %3944 = vmatmul.msk.f32.gmra.mxu0 %vm408_vm1, %v4870_v48 }
  0x4f   : > { %3977 = vmatmul.msk.f32.gmra.mxu1 %vm408_vm1, %v4885_v52 }
  0x51   : > { %3960 = vmatmul.msk.f32.gmra.mxu2 %vm408_vm1, %v4881_v51 }
  0x54   : > { %3993 = vmatmul.msk.f32.gmra.mxu3 %vm408_vm1, %v4902_v56 }
  0x55   : > { %3945 = vmatmul.msk.f32.gmra.mxu0 %vm408_vm1, %v4893_v54 }
  0x57   : > { %3978 = vmatmul.msk.f32.gmra.mxu1 %vm408_vm1, %v4908_v58 }
  0x59   : > { %3961 = vmatmul.msk.f32.gmra.mxu2 %vm408_vm1, %v4905_v57 }
  0x5c   : > { %3994 = vmatmul.msk.f32.gmra.mxu3 %vm408_vm1, %v4924_v62 }
  0x5d   : > { %3946 = vmatmul.msk.f32.gmra.mxu0 %vm408_vm1, %v4916_v60 }
  0x5f   : > { %3979 = vmatmul.msk.f32.gmra.mxu1 %vm408_vm1, %v4931_v0 }
  0x61   : > { %3962 = vmatmul.msk.f32.gmra.mxu2 %vm408_vm1, %v4927_v63 }
  0x64   : > { %3995 = vmatmul.msk.f32.gmra.mxu3 %vm408_vm1, %v4948_v6 }
  0x65   : > { %3947 = vmatmul.msk.f32.gmra.mxu0 %vm408_vm1, %v4939_v2 }
  0x67   : > { %3980 = vmatmul.msk.f32.gmra.mxu1 %vm408_vm1, %v4954_v11 }
  0x69   : > { %3963 = vmatmul.msk.f32.gmra.mxu2 %vm408_vm1, %v4951_v8 }
  0x6c   : > { %3996 = vmatmul.msk.f32.gmra.mxu3 %vm408_vm1, %v4970_v23 }
  0x6d   : > { %3948 = vmatmul.msk.f32.gmra.mxu0 %vm408_vm1, %v4962_v17 }
  0x6f   : > { %3981 = vmatmul.msk.f32.gmra.mxu1 %vm408_vm1, %v4977_v29 }
  0x71   : > { %3964 = vmatmul.msk.f32.gmra.mxu2 %vm408_vm1, %v4973_v25 }
  0x74   : > { %3997 = vmatmul.msk.f32.gmra.mxu3 %vm408_vm1, %v4994_v41  ;;  %v7774_v41 = vmov 0.0  }
  0x75   : > { %3949 = vmatmul.msk.f32.gmra.mxu0 %vm408_vm1, %v4985_v35  ;;  %v5088_v23 = vrot.slane %v7774_v41, 1  ;;  %v773_v41 = vrot.slane %v4778_v24, 1 }
  0x77   : > { %3982 = vmatmul.msk.f32.gmra.mxu1 %vm408_vm1, %v5008_v53  ;;  %7775 = vst [vmem:[#allocation28_spill] sm:$0xff] %v5088_v23 }
  0x79   : > { %3965 = vmatmul.msk.f32.gmra.mxu2 %vm408_vm1, %v5003_v49 }
  0x7c   : > { %3998 = vmatmul.msk.f32.gmra.mxu3 %vm408_vm1, %v5028_v5  ;;  %v769_v5 = vrot.slane %v4732_v12, 1 }
  0x7d   : > { %3950 = vmatmul.msk.f32.gmra.mxu0 %vm408_vm1, %v5020_v61 }
  0x7f   : > { %3983 = vmatmul.msk.f32.gmra.mxu1 %vm408_vm1, %v5035_v19 }
  0x81   : > { %3966 = vmatmul.msk.f32.gmra.mxu2 %vm408_vm1, %v5031_v13 }
  0x84   : > { %3999 = vmatmul.msk.f32.gmra.mxu3 %vm408_vm1, %v5056_v55  ;;  %v771_v55 = vsel %vm766_vm3, %v769_v5, %v770_v4  ;;  %v772_v5 = vsel %vm766_vm3, %v770_v4, %v5088_v23 }
  0x85   : > { %3951 = vmatmul.msk.f32.gmra.mxu0 %vm408_vm1, %v5047_v31 }
  0x87   : > { %3984 = vmatmul.msk.f32.gmra.mxu1 %vm408_vm1, %v5062_v3 }
  0x89   : > { %3967 = vmatmul.msk.f32.gmra.mxu2 %vm408_vm1, %v5059_v59 }
  0x8a   : > { %v5073_v13 = vpop.f32.mrf.mxu0 }
  0x8c   : > { %v5080_v47 = vpop.f32.mrf.mxu1  ;;  %4000 = vmatmul.msk.f32.gmra.mxu3 %vm408_vm1, %v5078_v1  ;;  %v774_v1 = vrot.slane %v4801_v30, 1 }
  0x8d   : > { %4071 = vmatmul.msk.f32.vlgmr.msrb.gmra.mxu0 %vm408_vm1, %v4732_v12 }
  0x8f   : > { %4105 = vmatmul.msk.f32.vlgmr.msrb.gmra.mxu1 %vm408_vm1, %v771_v55 }
  0x91   : > { %4003 = vmatmul.msk.f32.vlgmr.msrb.gmra.mxu2 %vm408_vm1, %v5088_v23 }
  0x92   : > { %v5091_v49 = vpop.f32.mrf.mxu0 }
  0x94   : > { %v5095_v43 = vpop.f32.mrf.mxu1  ;;  %v540_v37 = vpop.f32.mrf.mxu2  ;;  %4037 = vmatmul.msk.f32.vlgmr.msrb.gmra.mxu3 %vm408_vm1, %v4747_v16  ;;  %v5115_v16 = vsel %vm766_vm3, %v773_v41, %v774_v1  ;;  %v5132_v41 = vsel %vm766_vm3, %v774_v1, %v5088_v23 }
  0x95   : > { %4072 = vmatmul.msk.f32.gmra.mxu0 %vm408_vm1, %v4755_v18  ;;  %7777 = vst [vmem:[#allocation30_spill] sm:$0xff] %v5115_v16 }
  0x96   : > { %7779 = vst [vmem:[#allocation32_spill] sm:$0xff] %v5132_v41 }
  0x97   : > { %4106 = vmatmul.msk.f32.gmra.mxu1 %vm408_vm1, %v772_v5  ;;  %v718_v12 = vpop.f32.mrf.mxu3 }
  0x98   : > { %v5106_v59 = vadd.f32 %v718_v12, %v540_v37 }
  0x99   : > { %4004 = vmatmul.msk.f32.gmra.mxu2 %vm408_vm1, %v5088_v23 }
  0x9a   : > { %7776 = vst [vmem:[#allocation29_spill] sm:$0xff] %v5106_v59  ;;  %v5108_v25 = vpop.f32.mrf.mxu0 }
  0x9c   : > { %v5112_v4 = vpop.f32.mrf.mxu1  ;;  %v543_v18 = vpop.f32.mrf.mxu2  ;;  %4038 = vmatmul.msk.f32.gmra.mxu3 %vm408_vm1, %v4770_v22 }
  0x9d   : > { %4073 = vmatmul.msk.f32.gmra.mxu0 %vm408_vm1, %v4778_v24 }
  0x9f   : > { %4107 = vmatmul.msk.f32.gmra.mxu1 %vm408_vm1, %v5115_v16  ;;  %v721_v37 = vpop.f32.mrf.mxu3 }
  0xa0   : > { %v5123_v12 = vadd.f32 %v721_v37, %v543_v18  ;;  %v777_v18 = vrot.slane %v4824_v36, 1 }
  0xa1   : > { %4005 = vmatmul.msk.f32.gmra.mxu2 %vm408_vm1, %v771_v55  ;;  %v778_v55 = vrot.slane %v4847_v42, 1 }
  0xa2   : > { %7778 = vst [vmem:[#allocation31_spill] sm:$0xff] %v5123_v12  ;;  %v5125_v59 = vpop.f32.mrf.mxu0 }
  0xa4   : > { %v5128_v6 = vpop.f32.mrf.mxu1  ;;  %v546_v22 = vpop.f32.mrf.mxu2  ;;  %4039 = vmatmul.msk.f32.gmra.mxu3 %vm408_vm1, %v4793_v28  ;;  %v5150_v28 = vsel %vm766_vm3, %v777_v18, %v778_v55  ;;  %v5168_v18 = vsel %vm766_vm3, %v778_v55, %v5088_v23 }
  0xa5   : > { %4074 = vmatmul.msk.f32.gmra.mxu0 %vm408_vm1, %v4801_v30  ;;  %7781 = vst [vmem:[#allocation34_spill] sm:$0xff] %v5150_v28 }
  0xa6   : > { %7783 = vst [vmem:[#allocation36_spill] sm:$0xff] %v5168_v18 }
  0xa7   : > { %4108 = vmatmul.msk.f32.gmra.mxu1 %vm408_vm1, %v5132_v41  ;;  %v724_v24 = vpop.f32.mrf.mxu3 }
  0xa8   : > { %v5142_v37 = vadd.f32 %v724_v24, %v546_v22 }
  0xa9   : > { %4006 = vmatmul.msk.f32.gmra.mxu2 %vm408_vm1, %v772_v5 }
  0xaa   : > { %7780 = vst [vmem:[#allocation33_spill] sm:$0xff] %v5142_v37  ;;  %v5144_v12 = vpop.f32.mrf.mxu0 }
  0xac   : > { %v5147_v1 = vpop.f32.mrf.mxu1  ;;  %v549_v30 = vpop.f32.mrf.mxu2  ;;  %4040 = vmatmul.msk.f32.gmra.mxu3 %vm408_vm1, %v4816_v34 }
  0xad   : > { %4075 = vmatmul.msk.f32.gmra.mxu0 %vm408_vm1, %v4824_v36 }
  0xaf   : > { %4109 = vmatmul.msk.f32.gmra.mxu1 %vm408_vm1, %v5150_v28  ;;  %v727_v22 = vpop.f32.mrf.mxu3 }
  0xb0   : > { %v5158_v24 = vadd.f32 %v727_v22, %v549_v30  ;;  %v781_v30 = vrot.slane %v4870_v48, 1  ;;  %v782_v22 = vrot.slane %v4893_v54, 1 }
  0xb1   : > { %4007 = vmatmul.msk.f32.gmra.mxu2 %vm408_vm1, %v5115_v16 }
  0xb2   : > { %7782 = vst [vmem:[#allocation35_spill] sm:$0xff] %v5158_v24  ;;  %v5160_v37 = vpop.f32.mrf.mxu0 }
  0xb4   : > { %v5164_v5 = vpop.f32.mrf.mxu1  ;;  %v552_v34 = vpop.f32.mrf.mxu2  ;;  %4041 = vmatmul.msk.f32.gmra.mxu3 %vm408_vm1, %v4839_v40  ;;  %v5187_v40 = vsel %vm766_vm3, %v781_v30, %v782_v22 }
  0xb5   : > { %4076 = vmatmul.msk.f32.gmra.mxu0 %vm408_vm1, %v4847_v42  ;;  %7785 = vst [vmem:[#allocation38_spill] sm:$0xff] %v5187_v40 }
  0xb7   : > { %4110 = vmatmul.msk.f32.gmra.mxu1 %vm408_vm1, %v5168_v18  ;;  %v730_v36 = vpop.f32.mrf.mxu3 }
  0xb8   : > { %v5178_v24 = vadd.f32 %v730_v36, %v552_v34 }
  0xb9   : > { %4008 = vmatmul.msk.f32.gmra.mxu2 %vm408_vm1, %v5132_v41  ;;  %v5205_v41 = vsel %vm766_vm3, %v782_v22, %v5088_v23 }
  0xba   : > { %7784 = vst [vmem:[#allocation37_spill] sm:$0xff] %v5178_v24  ;;  %v5180_v16 = vpop.f32.mrf.mxu0 }
  0xbb   : > { %7787 = vst [vmem:[#allocation40_spill] sm:$0xff] %v5205_v41 }
  0xbc   : > { %v5184_v55 = vpop.f32.mrf.mxu1  ;;  %v555_v42 = vpop.f32.mrf.mxu2  ;;  %4042 = vmatmul.msk.f32.gmra.mxu3 %vm408_vm1, %v4862_v46 }
  0xbd   : > { %4077 = vmatmul.msk.f32.gmra.mxu0 %vm408_vm1, %v4870_v48 }
  0xbf   : > { %4111 = vmatmul.msk.f32.gmra.mxu1 %vm408_vm1, %v5187_v40  ;;  %v733_v34 = vpop.f32.mrf.mxu3 }
  0xc0   : > { %v5195_v36 = vadd.f32 %v733_v34, %v555_v42  ;;  %v785_v42 = vrot.slane %v4916_v60, 1  ;;  %v786_v34 = vrot.slane %v4939_v2, 1 }
  0xc1   : > { %4009 = vmatmul.msk.f32.gmra.mxu2 %vm408_vm1, %v5150_v28 }
  0xc2   : > { %7786 = vst [vmem:[#allocation39_spill] sm:$0xff] %v5195_v36  ;;  %v5197_v24 = vpop.f32.mrf.mxu0 }
  0xc4   : > { %v5201_v30 = vpop.f32.mrf.mxu1  ;;  %v558_v46 = vpop.f32.mrf.mxu2  ;;  %4043 = vmatmul.msk.f32.gmra.mxu3 %vm408_vm1, %v4885_v52  ;;  %v5224_v52 = vsel %vm766_vm3, %v785_v42, %v786_v34 }
  0xc5   : > { %4078 = vmatmul.msk.f32.gmra.mxu0 %vm408_vm1, %v4893_v54  ;;  %7789 = vst [vmem:[#allocation42_spill] sm:$0xff] %v5224_v52 }
  0xc7   : > { %4112 = vmatmul.msk.f32.gmra.mxu1 %vm408_vm1, %v5205_v41  ;;  %v736_v48 = vpop.f32.mrf.mxu3 }
  0xc8   : > { %v5215_v36 = vadd.f32 %v736_v48, %v558_v46 }
  0xc9   : > { %4010 = vmatmul.msk.f32.gmra.mxu2 %vm408_vm1, %v5168_v18  ;;  %v5242_v18 = vsel %vm766_vm3, %v786_v34, %v5088_v23 }
  0xca   : > { %7788 = vst [vmem:[#allocation41_spill] sm:$0xff] %v5215_v36  ;;  %v5217_v28 = vpop.f32.mrf.mxu0 }
  0xcb   : > { %7791 = vst [vmem:[#allocation44_spill] sm:$0xff] %v5242_v18 }
  0xcc   : > { %v5221_v22 = vpop.f32.mrf.mxu1  ;;  %v561_v54 = vpop.f32.mrf.mxu2  ;;  %4044 = vmatmul.msk.f32.gmra.mxu3 %vm408_vm1, %v4908_v58 }
  0xcd   : > { %4079 = vmatmul.msk.f32.gmra.mxu0 %vm408_vm1, %v4916_v60 }
  0xcf   : > { %4113 = vmatmul.msk.f32.gmra.mxu1 %vm408_vm1, %v5224_v52  ;;  %v739_v46 = vpop.f32.mrf.mxu3 }
  0xd0   : > { %v5232_v48 = vadd.f32 %v739_v46, %v561_v54  ;;  %v789_v54 = vrot.slane %v4962_v17, 1  ;;  %v790_v46 = vrot.slane %v4985_v35, 1 }
  0xd1   : > { %4011 = vmatmul.msk.f32.gmra.mxu2 %vm408_vm1, %v5187_v40 }
  0xd2   : > { %7790 = vst [vmem:[#allocation43_spill] sm:$0xff] %v5232_v48  ;;  %v5234_v36 = vpop.f32.mrf.mxu0 }
  0xd4   : > { %v5238_v42 = vpop.f32.mrf.mxu1  ;;  %v564_v58 = vpop.f32.mrf.mxu2  ;;  %4045 = vmatmul.msk.f32.gmra.mxu3 %vm408_vm1, %v4931_v0  ;;  %v5261_v0 = vsel %vm766_vm3, %v789_v54, %v790_v46 }
  0xd5   : > { %4080 = vmatmul.msk.f32.gmra.mxu0 %vm408_vm1, %v4939_v2  ;;  %7793 = vst [vmem:[#allocation46_spill] sm:$0xff] %v5261_v0 }
  0xd7   : > { %4114 = vmatmul.msk.f32.gmra.mxu1 %vm408_vm1, %v5242_v18  ;;  %v742_v60 = vpop.f32.mrf.mxu3 }
  0xd8   : > { %v5252_v48 = vadd.f32 %v742_v60, %v564_v58 }
  0xd9   : > { %4012 = vmatmul.msk.f32.gmra.mxu2 %vm408_vm1, %v5205_v41  ;;  %v5279_v41 = vsel %vm766_vm3, %v790_v46, %v5088_v23 }
  0xda   : > { %7792 = vst [vmem:[#allocation45_spill] sm:$0xff] %v5252_v48  ;;  %v5254_v40 = vpop.f32.mrf.mxu0 }
  0xdb   : > { %7795 = vst [vmem:[#allocation48_spill] sm:$0xff] %v5279_v41 }
  0xdc   : > { %v5258_v34 = vpop.f32.mrf.mxu1  ;;  %v567_v2 = vpop.f32.mrf.mxu2  ;;  %4046 = vmatmul.msk.f32.gmra.mxu3 %vm408_vm1, %v4954_v11 }
  0xdd   : > { %4081 = vmatmul.msk.f32.gmra.mxu0 %vm408_vm1, %v4962_v17 }
  0xdf   : > { %4115 = vmatmul.msk.f32.gmra.mxu1 %vm408_vm1, %v5261_v0  ;;  %v745_v58 = vpop.f32.mrf.mxu3 }
  0xe0   : > { %v5269_v60 = vadd.f32 %v745_v58, %v567_v2  ;;  %v793_v2 = vrot.slane %v5020_v61, 1  ;;  %v794_v58 = vrot.slane %v5047_v31, 1 }
  0xe1   : > { %4013 = vmatmul.msk.f32.gmra.mxu2 %vm408_vm1, %v5224_v52 }
  0xe2   : > { %7794 = vst [vmem:[#allocation47_spill] sm:$0xff] %v5269_v60  ;;  %v5271_v48 = vpop.f32.mrf.mxu0 }
  0xe4   : > { %v5275_v54 = vpop.f32.mrf.mxu1  ;;  %v570_v11 = vpop.f32.mrf.mxu2  ;;  %4047 = vmatmul.msk.f32.gmra.mxu3 %vm408_vm1, %v4977_v29  ;;  %v5298_v29 = vsel %vm766_vm3, %v793_v2, %v794_v58  ;;  %v4237_v2 = vld [vmem:[%s7601_s4 + $0x4] sm:$0xf] }
  0xe5   : > { %4082 = vmatmul.msk.f32.gmra.mxu0 %vm408_vm1, %v4985_v35  ;;  %7797 = vst [vmem:[#allocation50_spill] sm:$0xff] %v5298_v29  ;;  %4238 = vmatpush.msk.msra.mxu1 %vm471_vm0, %v4237_v2  ;;  %v798_v2 = vrot.slane %v4721_v9, 1 }
  0xe7   : > { %4116 = vmatmul.msk.f32.gmra.mxu1 %vm408_vm1, %v5279_v41  ;;  %v748_v17 = vpop.f32.mrf.mxu3 }
  0xe8   : > { %v5289_v60 = vadd.f32 %v748_v17, %v570_v11 }
  0xe9   : > { %4014 = vmatmul.msk.f32.gmra.mxu2 %vm408_vm1, %v5242_v18 }
  0xea   : > { %7796 = vst [vmem:[#allocation49_spill] sm:$0xff] %v5289_v60  ;;  %v5291_v52 = vpop.f32.mrf.mxu0 }
  0xec   : > { %v5295_v46 = vpop.f32.mrf.mxu1  ;;  %v573_v35 = vpop.f32.mrf.mxu2  ;;  %4048 = vmatmul.msk.f32.gmra.mxu3 %vm408_vm1, %v5008_v53 }
  0xed   : > { %4083 = vmatmul.msk.f32.gmra.mxu0 %vm408_vm1, %v5020_v61  ;;  %v5320_v61 = vsel %vm766_vm3, %v794_v58, %v5088_v23 }
  0xee   : > { %7799 = vst [vmem:[#allocation52_spill] sm:$0xff] %v5320_v61 }
  0xef   : > { %4117 = vmatmul.msk.f32.gmra.mxu1 %vm408_vm1, %v5298_v29  ;;  %v751_v11 = vpop.f32.mrf.mxu3 }
  0xf0   : > { %v5306_v17 = vadd.f32 %v751_v11, %v573_v35  ;;  %v797_v11 = vrot.slane %v4715_v7, 1 }
  0xf1   : > { %4015 = vmatmul.msk.f32.gmra.mxu2 %vm408_vm1, %v5261_v0 }
  0xf2   : > { %7798 = vst [vmem:[#allocation51_spill] sm:$0xff] %v5306_v17  ;;  %v5308_v60 = vpop.f32.mrf.mxu0 }
  0xf4   : > { %v5316_v53 = vpop.f32.mrf.mxu1  ;;  %v576_v18 = vpop.f32.mrf.mxu2  ;;  %4049 = vmatmul.msk.f32.gmra.mxu3 %vm408_vm1, %v5035_v19  ;;  %v5339_v19 = vsel %vm766_vm3, %v797_v11, %v798_v2 }
  0xf5   : > { %4084 = vmatmul.msk.f32.gmra.mxu0 %vm408_vm1, %v5047_v31  ;;  %7801 = vst [vmem:[#allocation54_spill] sm:$0xff] %v5339_v19 }
  0xf7   : > { %4118 = vmatmul.msk.f32.gmra.mxu1 %vm408_vm1, %v5320_v61  ;;  %v754_v35 = vpop.f32.mrf.mxu3 }
  0xf8   : > { %v5330_v17 = vadd.f32 %v754_v35, %v576_v18 }
  0xf9   : > { %4016 = vmatmul.msk.f32.gmra.mxu2 %vm408_vm1, %v5279_v41  ;;  %v5357_v41 = vsel %vm766_vm3, %v798_v2, %v5088_v23 }
  0xfa   : > { %7800 = vst [vmem:[#allocation53_spill] sm:$0xff] %v5330_v17  ;;  %v5332_v0 = vpop.f32.mrf.mxu0 }
  0xfc   : > { %v5336_v58 = vpop.f32.mrf.mxu1  ;;  %v579_v31 = vpop.f32.mrf.mxu2  ;;  %4050 = vmatmul.msk.f32.gmra.mxu3 %vm408_vm1, %v5062_v3 }
  0xfd   : > { %4085 = vmatmul.msk.f32.gmra.mxu0 %vm408_vm1, %v4715_v7 }
  0xff   : > { %4119 = vmatmul.msk.f32.gmra.mxu1 %vm408_vm1, %v5339_v19  ;;  %v757_v18 = vpop.f32.mrf.mxu3 }
 0x100   : > { %v5347_v35 = vadd.f32 %v757_v18, %v579_v31  ;;  %v801_v31 = vrot.slane %v4743_v15, 1  ;;  %v802_v18 = vrot.slane %v4767_v21, 1 }
 0x101   : > { %4017 = vmatmul.msk.f32.gmra.mxu2 %vm408_vm1, %v5298_v29 }
 0x102   : > { %7802 = vst [vmem:[#allocation55_spill] sm:$0xff] %v5347_v35  ;;  %v5349_v17 = vpop.f32.mrf.mxu0 }
 0x104   : > { %v5353_v11 = vpop.f32.mrf.mxu1  ;;  %v582_v3 = vpop.f32.mrf.mxu2  ;;  %4051 = vmatmul.msk.f32.gmra.mxu3 %vm408_vm1, %v4725_v10  ;;  %v5372_v10 = vsel %vm766_vm3, %v801_v31, %v802_v18  ;;  %v671_v31 = vadd.f32 %v5080_v47, %v5073_v13  ;;  %v806_v13 = vrot.slane %v4813_v33, 1 }
 0x105   : > { %7803 = vst [vmem:[#allocation56_spill] sm:$0xff] %v5353_v11  ;;  %4086 = vmatmul.msk.f32.gmra.mxu0 %vm408_vm1, %v4721_v9 }
 0x107   : > { %4120 = vmatmul.msk.f32.gmra.mxu1 %vm408_vm1, %v5357_v41  ;;  %v760_v7 = vpop.f32.mrf.mxu3 }
 0x108   : > { %v5367_v35 = vadd.f32 %v760_v7, %v582_v3 }
 0x109   : > { %4018 = vmatmul.msk.f32.gmra.mxu2 %vm408_vm1, %v5320_v61 }
 0x10a   : > { %7804 = vst [vmem:[#allocation57_spill] sm:$0xff] %v5367_v35  ;;  %v1227_v2 = vpop.f32.mrf.mxu0 }
 0x10c   : > { %v1385_v29 = vpop.f32.mrf.mxu1  ;;  %v585_v11 = vpop.f32.mrf.mxu2  ;;  %4052 = vmatmul.msk.f32.gmra.mxu3 %vm408_vm1, %v4740_v14  ;;  %v5388_v14 = vsel %vm766_vm3, %v802_v18, %v5088_v23 }
 0x10d   : > { %4087 = vmatmul.msk.f32.gmra.mxu0 %vm408_vm1, %v4743_v15 }
 0x10f   : > { %4121 = vmatmul.msk.f32.gmra.mxu1 %vm408_vm1, %v5372_v10  ;;  %v763_v3 = vpop.f32.mrf.mxu3 }
 0x110   : > { %v5380_v9 = vadd.f32 %v763_v3, %v585_v11  ;;  %v805_v3 = vrot.slane %v4789_v27, 1 }
 0x111   : > { %4019 = vmatmul.msk.f32.gmra.mxu2 %vm408_vm1, %v5339_v19 }
 0x112   : > { %7805 = vst [vmem:[#allocation58_spill] sm:$0xff] %v5380_v9  ;;  %v1230_v7 = vpop.f32.mrf.mxu0 }
 0x114   : > { %v1388_v35 = vpop.f32.mrf.mxu1  ;;  %v913_v61 = vpop.f32.mrf.mxu2  ;;  %4053 = vmatmul.msk.f32.gmra.mxu3 %vm408_vm1, %v4764_v20  ;;  %v674_v20 = vadd.f32 %v5095_v43, %v5091_v49 }
 0x115   : > { %4088 = vmatmul.msk.f32.gmra.mxu0 %vm408_vm1, %v4767_v21  ;;  %v1009_v15 = vadd.f32 %v913_v61, %v671_v31  ;;  %v5403_v21 = vsel %vm766_vm3, %v805_v3, %v806_v13 }
 0x117   : > { %4122 = vmatmul.msk.f32.gmra.mxu1 %vm408_vm1, %v5388_v14  ;;  %v1073_v11 = vpop.f32.mrf.mxu3 }
 0x118   : > { %v1169_v47 = vadd.f32 %v1073_v11, %v1009_v15 }
 0x119   : > { %4020 = vmatmul.msk.f32.gmra.mxu2 %vm408_vm1, %v5357_v41 }
 0x11a   : > { %v1233_v18 = vpop.f32.mrf.mxu0  ;;  %v1323_v9 = vadd.f32 %v1227_v2, %v1169_v47 }
 0x11c   : > { %v1391_v19 = vpop.f32.mrf.mxu1  ;;  %v5405_v61 = vadd.f32 %v1385_v29, %v1323_v9  ;;  %v916_v31 = vpop.f32.mrf.mxu2  ;;  %4054 = vmatmul.msk.f32.gmra.mxu3 %vm408_vm1, %v4786_v26  ;;  %v677_v29 = vadd.f32 %v5112_v4, %v5108_v25  ;;  %v5419_v9 = vsel %vm766_vm3, %v806_v13, %v5088_v23  ;;  %v809_v25 = vrot.slane %v4835_v39, 1 }
 0x11d   : > { %4089 = vmatmul.msk.f32.gmra.mxu0 %vm408_vm1, %v4789_v27  ;;  %v1010_v15 = vadd.f32 %v916_v31, %v674_v20  ;;  %v810_v4 = vrot.slane %v4859_v45, 1 }
 0x11f   : > { %4123 = vmatmul.msk.f32.gmra.mxu1 %vm408_vm1, %v5403_v21  ;;  %v1076_v2 = vpop.f32.mrf.mxu3 }
 0x120   : > { %v1170_v11 = vadd.f32 %v1076_v2, %v1010_v15  ;;  %v680_v15 = vadd.f32 %v5128_v6, %v5125_v59  ;;  %v683_v59 = vadd.f32 %v5147_v1, %v5144_v12  ;;  %v813_v12 = vrot.slane %v4881_v51, 1 }
 0x121   : > { %4021 = vmatmul.msk.f32.gmra.mxu2 %vm408_vm1, %v5372_v10  ;;  %v814_v1 = vrot.slane %v4905_v57, 1 }
 0x122   : > { %v1236_v49 = vpop.f32.mrf.mxu0  ;;  %v1324_v43 = vadd.f32 %v1230_v7, %v1170_v11 }
 0x124   : > { %v5421_v3 = vadd.f32 %v1388_v35, %v1324_v43  ;;  %v919_v20 = vpop.f32.mrf.mxu2  ;;  %4055 = vmatmul.msk.f32.gmra.mxu3 %vm408_vm1, %v4810_v32  ;;  %v1394_v47 = vpop.f32.mrf.mxu1 }
 0x125   : > { %4090 = vmatmul.msk.f32.gmra.mxu0 %vm408_vm1, %v4813_v33  ;;  %v1011_v27 = vadd.f32 %v919_v20, %v677_v29  ;;  %v5436_v33 = vsel %vm766_vm3, %v809_v25, %v810_v4 }
 0x127   : > { %4124 = vmatmul.msk.f32.gmra.mxu1 %vm408_vm1, %v5419_v9  ;;  %v1079_v7 = vpop.f32.mrf.mxu3 }
 0x128   : > { %v1171_v13 = vadd.f32 %v1079_v7, %v1011_v27  ;;  %v5452_v27 = vsel %vm766_vm3, %v810_v4, %v5088_v23 }
 0x129   : > { %4022 = vmatmul.msk.f32.gmra.mxu2 %vm408_vm1, %v5388_v14 }
 0x12a   : > { %v1239_v35 = vpop.f32.mrf.mxu0  ;;  %v1325_v31 = vadd.f32 %v1233_v18, %v1171_v13 }
 0x12c   : > { %v5438_v2 = vadd.f32 %v1391_v19, %v1325_v31  ;;  %v922_v11 = vpop.f32.mrf.mxu2  ;;  %4056 = vmatmul.msk.f32.gmra.mxu3 %vm408_vm1, %v4832_v38  ;;  %v1397_v29 = vpop.f32.mrf.mxu1 }
 0x12d   : > { %4091 = vmatmul.msk.f32.gmra.mxu0 %vm408_vm1, %v4835_v39  ;;  %v1012_v43 = vadd.f32 %v922_v11, %v680_v15  ;;  %v686_v15 = vadd.f32 %v5164_v5, %v5160_v37 }
 0x12f   : > { %4125 = vmatmul.msk.f32.gmra.mxu1 %vm408_vm1, %v5436_v33  ;;  %v1082_v18 = vpop.f32.mrf.mxu3 }
 0x130   : > { %v1172_v20 = vadd.f32 %v1082_v18, %v1012_v43 }
 0x131   : > { %4023 = vmatmul.msk.f32.gmra.mxu2 %vm408_vm1, %v5403_v21 }
 0x132   : > { %v1242_v6 = vpop.f32.mrf.mxu0  ;;  %v1326_v19 = vadd.f32 %v1236_v49, %v1172_v20 }
 0x134   : > { %v5454_v39 = vadd.f32 %v1394_v47, %v1326_v19  ;;  %v925_v7 = vpop.f32.mrf.mxu2  ;;  %4057 = vmatmul.msk.f32.gmra.mxu3 %vm408_vm1, %v4856_v44  ;;  %v1400_v13 = vpop.f32.mrf.mxu1 }
 0x135   : > { %4092 = vmatmul.msk.f32.gmra.mxu0 %vm408_vm1, %v4859_v45  ;;  %v1013_v25 = vadd.f32 %v925_v7, %v683_v59  ;;  %v5469_v45 = vsel %vm766_vm3, %v813_v12, %v814_v1  ;;  %v5485_v59 = vsel %vm766_vm3, %v814_v1, %v5088_v23 }
 0x137   : > { %4126 = vmatmul.msk.f32.gmra.mxu1 %vm408_vm1, %v5452_v27  ;;  %v1085_v49 = vpop.f32.mrf.mxu3 }
 0x138   : > { %v1173_v4 = vadd.f32 %v1085_v49, %v1013_v25 }
 0x139   : > { %4024 = vmatmul.msk.f32.gmra.mxu2 %vm408_vm1, %v5419_v9 }
 0x13a   : > { %v1245_v47 = vpop.f32.mrf.mxu0  ;;  %v1327_v31 = vadd.f32 %v1239_v35, %v1173_v4  ;;  %v692_v4 = vadd.f32 %v5201_v30, %v5197_v24 }
 0x13c   : > { %v5471_v11 = vadd.f32 %v1397_v29, %v1327_v31  ;;  %v928_v43 = vpop.f32.mrf.mxu2  ;;  %4058 = vmatmul.msk.f32.gmra.mxu3 %vm408_vm1, %v4878_v50  ;;  %v689_v29 = vadd.f32 %v5184_v55, %v5180_v16  ;;  %v1403_v19 = vpop.f32.mrf.mxu1  ;;  %v817_v16 = vrot.slane %v4927_v63, 1  ;;  %v818_v55 = vrot.slane %v4951_v8, 1 }
 0x13d   : > { %4093 = vmatmul.msk.f32.gmra.mxu0 %vm408_vm1, %v4881_v51  ;;  %v1014_v18 = vadd.f32 %v928_v43, %v686_v15 }
 0x13f   : > { %4127 = vmatmul.msk.f32.gmra.mxu1 %vm408_vm1, %v5469_v45  ;;  %v1088_v35 = vpop.f32.mrf.mxu3 }
 0x140   : > { %v1174_v20 = vadd.f32 %v1088_v35, %v1014_v18  ;;  %v695_v35 = vadd.f32 %v5221_v22, %v5217_v28  ;;  %v7807_v28 = vld [vmem:[#allocation16_spill] sm:$0xff] }
 0x141   : > { %4025 = vmatmul.msk.f32.gmra.mxu2 %vm408_vm1, %v5436_v33  ;;  %v821_v22 = vrot.slane %v7807_v28, 1 }
 0x142   : > { %v1248_v37 = vpop.f32.mrf.mxu0  ;;  %v1328_v5 = vadd.f32 %v1242_v6, %v1174_v20  ;;  %v5518_v20 = vsel %vm766_vm3, %v818_v55, %v5088_v23 }
 0x144   : > { %v5487_v51 = vadd.f32 %v1400_v13, %v1328_v5  ;;  %v931_v7 = vpop.f32.mrf.mxu2  ;;  %4059 = vmatmul.msk.f32.gmra.mxu3 %vm408_vm1, %v4902_v56  ;;  %v1406_v43 = vpop.f32.mrf.mxu1 }
 0x145   : > { %4094 = vmatmul.msk.f32.gmra.mxu0 %vm408_vm1, %v4905_v57  ;;  %v1015_v25 = vadd.f32 %v931_v7, %v689_v29  ;;  %v5502_v57 = vsel %vm766_vm3, %v817_v16, %v818_v55  ;;  %v7806_v29 = vld [vmem:[#allocation13_spill] sm:$0xff] }
 0x147   : > { %4128 = vmatmul.msk.f32.gmra.mxu1 %vm408_vm1, %v5485_v59  ;;  %v1091_v6 = vpop.f32.mrf.mxu3 }
 0x148   : > { %v1175_v49 = vadd.f32 %v1091_v6, %v1015_v25  ;;  %v7808_v25 = vld [vmem:[#allocation19_spill] sm:$0xff] }
 0x149   : > { %4026 = vmatmul.msk.f32.gmra.mxu2 %vm408_vm1, %v5452_v27  ;;  %v822_v6 = vrot.slane %v7808_v25, 1 }
 0x14a   : > { %v1251_v12 = vpop.f32.mrf.mxu0  ;;  %v1329_v1 = vadd.f32 %v1245_v47, %v1175_v49 }
 0x14c   : > { %v5504_v13 = vadd.f32 %v1403_v19, %v1329_v1  ;;  %v934_v31 = vpop.f32.mrf.mxu2  ;;  %4060 = vmatmul.msk.f32.gmra.mxu3 %vm408_vm1, %v4924_v62  ;;  %v1409_v7 = vpop.f32.mrf.mxu1  ;;  %v698_v1 = vadd.f32 %v5238_v42, %v5234_v36 }
 0x14d   : > { %4095 = vmatmul.msk.f32.gmra.mxu0 %vm408_vm1, %v4927_v63  ;;  %v1016_v15 = vadd.f32 %v934_v31, %v692_v4 }
 0x14f   : > { %4129 = vmatmul.msk.f32.gmra.mxu1 %vm408_vm1, %v5502_v57  ;;  %v1094_v47 = vpop.f32.mrf.mxu3 }
 0x150   : > { %v1176_v18 = vadd.f32 %v1094_v47, %v1016_v15  ;;  %v7809_v15 = vld [vmem:[#allocation15_spill] sm:$0xff] }
 0x151   : > { %4027 = vmatmul.msk.f32.gmra.mxu2 %vm408_vm1, %v5469_v45 }
 0x152   : > { %v1254_v24 = vpop.f32.mrf.mxu0  ;;  %v1330_v30 = vadd.f32 %v1248_v37, %v1176_v18 }
 0x154   : > { %v5520_v63 = vadd.f32 %v1406_v43, %v1330_v30  ;;  %v937_v5 = vpop.f32.mrf.mxu2  ;;  %4061 = vmatmul.msk.f32.gmra.mxu3 %vm408_vm1, %v7806_v29  ;;  %v1412_v42 = vpop.f32.mrf.mxu1  ;;  %v701_v30 = vadd.f32 %v5258_v34, %v5254_v40  ;;  %v7812_v34 = vld [vmem:[#allocation25_spill] sm:$0xff] }
 0x155   : > { %4096 = vmatmul.msk.f32.gmra.mxu0 %vm408_vm1, %v4951_v8  ;;  %v1017_v19 = vadd.f32 %v937_v5, %v695_v35  ;;  %v5535_v8 = vsel %vm766_vm3, %v821_v22, %v822_v6  ;;  %v5551_v35 = vsel %vm766_vm3, %v822_v6, %v5088_v23  ;;  %v826_v22 = vrot.slane %v7812_v34, 1 }
 0x157   : > { %4130 = vmatmul.msk.f32.gmra.mxu1 %vm408_vm1, %v5518_v20  ;;  %v1097_v37 = vpop.f32.mrf.mxu3 }
 0x158   : > { %v1177_v16 = vadd.f32 %v1097_v37, %v1017_v19  ;;  %v7810_v37 = vld [vmem:[#allocation18_spill] sm:$0xff] }
 0x159   : > { %4028 = vmatmul.msk.f32.gmra.mxu2 %vm408_vm1, %v5485_v59 }
 0x15a   : > { %v1257_v55 = vpop.f32.mrf.mxu0  ;;  %v1331_v49 = vadd.f32 %v1251_v12, %v1177_v16 }
 0x15c   : > { %v5537_v4 = vadd.f32 %v1409_v7, %v1331_v49  ;;  %v940_v31 = vpop.f32.mrf.mxu2  ;;  %4062 = vmatmul.msk.f32.gmra.mxu3 %vm408_vm1, %v7809_v15 }
 0x15d   : > { %4097 = vmatmul.msk.f32.gmra.mxu0 %vm408_vm1, %v7807_v28  ;;  %v1018_v43 = vadd.f32 %v940_v31, %v698_v1  ;;  %v7811_v28 = vld [vmem:[#allocation22_spill] sm:$0xff]  ;;  %v704_v1 = vadd.f32 %v5275_v54, %v5271_v48 }
 0x15e   : > { %v825_v40 = vrot.slane %v7811_v28, 1 }
 0x15f   : > { %4131 = vmatmul.msk.f32.gmra.mxu1 %vm408_vm1, %v5535_v8  ;;  %v1100_v12 = vpop.f32.mrf.mxu3 }
 0x160   : > { %v1178_v47 = vadd.f32 %v1100_v12, %v1018_v43  ;;  %v7813_v43 = vld [vmem:[#allocation21_spill] sm:$0xff] }
 0x161   : > { %4029 = vmatmul.msk.f32.gmra.mxu2 %vm408_vm1, %v5502_v57 }
 0x162   : > { %v1260_v36 = vpop.f32.mrf.mxu0  ;;  %v1332_v18 = vadd.f32 %v1254_v24, %v1178_v47 }
 0x164   : > { %v5553_v5 = vadd.f32 %v1412_v42, %v1332_v18  ;;  %v943_v19 = vpop.f32.mrf.mxu2  ;;  %4063 = vmatmul.msk.f32.gmra.mxu3 %vm408_vm1, %v7810_v37  ;;  %v707_v42 = vadd.f32 %v5295_v46, %v5291_v52  ;;  %v5586_v18 = vsel %vm766_vm3, %v826_v22, %v5088_v23 }
 0x165   : > { %4098 = vmatmul.msk.f32.gmra.mxu0 %vm408_vm1, %v7808_v25  ;;  %v1019_v7 = vadd.f32 %v943_v19, %v701_v30  ;;  %v5570_v25 = vsel %vm766_vm3, %v825_v40, %v826_v22  ;;  %v7814_v19 = vld [vmem:[#allocation24_spill] sm:$0xff] }
 0x167   : > { %4132 = vmatmul.msk.f32.gmra.mxu1 %vm408_vm1, %v5551_v35  ;;  %v1103_v24 = vpop.f32.mrf.mxu3 }
 0x168   : > { %v1179_v6 = vadd.f32 %v1103_v24, %v1019_v7  ;;  %v5593_v24 = vld [vmem:[%s4711_s16 + $0xf0] sm:$0xff] }
 0x169   : > { %4030 = vmatmul.msk.f32.gmra.mxu2 %vm408_vm1, %v5518_v20  ;;  %v1355_v46 = vrot.slane %v5593_v24, 1 }
 0x16a   : > { %v1263_v16 = vpop.f32.mrf.mxu0  ;;  %v5565_v49 = vadd.f32 %v1257_v55, %v1179_v6 }
 0x16c   : > { %v946_v31 = vpop.f32.mrf.mxu2  ;;  %4064 = vmatmul.msk.f32.gmra.mxu3 %vm408_vm1, %v7813_v43 }
 0x16d   : > { %4099 = vmatmul.msk.f32.gmra.mxu0 %vm408_vm1, %v7811_v28  ;;  %v1020_v12 = vadd.f32 %v946_v31, %v704_v1  ;;  %v5596_v28 = vld [vmem:[%s4711_s16 + $0xf8] sm:$0xff] }
 0x16e   : > { %7815 = vst [vmem:[#allocation13_spill] sm:$0xff] %v5596_v28 }
 0x16f   : > { %4133 = vmatmul.msk.f32.gmra.mxu1 %vm408_vm1, %v5570_v25  ;;  %v1106_v55 = vpop.f32.mrf.mxu3 }
 0x170   : > { %v1180_v47 = vadd.f32 %v1106_v55, %v1020_v12  ;;  %v7816_v12 = vld [vmem:[#allocation27_spill] sm:$0xff] }
 0x171   : > { %4031 = vmatmul.msk.f32.gmra.mxu2 %vm408_vm1, %v5535_v8 }
 0x172   : > { %v1266_v48 = vpop.f32.mrf.mxu0  ;;  %v5580_v54 = vadd.f32 %v1260_v36, %v1180_v47  ;;  %v1356_v36 = vrot.slane %v5596_v28, 1  ;;  %v1043_v47 = vrot.slane %v5593_v24, 7 }
 0x174   : > { %v949_v30 = vpop.f32.mrf.mxu2  ;;  %4065 = vmatmul.msk.f32.gmra.mxu3 %vm408_vm1, %v7814_v19  ;;  %v5609_v1 = vsel %vm766_vm3, %v1355_v46, %v1356_v36  ;;  %v5630_v46 = vsel %vm766_vm3, %v1356_v36, %v5088_v23 }
 0x175   : > { %4100 = vmatmul.msk.f32.gmra.mxu0 %vm408_vm1, %v7812_v34  ;;  %v1021_v7 = vadd.f32 %v949_v30, %v707_v42  ;;  %v710_v34 = vadd.f32 %v5316_v53, %v5308_v60  ;;  %v7817_v60 = vld [vmem:[#allocation2_spill] sm:$0xff] }
 0x176   : > { %v5622_v30 = vsel %vm342_vm2, %v7817_v60, %v1043_v47 }
 0x177   : > { %4134 = vmatmul.msk.f32.gmra.mxu1 %vm408_vm1, %v5586_v18  ;;  %v1109_v52 = vpop.f32.mrf.mxu3 }
 0x178   : > { %v1181_v40 = vadd.f32 %v1109_v52, %v1021_v7  ;;  %v713_v52 = vadd.f32 %v5336_v58, %v5332_v0 }
 0x179   : > { %4032 = vmatmul.msk.f32.gmra.mxu2 %vm408_vm1, %v5551_v35 }
 0x17a   : > { %v1269_v22 = vpop.f32.mrf.mxu0  ;;  %v5604_v6 = vadd.f32 %v1263_v16, %v1181_v40 }
 0x17c   : > { %v952_v31 = vpop.f32.mrf.mxu2  ;;  %4066 = vmatmul.msk.f32.gmra.mxu3 %vm408_vm1, %v7816_v12 }
 0x17d   : > { %4101 = vmatmul.msk.f32.gmra.mxu0 %vm408_vm1, %v5593_v24  ;;  %v1022_v55 = vadd.f32 %v952_v31, %v710_v34  ;;  %v1045_v31 = vrot.slane %v5596_v28, 7 }
 0x17f   : > { %4135 = vmatmul.msk.f32.gmra.mxu1 %vm408_vm1, %v5609_v1  ;;  %v1112_v16 = vpop.f32.mrf.mxu3  ;;  %v5642_v58 = vsel %vm342_vm2, %v1043_v47, %v1045_v31  ;;  %v7824_v31 = vld [vmem:[#allocation6_spill] sm:$0xff] }
 0x180   : > { %v1182_v42 = vadd.f32 %v1112_v16, %v1022_v55  ;;  %7819 = vst [vmem:[#allocation19_spill] sm:$0xff] %v5642_v58  ;;  %v7821_v16 = vld [vmem:[#allocation56_spill] sm:$0xff] }
 0x181   : > { %4033 = vmatmul.msk.f32.gmra.mxu2 %vm408_vm1, %v5570_v25 }
 0x182   : > { %v1272_v53 = vpop.f32.mrf.mxu0  ;;  %v5624_v7 = vadd.f32 %v1266_v48, %v1182_v42  ;;  %v716_v42 = vadd.f32 %v7821_v16, %v5349_v17  ;;  %v7826_v16 = vld [vmem:[#allocation32_spill] sm:$0xff] }
 0x184   : > { %7818 = vst [vmem:[#allocation16_spill] sm:$0xff] %v5624_v7  ;;  %v955_v40 = vpop.f32.mrf.mxu2  ;;  %4067 = vmatmul.msk.f32.gmra.mxu3 %vm408_vm1, %v5622_v30  ;;  %v7852_v7 = vld [vmem:[#allocation14_spill] sm:$0xff] }
 0x185   : > { %4102 = vmatmul.msk.f32.gmra.mxu0 %vm408_vm1, %v5596_v28  ;;  %v1023_v34 = vadd.f32 %v955_v40, %v713_v52  ;;  %v7822_v40 = vld [vmem:[#allocation30_spill] sm:$0xff] }
 0x187   : > { %4136 = vmatmul.msk.f32.gmra.mxu1 %vm408_vm1, %v5630_v46  ;;  %v1115_v48 = vpop.f32.mrf.mxu3 }
 0x188   : > { %v1183_v55 = vadd.f32 %v1115_v48, %v1023_v34  ;;  %v7823_v48 = vmov 0.0  }
 0x189   : > { %4034 = vmatmul.msk.f32.gmra.mxu2 %vm408_vm1, %v5586_v18 }
 0x18a   : > { %v1275_v0 = vpop.f32.mrf.mxu0  ;;  %v5644_v36 = vadd.f32 %v1269_v22, %v1183_v55  ;;  %v4557_v55 = vld [vmem:[%s4711_s16 + $0x10] sm:$0xff] }
 0x18c   : > { %7820 = vst [vmem:[#allocation15_spill] sm:$0xff] %v5644_v36  ;;  %v958_v52 = vpop.f32.mrf.mxu2  ;;  %4068 = vmatmul.msk.f32.gmra.mxu3 %vm408_vm1, %v5642_v58  ;;  %v7828_v36 = vld [vmem:[#allocation7_spill] sm:$0xff] }
 0x18d   : > { %4205 = vmatmul.msk.f32.vlgmr.msra.gmra.mxu0 %vm408_vm1, %v7822_v40  ;;  %v1024_v34 = vadd.f32 %v958_v52, %v716_v42  ;;  %v7827_v40 = vld [vmem:[#allocation29_spill] sm:$0xff] }
 0x18f   : > { %2239 = vmatmul.f32.vlgmr.msra.gmra.mxu1 %v7823_v48  ;;  %v1118_v60 = vpop.f32.mrf.mxu3 }
 0x190   : > { %v1184_v23 = vadd.f32 %v1118_v60, %v1024_v34 }
 0x191   : > { %4139 = vmatmul.msk.f32.vlgmr.msra.gmra.mxu2 %vm408_vm1, %v7824_v31  ;;  %v4558_v31 = vld [vmem:[%s4711_s16 + $0x18] sm:$0xff] }
 0x192   : > { %v1278_v47 = vpop.f32.mrf.mxu0  ;;  %v5655_v22 = vadd.f32 %v1272_v53, %v1184_v23 }
 0x194   : > { %7825 = vst [vmem:[#allocation18_spill] sm:$0xff] %v5655_v22  ;;  %v961_v17 = vpop.f32.mrf.mxu2  ;;  %4173 = vmatmul.msk.f32.vlgmr.msra.gmra.mxu3 %vm408_vm1, %v4557_v55  ;;  %v7830_v55 = vld [vmem:[#allocation34_spill] sm:$0xff] }
 0x195   : > { %4206 = vmatmul.msk.f32.gmra.mxu0 %vm408_vm1, %v7826_v16  ;;  %v1025_v42 = vadd.f32 %v961_v17, %v7827_v40  ;;  %v7831_v16 = vld [vmem:[#allocation31_spill] sm:$0xff] }
 0x197   : > { %2242 = vmatmul.f32.gmra.mxu1 %v7823_v48  ;;  %v1121_v52 = vpop.f32.mrf.mxu3 }
 0x198   : > { %v1185_v60 = vadd.f32 %v1121_v52, %v1025_v42  ;;  %v7832_v42 = vld [vmem:[#allocation8_spill] sm:$0xff] }
 0x199   : > { %4140 = vmatmul.msk.f32.gmra.mxu2 %vm408_vm1, %v7828_v36  ;;  %v4559_v36 = vld [vmem:[%s4711_s16 + $0x20] sm:$0xff] }
 0x19a   : > { %v1281_v34 = vpop.f32.mrf.mxu0  ;;  %v5665_v23 = vadd.f32 %v1275_v0, %v1185_v60  ;;  %v7834_v60 = vld [vmem:[#allocation36_spill] sm:$0xff] }
 0x19c   : > { %7829 = vst [vmem:[#allocation22_spill] sm:$0xff] %v5665_v23  ;;  %v964_v53 = vpop.f32.mrf.mxu2  ;;  %4174 = vmatmul.msk.f32.gmra.mxu3 %vm408_vm1, %v4558_v31  ;;  %v7835_v31 = vld [vmem:[#allocation33_spill] sm:$0xff] }
 0x19d   : > { %4207 = vmatmul.msk.f32.gmra.mxu0 %vm408_vm1, %v7830_v55  ;;  %v1026_v17 = vadd.f32 %v964_v53, %v7831_v16 }
 0x19f   : > { %v1124_v40 = vpop.f32.mrf.mxu3 }
 0x1a0   : > { %v1186_v22 = vadd.f32 %v1124_v40, %v1026_v17  ;;  %v7836_v17 = vld [vmem:[#allocation9_spill] sm:$0xff] }
 0x1a1   : > { %4141 = vmatmul.msk.f32.gmra.mxu2 %vm408_vm1, %v7832_v42  ;;  %v7838_v42 = vld [vmem:[#allocation38_spill] sm:$0xff] }
 0x1a2   : > { %v1284_v48 = vpop.f32.mrf.mxu0  ;;  %v5674_v52 = vadd.f32 %v1278_v47, %v1186_v22  ;;  %v4560_v22 = vld [vmem:[%s4711_s16 + $0x28] sm:$0xff] }
 0x1a4   : > { %7833 = vst [vmem:[#allocation25_spill] sm:$0xff] %v5674_v52  ;;  %v967_v0 = vpop.f32.mrf.mxu2  ;;  %4175 = vmatmul.msk.f32.gmra.mxu3 %vm408_vm1, %v4559_v36  ;;  %v7839_v36 = vld [vmem:[#allocation35_spill] sm:$0xff] }
 0x1a5   : > { %4208 = vmatmul.msk.f32.gmra.mxu0 %vm408_vm1, %v7834_v60  ;;  %v1027_v55 = vadd.f32 %v967_v0, %v7835_v31  ;;  %v5690_v31 = vpop.f32.mrf.mxu1 }
 0x1a7   : > { %v1127_v23 = vpop.f32.mrf.mxu3 }
 0x1a8   : > { %v1187_v53 = vadd.f32 %v1127_v23, %v1027_v55  ;;  %v7840_v55 = vld [vmem:[#allocation10_spill] sm:$0xff] }
 0x1a9   : > { %4142 = vmatmul.msk.f32.gmra.mxu2 %vm408_vm1, %v7836_v17  ;;  %v4561_v17 = vld [vmem:[%s4711_s16 + $0x30] sm:$0xff] }
 0x1aa   : > { %v1287_v16 = vpop.f32.mrf.mxu0  ;;  %v5683_v40 = vadd.f32 %v1281_v34, %v1187_v53 }
 0x1ac   : > { %7837 = vst [vmem:[#allocation21_spill] sm:$0xff] %v5683_v40  ;;  %v970_v47 = vpop.f32.mrf.mxu2  ;;  %4176 = vmatmul.msk.f32.gmra.mxu3 %vm408_vm1, %v4560_v22  ;;  %v7842_v22 = vld [vmem:[#allocation40_spill] sm:$0xff]  ;;  %v7844_v40 = vld [vmem:[#allocation11_spill] sm:$0xff] }
 0x1ad   : > { %4209 = vmatmul.msk.f32.gmra.mxu0 %vm408_vm1, %v7838_v42  ;;  %v1028_v60 = vadd.f32 %v970_v47, %v7839_v36  ;;  %v7843_v42 = vld [vmem:[#allocation37_spill] sm:$0xff] }
 0x1af   : > { %v1130_v52 = vpop.f32.mrf.mxu3 }
 0x1b0   : > { %v1188_v0 = vadd.f32 %v1130_v52, %v1028_v60 }
 0x1b1   : > { %4143 = vmatmul.msk.f32.gmra.mxu2 %vm408_vm1, %v7840_v55  ;;  %v4562_v55 = vld [vmem:[%s4711_s16 + $0x38] sm:$0xff] }
 0x1b2   : > { %v1290_v23 = vpop.f32.mrf.mxu0  ;;  %v5694_v34 = vadd.f32 %v1284_v48, %v1188_v0  ;;  %v5705_v48 = vpop.f32.mrf.mxu1 }
 0x1b4   : > { %7841 = vst [vmem:[#allocation24_spill] sm:$0xff] %v5694_v34  ;;  %v973_v53 = vpop.f32.mrf.mxu2  ;;  %4177 = vmatmul.msk.f32.gmra.mxu3 %vm408_vm1, %v4561_v17  ;;  %v7846_v17 = vld [vmem:[#allocation42_spill] sm:$0xff]  ;;  %v7848_v34 = vld [vmem:[#allocation12_spill] sm:$0xff] }
 0x1b5   : > { %4210 = vmatmul.msk.f32.gmra.mxu0 %vm408_vm1, %v7842_v22  ;;  %v1029_v47 = vadd.f32 %v973_v53, %v7843_v42  ;;  %v7847_v22 = vld [vmem:[#allocation39_spill] sm:$0xff] }
 0x1b7   : > { %v1133_v36 = vpop.f32.mrf.mxu3 }
 0x1b8   : > { %v1189_v52 = vadd.f32 %v1133_v36, %v1029_v47 }
 0x1b9   : > { %4144 = vmatmul.msk.f32.gmra.mxu2 %vm408_vm1, %v7844_v40 }
 0x1ba   : > { %v1293_v60 = vpop.f32.mrf.mxu0  ;;  %v5703_v28 = vadd.f32 %v1287_v16, %v1189_v52  ;;  %v4563_v52 = vld [vmem:[%s4711_s16 + $0x40] sm:$0xff] }
 0x1bc   : > { %7845 = vst [vmem:[#allocation27_spill] sm:$0xff] %v5703_v28  ;;  %v976_v0 = vpop.f32.mrf.mxu2  ;;  %4178 = vmatmul.msk.f32.gmra.mxu3 %vm408_vm1, %v4562_v55  ;;  %v7850_v28 = vld [vmem:[#allocation44_spill] sm:$0xff]  ;;  %v5720_v55 = vpop.f32.mrf.mxu1 }
 0x1bd   : > { %4211 = vmatmul.msk.f32.gmra.mxu0 %vm408_vm1, %v7846_v17  ;;  %v1030_v53 = vadd.f32 %v976_v0, %v7847_v22  ;;  %v7851_v17 = vld [vmem:[#allocation41_spill] sm:$0xff] }
 0x1bf   : > { %v1136_v42 = vpop.f32.mrf.mxu3 }
 0x1c0   : > { %v1190_v47 = vadd.f32 %v1136_v42, %v1030_v53 }
 0x1c1   : > { %4145 = vmatmul.msk.f32.gmra.mxu2 %vm408_vm1, %v7848_v34 }
 0x1c2   : > { %v1296_v36 = vpop.f32.mrf.mxu0  ;;  %v5714_v16 = vadd.f32 %v1290_v23, %v1190_v47  ;;  %v4564_v47 = vld [vmem:[%s4711_s16 + $0x48] sm:$0xff] }
 0x1c4   : > { %7849 = vst [vmem:[#allocation56_spill] sm:$0xff] %v5714_v16  ;;  %v979_v40 = vpop.f32.mrf.mxu2  ;;  %4179 = vmatmul.msk.f32.gmra.mxu3 %vm408_vm1, %v4563_v52  ;;  %v7854_v52 = vld [vmem:[#allocation46_spill] sm:$0xff]  ;;  %v5732_v58 = vpop.f32.mrf.mxu1 }
 0x1c5   : > { %4212 = vmatmul.msk.f32.gmra.mxu0 %vm408_vm1, %v7850_v28  ;;  %v1031_v0 = vadd.f32 %v979_v40, %v7851_v17  ;;  %v7855_v28 = vld [vmem:[#allocation43_spill] sm:$0xff]  ;;  %7856 = vst [vmem:[#allocation6_spill] sm:$0xff] %v5732_v58 }
 0x1c7   : > { %v1139_v22 = vpop.f32.mrf.mxu3 }
 0x1c8   : > { %v1191_v53 = vadd.f32 %v1139_v22, %v1031_v0  ;;  %v7857_v22 = vld [vmem:[#allocation17_spill] sm:$0xff] }
 0x1c9   : > { %4146 = vmatmul.msk.f32.gmra.mxu2 %vm408_vm1, %v7852_v7 }
 0x1ca   : > { %v1299_v42 = vpop.f32.mrf.mxu0  ;;  %v5725_v23 = vadd.f32 %v1293_v60, %v1191_v53  ;;  %v4565_v53 = vld [vmem:[%s4711_s16 + $0x50] sm:$0xff] }
 0x1cc   : > { %7853 = vst [vmem:[#allocation30_spill] sm:$0xff] %v5725_v23  ;;  %v982_v34 = vpop.f32.mrf.mxu2  ;;  %4180 = vmatmul.msk.f32.gmra.mxu3 %vm408_vm1, %v4564_v47  ;;  %v7859_v47 = vld [vmem:[#allocation48_spill] sm:$0xff]  ;;  %v5743_v58 = vpop.f32.mrf.mxu1 }
 0x1cd   : > { %4213 = vmatmul.msk.f32.gmra.mxu0 %vm408_vm1, %v7854_v52  ;;  %v1032_v16 = vadd.f32 %v982_v34, %v7855_v28  ;;  %v7860_v52 = vld [vmem:[#allocation45_spill] sm:$0xff]  ;;  %7861 = vst [vmem:[#allocation29_spill] sm:$0xff] %v5743_v58 }
 0x1cf   : > { %v1142_v40 = vpop.f32.mrf.mxu3 }
 0x1d0   : > { %v1192_v17 = vadd.f32 %v1142_v40, %v1032_v16  ;;  %v7862_v40 = vld [vmem:[#allocation20_spill] sm:$0xff] }
 0x1d1   : > { %4147 = vmatmul.msk.f32.gmra.mxu2 %vm408_vm1, %v7857_v22  ;;  %v4566_v22 = vld [vmem:[%s4711_s16 + $0x58] sm:$0xff] }
 0x1d2   : > { %v1302_v0 = vpop.f32.mrf.mxu0  ;;  %v5736_v7 = vadd.f32 %v1296_v36, %v1192_v17 }
 0x1d4   : > { %7858 = vst [vmem:[#allocation32_spill] sm:$0xff] %v5736_v7  ;;  %v985_v60 = vpop.f32.mrf.mxu2  ;;  %4181 = vmatmul.msk.f32.gmra.mxu3 %vm408_vm1, %v4565_v53  ;;  %v7864_v53 = vld [vmem:[#allocation50_spill] sm:$0xff]  ;;  %v7866_v7 = vld [vmem:[#allocation23_spill] sm:$0xff] }
 0x1d5   : > { %4214 = vmatmul.msk.f32.gmra.mxu0 %vm408_vm1, %v7859_v47  ;;  %v1033_v34 = vadd.f32 %v985_v60, %v7860_v52  ;;  %v7865_v47 = vld [vmem:[#allocation47_spill] sm:$0xff] }
 0x1d7   : > { %v1145_v28 = vpop.f32.mrf.mxu3 }
 0x1d8   : > { %v1193_v23 = vadd.f32 %v1145_v28, %v1033_v34 }
 0x1d9   : > { %4148 = vmatmul.msk.f32.gmra.mxu2 %vm408_vm1, %v7862_v40  ;;  %v5758_v40 = vpop.f32.mrf.mxu1 }
 0x1da   : > { %v1305_v16 = vpop.f32.mrf.mxu0  ;;  %v5747_v36 = vadd.f32 %v1299_v42, %v1193_v23  ;;  %v4567_v23 = vld [vmem:[%s4711_s16 + $0x60] sm:$0xff] }
 0x1dc   : > { %7863 = vst [vmem:[#allocation7_spill] sm:$0xff] %v5747_v36  ;;  %v988_v17 = vpop.f32.mrf.mxu2  ;;  %4182 = vmatmul.msk.f32.gmra.mxu3 %vm408_vm1, %v4566_v22  ;;  %v7868_v22 = vld [vmem:[#allocation52_spill] sm:$0xff] }
 0x1dd   : > { %4215 = vmatmul.msk.f32.gmra.mxu0 %vm408_vm1, %v7864_v53  ;;  %v1034_v60 = vadd.f32 %v988_v17, %v7865_v47  ;;  %v7869_v53 = vld [vmem:[#allocation49_spill] sm:$0xff]  ;;  %v2157_v47 = vld [vmem:[%s7601_s4] sm:$0xf] }
 0x1de   : > { %4269 = vmatpush.msk.msrb.mxu2 %vm471_vm0, %v2157_v47  ;;  %v7874_v47 = vld [vmem:[#allocation51_spill] sm:$0xff] }
 0x1df   : > { %v1148_v52 = vpop.f32.mrf.mxu3 }
 0x1e0   : > { %v1194_v34 = vadd.f32 %v1148_v52, %v1034_v60  ;;  %v4302_v60 = vld [vmem:[%s7601_s4 + $0x8] sm:$0xf] }
 0x1e1   : > { %4149 = vmatmul.msk.f32.gmra.mxu2 %vm408_vm1, %v7866_v7  ;;  %4303 = vmatpush.msk.msrb.mxu3 %vm471_vm0, %v4302_v60  ;;  %v4336_v60 = vld [vmem:[%s7601_s4 + $0xc] sm:$0xf] }
 0x1e2   : > { %v1308_v28 = vpop.f32.mrf.mxu0  ;;  %v5756_v58 = vadd.f32 %v1302_v0, %v1194_v34  ;;  %v7870_v34 = vld [vmem:[#allocation26_spill] sm:$0xff]  ;;  %4337 = vmatpush.msk.msrb.mxu0 %vm471_vm0, %v4336_v60 }
 0x1e4   : > { %7867 = vst [vmem:[#allocation34_spill] sm:$0xff] %v5756_v58  ;;  %v991_v42 = vpop.f32.mrf.mxu2  ;;  %4183 = vmatmul.msk.f32.gmra.mxu3 %vm408_vm1, %v4567_v23 }
 0x1e5   : > { %4216 = vmatmul.msk.f32.gmra.mxu0 %vm408_vm1, %v7868_v22  ;;  %v1035_v17 = vadd.f32 %v991_v42, %v7869_v53  ;;  %v4568_v22 = vld [vmem:[%s4711_s16 + $0x68] sm:$0xff]  ;;  %v7872_v53 = vld [vmem:[#allocation54_spill] sm:$0xff] }
 0x1e7   : > { %v1151_v0 = vpop.f32.mrf.mxu3 }
 0x1e8   : > { %v1195_v7 = vadd.f32 %v1151_v0, %v1035_v17  ;;  %v5781_v17 = vpop.f32.mrf.mxu1 }
 0x1e9   : > { %4150 = vmatmul.msk.f32.gmra.mxu2 %vm408_vm1, %v7870_v34  ;;  %7873 = vst [vmem:[#allocation8_spill] sm:$0xff] %v5781_v17  ;;  %v4370_v34 = vld [vmem:[%s7601_s4 + $0x10] sm:$0xf] }
 0x1ea   : > { %v1311_v52 = vpop.f32.mrf.mxu0  ;;  %v5775_v23 = vadd.f32 %v1305_v16, %v1195_v7  ;;  %v7875_v7 = vld [vmem:[#allocation3_spill] sm:$0xff]  ;;  %4371 = vmatpush.msk.msrb.mxu1 %vm471_vm0, %v4370_v34  ;;  %v7878_v17 = vld [vmem:[#allocation4_spill] sm:$0xff]  ;;  %v4570_v34 = vld [vmem:[%s4711_s16 + $0x78] sm:$0xff] }
 0x1ec   : > { %7871 = vst [vmem:[#allocation31_spill] sm:$0xff] %v5775_v23  ;;  %v994_v42 = vpop.f32.mrf.mxu2  ;;  %4184 = vmatmul.msk.f32.gmra.mxu3 %vm408_vm1, %v4568_v22 }
 0x1ed   : > { %4217 = vmatmul.msk.f32.gmra.mxu0 %vm408_vm1, %v7872_v53  ;;  %v1036_v0 = vadd.f32 %v994_v42, %v7874_v47  ;;  %v4569_v42 = vld [vmem:[%s4711_s16 + $0x70] sm:$0xff]  ;;  %v7877_v53 = vld [vmem:[#allocation53_spill] sm:$0xff] }
 0x1ef   : > { %v1154_v58 = vpop.f32.mrf.mxu3 }
 0x1f0   : > { %v1196_v36 = vadd.f32 %v1154_v58, %v1036_v0  ;;  %v5801_v0 = vpop.f32.mrf.mxu1 }
 0x1f1   : > { %4151 = vmatmul.msk.f32.gmra.mxu2 %vm408_vm1, %v7875_v7 }
 0x1f2   : > { %v1314_v16 = vpop.f32.mrf.mxu0  ;;  %v5793_v22 = vadd.f32 %v1308_v28, %v1196_v36 }
 0x1f4   : > { %7876 = vst [vmem:[#allocation36_spill] sm:$0xff] %v5793_v22  ;;  %v997_v58 = vpop.f32.mrf.mxu2  ;;  %4185 = vmatmul.msk.f32.gmra.mxu3 %vm408_vm1, %v4569_v42 }
 0x1f5   : > { %4218 = vmatmul.msk.f32.gmra.mxu0 %vm408_vm1, %v5357_v41  ;;  %v1037_v47 = vadd.f32 %v997_v58, %v7877_v53  ;;  %v7879_v41 = vld [vmem:[#allocation55_spill] sm:$0xff] }
 0x1f7   : > { %v1157_v60 = vpop.f32.mrf.mxu3 }
 0x1f8   : > { %v1197_v7 = vadd.f32 %v1157_v60, %v1037_v47  ;;  %v5812_v22 = vpop.f32.mrf.mxu1  ;;  %v7880_v60 = vld [vmem:[#allocation5_spill] sm:$0xff] }
 0x1f9   : > { %4152 = vmatmul.msk.f32.gmra.mxu2 %vm408_vm1, %v7878_v17 }
 0x1fa   : > { %v1317_v23 = vpop.f32.mrf.mxu0  ;;  %v5805_v36 = vadd.f32 %v1311_v52, %v1197_v7  ;;  %v4571_v7 = vld [vmem:[%s4711_s16 + $0x80] sm:$0xff] }
 0x1fc   : > { %v1000_v28 = vpop.f32.mrf.mxu2  ;;  %4186 = vmatmul.msk.f32.gmra.mxu3 %vm408_vm1, %v4570_v34 }
 0x1fd   : > { %4219 = vmatmul.msk.f32.gmra.mxu0 %vm408_vm1, %v5372_v10  ;;  %v1038_v58 = vadd.f32 %v1000_v28, %v7879_v41  ;;  %v7881_v10 = vld [vmem:[#allocation57_spill] sm:$0xff] }
 0x1ff   : > { %v1160_v42 = vpop.f32.mrf.mxu3 }
 0x200   : > { %v1198_v53 = vadd.f32 %v1160_v42, %v1038_v58 }
 0x201   : > { %4153 = vmatmul.msk.f32.gmra.mxu2 %vm408_vm1, %v7880_v60  ;;  %v4572_v60 = vld [vmem:[%s4711_s16 + $0x88] sm:$0xff] }
 0x202   : > { %v1320_v47 = vpop.f32.mrf.mxu0  ;;  %v5816_v52 = vadd.f32 %v1314_v16, %v1198_v53  ;;  %v5827_v16 = vpop.f32.mrf.mxu1 }
 0x204   : > { %v1003_v17 = vpop.f32.mrf.mxu2  ;;  %4187 = vmatmul.msk.f32.gmra.mxu3 %vm408_vm1, %v4571_v7 }
 0x205   : > { %4220 = vmatmul.msk.f32.gmra.mxu0 %vm408_vm1, %v5388_v14  ;;  %v1039_v28 = vadd.f32 %v1003_v17, %v7881_v10  ;;  %v7882_v14 = vld [vmem:[#allocation58_spill] sm:$0xff] }
 0x207   : > { %v1163_v34 = vpop.f32.mrf.mxu3 }
 0x208   : > { %v1199_v41 = vadd.f32 %v1163_v34, %v1039_v28  ;;  %v4573_v34 = vld [vmem:[%s4711_s16 + $0x90] sm:$0xff] }
 0x209   : > { %4154 = vmatmul.msk.f32.gmra.mxu2 %vm408_vm1, %v4786_v26 }
 0x20a   : > { %v1835_v58 = vpop.f32.mrf.mxu0  ;;  %v5825_v42 = vadd.f32 %v1317_v23, %v1199_v41  ;;  %v5842_v41 = vpop.f32.mrf.mxu1 }
 0x20c   : > { %v1006_v53 = vpop.f32.mrf.mxu2  ;;  %4188 = vmatmul.msk.f32.gmra.mxu3 %vm408_vm1, %v4572_v60 }
 0x20d   : > { %4221 = vmatmul.msk.f32.gmra.mxu0 %vm408_vm1, %v5403_v21  ;;  %v1040_v17 = vadd.f32 %v1006_v53, %v7882_v14 }
 0x20f   : > { %v1166_v7 = vpop.f32.mrf.mxu3 }
 0x210   : > { %v1200_v10 = vadd.f32 %v1166_v7, %v1040_v17  ;;  %v4574_v7 = vld [vmem:[%s4711_s16 + $0x98] sm:$0xff] }
 0x211   : > { %4155 = vmatmul.msk.f32.gmra.mxu2 %vm408_vm1, %v4810_v32  ;;  %v5848_v32 = vld [vmem:[%s7599_s2] ss:$0 sm:$0xff] }
 0x212   : > { %v1838_v26 = vpop.f32.mrf.mxu0  ;;  %v5836_v28 = vadd.f32 %v1320_v47, %v1200_v10 }
 0x214   : > { %7883 = vst [vmem:[#allocation33_spill] sm:$0xff] %v5836_v28  ;;  %v1535_v23 = vpop.f32.mrf.mxu2  ;;  %4189 = vmatmul.msk.f32.gmra.mxu3 %vm408_vm1, %v4573_v34 }
 0x215   : > { %4222 = vmatmul.msk.f32.gmra.mxu0 %vm408_vm1, %v5419_v9  ;;  %v1631_v21 = vadd.f32 %v1535_v23, %v5405_v61  ;;  %v5855_v9 = vld [vmem:[%s7600_s3] ss:$0 sm:$0xff] }
 0x217   : > { %v1685_v53 = vpop.f32.mrf.mxu3 }
 0x218   : > { %v1781_v60 = vadd.f32 %v1685_v53, %v1631_v21 }
 0x219   : > { %4156 = vmatmul.msk.f32.gmra.mxu2 %vm408_vm1, %v4832_v38 }
 0x21a   : > { %v1841_v47 = vpop.f32.mrf.mxu0  ;;  %v1931_v14 = vadd.f32 %v1835_v58, %v1781_v60  ;;  %v5864_v58 = vpop.f32.mrf.mxu1 }
 0x21c   : > { %v1967_v17 = vmul.f32 %v5848_v32, %v1931_v14  ;;  %v1538_v61 = vpop.f32.mrf.mxu2  ;;  %4190 = vmatmul.msk.f32.gmra.mxu3 %vm408_vm1, %v4574_v7 }
 0x21d   : > { %4223 = vmatmul.msk.f32.gmra.mxu0 %vm408_vm1, %v5436_v33  ;;  %v1632_v10 = vadd.f32 %v1538_v61, %v5421_v3  ;;  %v4575_v3 = vld [vmem:[%s4711_s16 + $0xa0] sm:$0xff] }
 0x21e   : > { %v2003_v38 = vadd.f32 %v5855_v9, %v1967_v17 }
 0x21f   : > { %v1688_v23 = vpop.f32.mrf.mxu3 }
 0x220   : > { %v1782_v34 = vadd.f32 %v1688_v23, %v1632_v10  ;;  %v5866_v21 = vmax.f32 %v2003_v38, 0.0 }
 0x221   : > { %4157 = vmatmul.msk.f32.gmra.mxu2 %vm408_vm1, %v4856_v44 }
 0x222   : > { %v1844_v53 = vpop.f32.mrf.mxu0  ;;  %v1932_v60 = vadd.f32 %v1838_v26, %v1782_v34  ;;  %4239 = vmatmul.msk.f32.gmra.mxu1 %vm408_vm1, %v5866_v21  ;;  %v5881_v10 = vpop.f32.mrf.mxu1 }
 0x224   : > { %v1968_v33 = vmul.f32 %v5848_v32, %v1932_v60  ;;  %v1541_v14 = vpop.f32.mrf.mxu2  ;;  %4191 = vmatmul.msk.f32.gmra.mxu3 %vm408_vm1, %v4575_v3 }
 0x225   : > { %4224 = vmatmul.msk.f32.gmra.mxu0 %vm408_vm1, %v5452_v27  ;;  %v1633_v17 = vadd.f32 %v1541_v14, %v5438_v2  ;;  %v4576_v2 = vld [vmem:[%s4711_s16 + $0xa8] sm:$0xff] }
 0x226   : > { %v2004_v61 = vadd.f32 %v5855_v9, %v1968_v33 }
 0x227   : > { %v1691_v44 = vpop.f32.mrf.mxu3 }
 0x228   : > { %v1783_v7 = vadd.f32 %v1691_v44, %v1633_v17  ;;  %v5879_v26 = vmax.f32 %v2004_v61, 0.0  ;;  %v4577_v44 = vld [vmem:[%s4711_s16 + $0xb0] sm:$0xff] }
 0x229   : > { %4158 = vmatmul.msk.f32.gmra.mxu2 %vm408_vm1, %v4878_v50 }
 0x22a   : > { %v1847_v38 = vpop.f32.mrf.mxu0  ;;  %v1933_v23 = vadd.f32 %v1841_v47, %v1783_v7  ;;  %4240 = vmatmul.msk.f32.gmra.mxu1 %vm408_vm1, %v5879_v26  ;;  %v5900_v61 = vpop.f32.mrf.mxu1 }
 0x22c   : > { %v1969_v27 = vmul.f32 %v5848_v32, %v1933_v23  ;;  %v1544_v34 = vpop.f32.mrf.mxu2  ;;  %4192 = vmatmul.msk.f32.gmra.mxu3 %vm408_vm1, %v4576_v2 }
 0x22d   : > { %4225 = vmatmul.msk.f32.gmra.mxu0 %vm408_vm1, %v5469_v45  ;;  %v1634_v60 = vadd.f32 %v1544_v34, %v5454_v39 }
 0x22e   : > { %v2005_v33 = vadd.f32 %v5855_v9, %v1969_v27 }
 0x22f   : > { %v1694_v50 = vpop.f32.mrf.mxu3 }
 0x230   : > { %v5894_v14 = vmax.f32 %v2005_v33, 0.0  ;;  %v1784_v47 = vadd.f32 %v1694_v50, %v1634_v60 }
 0x231   : > { %4159 = vmatmul.msk.f32.gmra.mxu2 %vm408_vm1, %v4902_v56 }
 0x232   : > { %v1850_v3 = vpop.f32.mrf.mxu0  ;;  %v1934_v17 = vadd.f32 %v1844_v53, %v1784_v47  ;;  %4241 = vmatmul.msk.f32.gmra.mxu1 %vm408_vm1, %v5894_v14 }
 0x234   : > { %v1970_v45 = vmul.f32 %v5848_v32, %v1934_v17  ;;  %v1547_v39 = vpop.f32.mrf.mxu2  ;;  %4193 = vmatmul.msk.f32.gmra.mxu3 %vm408_vm1, %v4577_v44 }
 0x235   : > { %4226 = vmatmul.msk.f32.gmra.mxu0 %vm408_vm1, %v5485_v59  ;;  %v1635_v7 = vadd.f32 %v1547_v39, %v5471_v11  ;;  %v4578_v59 = vld [vmem:[%s4711_s16 + $0xb8] sm:$0xff]  ;;  %v5920_v11 = vpop.f32.mrf.mxu1 }
 0x236   : > { %v2006_v56 = vadd.f32 %v5855_v9, %v1970_v45 }
 0x237   : > { %v1697_v53 = vpop.f32.mrf.mxu3 }
 0x238   : > { %v5909_v23 = vmax.f32 %v2006_v56, 0.0  ;;  %v1785_v27 = vadd.f32 %v1697_v53, %v1635_v7  ;;  %v4579_v7 = vld [vmem:[%s4711_s16 + $0xc0] sm:$0xff] }
 0x239   : > { %4160 = vmatmul.msk.f32.gmra.mxu2 %vm408_vm1, %v4924_v62 }
 0x23a   : > { %v1853_v34 = vpop.f32.mrf.mxu0  ;;  %v1935_v2 = vadd.f32 %v1847_v38, %v1785_v27  ;;  %4242 = vmatmul.msk.f32.gmra.mxu1 %vm408_vm1, %v5909_v23 }
 0x23c   : > { %v1971_v60 = vmul.f32 %v5848_v32, %v1935_v2  ;;  %v1550_v33 = vpop.f32.mrf.mxu2  ;;  %4194 = vmatmul.msk.f32.gmra.mxu3 %vm408_vm1, %v4578_v59 }
 0x23d   : > { %4227 = vmatmul.msk.f32.gmra.mxu0 %vm408_vm1, %v5502_v57  ;;  %v1636_v50 = vadd.f32 %v1550_v33, %v5487_v51 }
 0x23e   : > { %v2007_v62 = vadd.f32 %v5855_v9, %v1971_v60 }
 0x23f   : > { %v1700_v38 = vpop.f32.mrf.mxu3 }
 0x240   : > { %v5924_v47 = vmax.f32 %v2007_v62, 0.0  ;;  %v1786_v17 = vadd.f32 %v1700_v38, %v1636_v50 }
 0x241   : > { %4161 = vmatmul.msk.f32.gmra.mxu2 %vm408_vm1, %v7806_v29  ;;  %v5937_v29 = vpop.f32.mrf.mxu1 }
 0x242   : > { %v1856_v45 = vpop.f32.mrf.mxu0  ;;  %v1936_v39 = vadd.f32 %v1850_v3, %v1786_v17  ;;  %4243 = vmatmul.msk.f32.gmra.mxu1 %vm408_vm1, %v5924_v47 }
 0x244   : > { %v1972_v57 = vmul.f32 %v5848_v32, %v1936_v39  ;;  %v1553_v44 = vpop.f32.mrf.mxu2  ;;  %4195 = vmatmul.msk.f32.gmra.mxu3 %vm408_vm1, %v4579_v7 }
 0x245   : > { %4228 = vmatmul.msk.f32.gmra.mxu0 %vm408_vm1, %v5518_v20  ;;  %v1637_v51 = vadd.f32 %v1553_v44, %v5504_v13  ;;  %v4580_v13 = vld [vmem:[%s4711_s16 + $0xc8] sm:$0xff] }
 0x246   : > { %v2008_v56 = vadd.f32 %v5855_v9, %v1972_v57 }
 0x247   : > { %v1703_v3 = vpop.f32.mrf.mxu3 }
 0x248   : > { %v5939_v53 = vmax.f32 %v2008_v56, 0.0  ;;  %v1787_v27 = vadd.f32 %v1703_v3, %v1637_v51 }
 0x249   : > { %4162 = vmatmul.msk.f32.gmra.mxu2 %vm408_vm1, %v7809_v15  ;;  %v5954_v38 = vpop.f32.mrf.mxu1 }
 0x24a   : > { %v1859_v2 = vpop.f32.mrf.mxu0  ;;  %v1937_v60 = vadd.f32 %v1853_v34, %v1787_v27  ;;  %4244 = vmatmul.msk.f32.gmra.mxu1 %vm408_vm1, %v5939_v53 }
 0x24c   : > { %v1973_v20 = vmul.f32 %v5848_v32, %v1937_v60  ;;  %v1556_v33 = vpop.f32.mrf.mxu2  ;;  %4196 = vmatmul.msk.f32.gmra.mxu3 %vm408_vm1, %v4580_v13 }
 0x24d   : > { %4229 = vmatmul.msk.f32.gmra.mxu0 %vm408_vm1, %v5535_v8  ;;  %v1638_v59 = vadd.f32 %v1556_v33, %v5520_v63  ;;  %v4581_v63 = vld [vmem:[%s4711_s16 + $0xd0] sm:$0xff] }
 0x24e   : > { %v2009_v50 = vadd.f32 %v5855_v9, %v1973_v20 }
 0x24f   : > { %v1706_v15 = vpop.f32.mrf.mxu3 }
 0x250   : > { %v5952_v62 = vmax.f32 %v2009_v50, 0.0  ;;  %v1788_v34 = vadd.f32 %v1706_v15, %v1638_v59  ;;  %v1491_v15 = vadd.f32 %v5690_v31, %v5565_v49 }
 0x251   : > { %4163 = vmatmul.msk.f32.gmra.mxu2 %vm408_vm1, %v7810_v37  ;;  %v5973_v27 = vpop.f32.mrf.mxu1 }
 0x252   : > { %v1862_v17 = vpop.f32.mrf.mxu0  ;;  %v1938_v39 = vadd.f32 %v1856_v45, %v1788_v34  ;;  %4245 = vmatmul.msk.f32.gmra.mxu1 %vm408_vm1, %v5952_v62  ;;  %v4583_v34 = vld [vmem:[%s4711_s16 + $0xe0] sm:$0xff] }
 0x254   : > { %v1974_v8 = vmul.f32 %v5848_v32, %v1938_v39  ;;  %v1559_v57 = vpop.f32.mrf.mxu2  ;;  %4197 = vmatmul.msk.f32.gmra.mxu3 %vm408_vm1, %v4581_v63 }
 0x255   : > { %4230 = vmatmul.msk.f32.gmra.mxu0 %vm408_vm1, %v5551_v35  ;;  %v1639_v44 = vadd.f32 %v1559_v57, %v5537_v4  ;;  %v4582_v4 = vld [vmem:[%s4711_s16 + $0xd8] sm:$0xff] }
 0x256   : > { %v2010_v7 = vadd.f32 %v5855_v9, %v1974_v8 }
 0x257   : > { %v1709_v37 = vpop.f32.mrf.mxu3 }
 0x258   : > { %v5967_v51 = vmax.f32 %v2010_v7, 0.0  ;;  %v1789_v45 = vadd.f32 %v1709_v37, %v1639_v44  ;;  %v4584_v37 = vld [vmem:[%s4711_s16 + $0xe8] sm:$0xff] }
 0x259   : > { %4164 = vmatmul.msk.f32.gmra.mxu2 %vm408_vm1, %v7813_v43  ;;  %v5995_v39 = vpop.f32.mrf.mxu1 }
 0x25a   : > { %v1865_v56 = vpop.f32.mrf.mxu0  ;;  %v1939_v3 = vadd.f32 %v1859_v2, %v1789_v45  ;;  %4246 = vmatmul.msk.f32.gmra.mxu1 %vm408_vm1, %v5967_v51 }
 0x25c   : > { %v1975_v35 = vmul.f32 %v5848_v32, %v1939_v3  ;;  %v1562_v60 = vpop.f32.mrf.mxu2  ;;  %4198 = vmatmul.msk.f32.gmra.mxu3 %vm408_vm1, %v4582_v4 }
 0x25d   : > { %4231 = vmatmul.msk.f32.gmra.mxu0 %vm408_vm1, %v5570_v25  ;;  %v1640_v20 = vadd.f32 %v1562_v60, %v5553_v5 }
 0x25e   : > { %v2011_v43 = vadd.f32 %v5855_v9, %v1975_v35 }
 0x25f   : > { %v1712_v2 = vpop.f32.mrf.mxu3 }
 0x260   : > { %v5982_v33 = vmax.f32 %v2011_v43, 0.0  ;;  %v1790_v13 = vadd.f32 %v1712_v2, %v1640_v20 }
 0x261   : > { %4165 = vmatmul.msk.f32.gmra.mxu2 %vm408_vm1, %v7814_v19  ;;  %v6012_v3 = vpop.f32.mrf.mxu1 }
 0x262   : > { %v1868_v59 = vpop.f32.mrf.mxu0  ;;  %v1940_v50 = vadd.f32 %v1862_v17, %v1790_v13  ;;  %4247 = vmatmul.msk.f32.gmra.mxu1 %vm408_vm1, %v5982_v33 }
 0x264   : > { %v1976_v25 = vmul.f32 %v5848_v32, %v1940_v50  ;;  %v1565_v5 = vpop.f32.mrf.mxu2  ;;  %4199 = vmatmul.msk.f32.gmra.mxu3 %vm408_vm1, %v4583_v34 }
 0x265   : > { %4232 = vmatmul.msk.f32.gmra.mxu0 %vm408_vm1, %v5586_v18  ;;  %v1641_v19 = vadd.f32 %v1565_v5, %v1491_v15  ;;  %v1492_v18 = vadd.f32 %v5705_v48, %v5580_v54  ;;  %v7885_v15 = vld [vmem:[#allocation19_spill] sm:$0xff] }
 0x266   : > { %v2012_v17 = vadd.f32 %v5855_v9, %v1976_v25  ;;  %v7887_v25 = vld [vmem:[#allocation6_spill] sm:$0xff] }
 0x267   : > { %v1715_v8 = vpop.f32.mrf.mxu3 }
 0x268   : > { %v5998_v57 = vmax.f32 %v2012_v17, 0.0  ;;  %v1791_v63 = vadd.f32 %v1715_v8, %v1641_v19  ;;  %v7888_v19 = vld [vmem:[#allocation13_spill] sm:$0xff]  ;;  %v7889_v17 = vld [vmem:[#allocation28_spill] sm:$0xff] }
 0x269   : > { %4166 = vmatmul.msk.f32.gmra.mxu2 %vm408_vm1, %v7816_v12  ;;  %v6030_v50 = vpop.f32.mrf.mxu1 }
 0x26a   : > { %v1871_v49 = vpop.f32.mrf.mxu0  ;;  %v1941_v31 = vadd.f32 %v1865_v56, %v1791_v63  ;;  %4248 = vmatmul.msk.f32.gmra.mxu1 %vm408_vm1, %v5998_v57  ;;  %7884 = vst [vmem:[#allocation9_spill] sm:$0xff] %v6030_v50 }
 0x26c   : > { %v1977_v44 = vmul.f32 %v5848_v32, %v1941_v31  ;;  %v1568_v7 = vpop.f32.mrf.mxu2  ;;  %4200 = vmatmul.msk.f32.gmra.mxu3 %vm408_vm1, %v4584_v37 }
 0x26d   : > { %4233 = vmatmul.msk.f32.gmra.mxu0 %vm408_vm1, %v5609_v1  ;;  %v1642_v45 = vadd.f32 %v1568_v7, %v1492_v18  ;;  %v1493_v1 = vadd.f32 %v5720_v55, %v5604_v6 }
 0x26e   : > { %v2013_v12 = vadd.f32 %v5855_v9, %v1977_v44  ;;  %v7890_v44 = vld [vmem:[#allocation2_spill] sm:$0xff] }
 0x26f   : > { %v1718_v56 = vpop.f32.mrf.mxu3 }
 0x270   : > { %v6014_v35 = vmax.f32 %v2013_v12, 0.0  ;;  %v1792_v60 = vadd.f32 %v1718_v56, %v1642_v45  ;;  %v7891_v45 = vld [vmem:[#allocation15_spill] sm:$0xff]  ;;  %v7892_v12 = vld [vmem:[#allocation29_spill] sm:$0xff] }
 0x271   : > { %4167 = vmatmul.msk.f32.gmra.mxu2 %vm408_vm1, %v5622_v30  ;;  %v1495_v56 = vadd.f32 %v7892_v12, %v7891_v45  ;;  %v7897_v12 = vld [vmem:[#allocation22_spill] sm:$0xff] }
 0x272   : > { %v1874_v54 = vpop.f32.mrf.mxu0  ;;  %v1942_v48 = vadd.f32 %v1868_v59, %v1792_v60  ;;  %4249 = vmatmul.msk.f32.gmra.mxu1 %vm408_vm1, %v6014_v35  ;;  %v6052_v60 = vpop.f32.mrf.mxu1 }
 0x273   : > { %7893 = vst [vmem:[#allocation38_spill] sm:$0xff] %v6052_v60 }
 0x274   : > { %v1978_v4 = vmul.f32 %v5848_v32, %v1942_v48  ;;  %v1571_v20 = vpop.f32.mrf.mxu2  ;;  %4201 = vmatmul.msk.f32.gmra.mxu3 %vm408_vm1, %v5593_v24  ;;  %v7886_v24 = vld [vmem:[#allocation16_spill] sm:$0xff] }
 0x275   : > { %4234 = vmatmul.msk.f32.gmra.mxu0 %vm408_vm1, %v5630_v46  ;;  %v1643_v43 = vadd.f32 %v1571_v20, %v1493_v1  ;;  %v1494_v46 = vadd.f32 %v7887_v25, %v7886_v24  ;;  %v7895_v24 = vld [vmem:[#allocation18_spill] sm:$0xff] }
 0x276   : > { %v2014_v30 = vadd.f32 %v5855_v9, %v1978_v4  ;;  %v7894_v4 = vmov 0.0   ;;  %v1496_v25 = vadd.f32 %v5758_v40, %v7895_v24  ;;  %v2101_v24 = vrot.slane %v5894_v14, 7 }
 0x277   : > { %v1721_v2 = vpop.f32.mrf.mxu3 }
 0x278   : > { %v6028_v13 = vmax.f32 %v2014_v30, 0.0  ;;  %v1793_v59 = vadd.f32 %v1721_v2, %v1643_v43  ;;  %v2097_v30 = vrot.slane %v5866_v21, 7 }
 0x279   : > { %4168 = vmatmul.msk.f32.gmra.mxu2 %vm408_vm1, %v7885_v15 }
 0x27a   : > { %v1877_v6 = vpop.f32.mrf.mxu0  ;;  %v1943_v55 = vadd.f32 %v1871_v49, %v1793_v59  ;;  %4250 = vmatmul.msk.f32.gmra.mxu1 %vm408_vm1, %v6028_v13 }
 0x27c   : > { %v1979_v5 = vmul.f32 %v5848_v32, %v1943_v55  ;;  %v1574_v34 = vpop.f32.mrf.mxu2  ;;  %4202 = vmatmul.msk.f32.gmra.mxu3 %vm408_vm1, %v7888_v19 }
 0x27d   : > { %4235 = vmatmul.msk.f32.gmra.mxu0 %vm408_vm1, %v7889_v17  ;;  %v1644_v8 = vadd.f32 %v1574_v34, %v1494_v46  ;;  %v2098_v46 = vsel %vm342_vm2, %v7890_v44, %v2097_v30 }
 0x27e   : > { %v2015_v63 = vadd.f32 %v5855_v9, %v1979_v5  ;;  %v6070_v5 = vpop.f32.mrf.mxu1 }
 0x27f   : > { %v1724_v31 = vpop.f32.mrf.mxu3 }
 0x280   : > { %v6044_v49 = vmax.f32 %v2015_v63, 0.0  ;;  %v1794_v18 = vadd.f32 %v1724_v31, %v1644_v8  ;;  %v2099_v31 = vrot.slane %v5879_v26, 7 }
 0x281   : > { %4169 = vmatmul.msk.f32.gmra.mxu2 %vm408_vm1, %v7890_v44 }
 0x282   : > { %v1880_v7 = vpop.f32.mrf.mxu0  ;;  %v1944_v37 = vadd.f32 %v1874_v54, %v1794_v18  ;;  %4251 = vmatmul.msk.f32.gmra.mxu1 %vm408_vm1, %v6044_v49 }
 0x284   : > { %v1980_v48 = vmul.f32 %v5848_v32, %v1944_v37  ;;  %v1577_v1 = vpop.f32.mrf.mxu2  ;;  %1774 = vmatmul.f32.gmra.mxu3 %v7894_v4 }
 0x285   : > { %4236 = vmatmul.msk.f32.gmra.mxu0 %vm408_vm1, %v7889_v17  ;;  %v1645_v20 = vadd.f32 %v1577_v1, %v1495_v56  ;;  %v7898_v56 = vld [vmem:[#allocation8_spill] sm:$0xff]  ;;  %v2100_v1 = vsel %vm342_vm2, %v2097_v30, %v2099_v31 }
 0x286   : > { %v2016_v43 = vadd.f32 %v5855_v9, %v1980_v48  ;;  %v1497_v48 = vadd.f32 %v7898_v56, %v7897_v12 }
 0x287   : > { %v1727_v54 = vpop.f32.mrf.mxu3 }
 0x288   : > { %v6060_v2 = vmax.f32 %v2016_v43, 0.0  ;;  %v1795_v59 = vadd.f32 %v1727_v54, %v1645_v20 }
 0x289   : > { %4170 = vmatmul.msk.f32.gmra.mxu2 %vm408_vm1, %v7890_v44 }
 0x28a   : > { %v1883_v15 = vpop.f32.mrf.mxu0  ;;  %v1945_v55 = vadd.f32 %v1877_v6, %v1795_v59  ;;  %4252 = vmatmul.msk.f32.gmra.mxu1 %vm408_vm1, %v6060_v2  ;;  %v6090_v59 = vpop.f32.mrf.mxu1 }
 0x28c   : > { %v1981_v34 = vmul.f32 %v5848_v32, %v1945_v55  ;;  %v1580_v19 = vpop.f32.mrf.mxu2  ;;  %1777 = vmatmul.f32.gmra.mxu3 %v7894_v4 }
 0x28d   : > { %4338 = vmatmul.msk.f32.vlgmr.msrb.gmra.mxu0 %vm408_vm1, %v2098_v46  ;;  %v1646_v8 = vadd.f32 %v1580_v19, %v1496_v25 }
 0x28e   : > { %v2017_v6 = vadd.f32 %v5855_v9, %v1981_v34 }
 0x28f   : > { %v1730_v63 = vpop.f32.mrf.mxu3 }
 0x290   : > { %v6077_v18 = vmax.f32 %v2017_v6, 0.0  ;;  %v1796_v40 = vadd.f32 %v1730_v63, %v1646_v8  ;;  %v7900_v8 = vld [vmem:[#allocation25_spill] sm:$0xff]  ;;  %v6104_v63 = vsel %vm342_vm2, %v7890_v44, %v2101_v24 }
 0x291   : > { %4270 = vmatmul.msk.f32.vlgmr.msrb.gmra.mxu2 %vm408_vm1, %v7890_v44  ;;  %v1498_v6 = vadd.f32 %v5801_v0, %v7900_v8  ;;  %7901 = vst [vmem:[#allocation40_spill] sm:$0xff] %v6104_v63  ;;  %v2513_v0 = vrot.slane %v5879_v26, 1 }
 0x292   : > { %7896 = vst [vmem:[#allocation35_spill] sm:$0xff] %v6077_v18  ;;  %v1886_v37 = vpop.f32.mrf.mxu0  ;;  %v1946_v45 = vadd.f32 %v1880_v7, %v1796_v40  ;;  %4253 = vmatmul.msk.f32.gmra.mxu1 %vm408_vm1, %v6077_v18 }
 0x294   : > { %v1982_v20 = vmul.f32 %v5848_v32, %v1946_v45  ;;  %v1583_v43 = vpop.f32.mrf.mxu2  ;;  %4304 = vmatmul.msk.f32.vlgmr.msrb.gmra.mxu3 %vm408_vm1, %v7889_v17 }
 0x295   : > { %4339 = vmatmul.msk.f32.gmra.mxu0 %vm408_vm1, %v2100_v1  ;;  %v1647_v54 = vadd.f32 %v1583_v43, %v1497_v48  ;;  %v2103_v48 = vrot.slane %v5909_v23, 7 }
 0x296   : > { %v2018_v7 = vadd.f32 %v5855_v9, %v1982_v20 }
 0x297   : > { %v1733_v55 = vpop.f32.mrf.mxu3 }
 0x298   : > { %v6094_v25 = vmax.f32 %v2018_v7, 0.0  ;;  %v1797_v34 = vadd.f32 %v1733_v55, %v1647_v54  ;;  %v2512_v7 = vrot.slane %v5866_v21, 1 }
 0x299   : > { %4271 = vmatmul.msk.f32.gmra.mxu2 %vm408_vm1, %v7890_v44 }
 0x29a   : > { %7899 = vst [vmem:[#allocation10_spill] sm:$0xff] %v6094_v25  ;;  %v1889_v30 = vpop.f32.mrf.mxu0  ;;  %v1947_v19 = vadd.f32 %v1883_v15, %v1797_v34  ;;  %4254 = vmatmul.msk.f32.gmra.mxu1 %vm408_vm1, %v6094_v25  ;;  %v7902_v34 = vld [vmem:[#allocation21_spill] sm:$0xff]  ;;  %v6125_v8 = vsel %vm766_vm3, %v2512_v7, %v2513_v0  ;;  %v7905_v7 = vld [vmem:[#allocation24_spill] sm:$0xff] }
 0x29b   : > { %7903 = vst [vmem:[#allocation37_spill] sm:$0xff] %v6125_v8 }
 0x29c   : > { %v1983_v31 = vmul.f32 %v5848_v32, %v1947_v19  ;;  %v1586_v40 = vpop.f32.mrf.mxu2  ;;  %4305 = vmatmul.msk.f32.gmra.mxu3 %vm408_vm1, %v7889_v17  ;;  %v1499_v19 = vadd.f32 %v5812_v22, %v7902_v34  ;;  %v6148_v34 = vsel %vm766_vm3, %v2513_v0, %v7889_v17  ;;  %v2517_v0 = vrot.slane %v5909_v23, 1 }
 0x29d   : > { %4340 = vmatmul.msk.f32.gmra.mxu0 %vm408_vm1, %v6104_v63  ;;  %v1648_v15 = vadd.f32 %v1586_v40, %v1498_v6  ;;  %v6128_v6 = vsel %vm342_vm2, %v2101_v24, %v2103_v48  ;;  %7906 = vst [vmem:[#allocation42_spill] sm:$0xff] %v6148_v34 }
 0x29e   : > { %v2019_v45 = vadd.f32 %v5855_v9, %v1983_v31  ;;  %7904 = vst [vmem:[#allocation11_spill] sm:$0xff] %v6128_v6 }
 0x29f   : > { %v1736_v12 = vpop.f32.mrf.mxu3  ;;  %v6112_v56 = vpop.f32.mrf.mxu1 }
 0x2a0   : > { %v6116_v20 = vmax.f32 %v2019_v45, 0.0  ;;  %v1798_v43 = vadd.f32 %v1736_v12, %v1648_v15  ;;  %v2105_v45 = vrot.slane %v5924_v47, 7 }
 0x2a1   : > { %4272 = vmatmul.msk.f32.gmra.mxu2 %vm408_vm1, %v2098_v46 }
 0x2a2   : > { %v1892_v54 = vpop.f32.mrf.mxu0  ;;  %v1948_v55 = vadd.f32 %v1886_v37, %v1798_v43  ;;  %4255 = vmatmul.msk.f32.gmra.mxu1 %vm408_vm1, %v6116_v20 }
 0x2a4   : > { %v1984_v31 = vmul.f32 %v5848_v32, %v1948_v55  ;;  %v1589_v40 = vpop.f32.mrf.mxu2  ;;  %4306 = vmatmul.msk.f32.gmra.mxu3 %vm408_vm1, %v6125_v8  ;;  %v1500_v55 = vadd.f32 %v5827_v16, %v7905_v7  ;;  %v2516_v7 = vrot.slane %v5894_v14, 1 }
 0x2a5   : > { %4341 = vmatmul.msk.f32.gmra.mxu0 %vm408_vm1, %v6128_v6  ;;  %v1649_v46 = vadd.f32 %v1589_v40, %v1499_v19  ;;  %v6152_v19 = vsel %vm342_vm2, %v7890_v44, %v2105_v45 }
 0x2a6   : > { %v2020_v37 = vadd.f32 %v5855_v9, %v1984_v31  ;;  %7907 = vst [vmem:[#allocation39_spill] sm:$0xff] %v6152_v19 }
 0x2a7   : > { %v1739_v15 = vpop.f32.mrf.mxu3  ;;  %v6136_v22 = vpop.f32.mrf.mxu1 }
 0x2a8   : > { %v6139_v12 = vmax.f32 %v2020_v37, 0.0  ;;  %v1799_v24 = vadd.f32 %v1739_v15, %v1649_v46  ;;  %v2107_v37 = vrot.slane %v5939_v53, 7 }
 0x2a9   : > { %4273 = vmatmul.msk.f32.gmra.mxu2 %vm408_vm1, %v2100_v1 }
 0x2aa   : > { %v1895_v48 = vpop.f32.mrf.mxu0  ;;  %v1949_v43 = vadd.f32 %v1889_v30, %v1799_v24  ;;  %4256 = vmatmul.msk.f32.gmra.mxu1 %vm408_vm1, %v6139_v12 }
 0x2ac   : > { %v1985_v31 = vmul.f32 %v5848_v32, %v1949_v43  ;;  %v1592_v40 = vpop.f32.mrf.mxu2  ;;  %4307 = vmatmul.msk.f32.gmra.mxu3 %vm408_vm1, %v6148_v34 }
 0x2ad   : > { %4342 = vmatmul.msk.f32.gmra.mxu0 %vm408_vm1, %v6152_v19  ;;  %v1650_v1 = vadd.f32 %v1592_v40, %v1500_v55  ;;  %v7908_v55 = vld [vmem:[#allocation27_spill] sm:$0xff]  ;;  %v6174_v40 = vsel %vm766_vm3, %v2516_v7, %v2517_v0  ;;  %v2109_v7 = vrot.slane %v5952_v62, 7 }
 0x2ae   : > { %v2021_v16 = vadd.f32 %v5855_v9, %v1985_v31  ;;  %v1501_v31 = vadd.f32 %v5842_v41, %v7908_v55  ;;  %7909 = vst [vmem:[#allocation12_spill] sm:$0xff] %v6174_v40 }
 0x2af   : > { %v1742_v30 = vpop.f32.mrf.mxu3  ;;  %v6160_v46 = vpop.f32.mrf.mxu1 }
 0x2b0   : > { %v6164_v15 = vmax.f32 %v2021_v16, 0.0  ;;  %v1800_v24 = vadd.f32 %v1742_v30, %v1650_v1  ;;  %v6177_v16 = vsel %vm342_vm2, %v2105_v45, %v2107_v37 }
 0x2b1   : > { %4274 = vmatmul.msk.f32.gmra.mxu2 %vm408_vm1, %v6104_v63  ;;  %7910 = vst [vmem:[#allocation44_spill] sm:$0xff] %v6177_v16 }
 0x2b2   : > { %v1898_v43 = vpop.f32.mrf.mxu0  ;;  %v1950_v4 = vadd.f32 %v1892_v54, %v1800_v24  ;;  %4257 = vmatmul.msk.f32.gmra.mxu1 %vm408_vm1, %v6164_v15 }
 0x2b4   : > { %v1986_v1 = vmul.f32 %v5848_v32, %v1950_v4  ;;  %v1595_v30 = vpop.f32.mrf.mxu2  ;;  %4308 = vmatmul.msk.f32.gmra.mxu3 %vm408_vm1, %v6174_v40  ;;  %v7911_v40 = vld [vmem:[#allocation56_spill] sm:$0xff] }
 0x2b5   : > { %4343 = vmatmul.msk.f32.gmra.mxu0 %vm408_vm1, %v6177_v16  ;;  %v1651_v54 = vadd.f32 %v1595_v30, %v1501_v31  ;;  %v1502_v31 = vadd.f32 %v5864_v58, %v7911_v40  ;;  %v6202_v30 = vsel %vm342_vm2, %v7890_v44, %v2109_v7 }
 0x2b6   : > { %v2022_v24 = vadd.f32 %v5855_v9, %v1986_v1  ;;  %v6198_v1 = vsel %vm766_vm3, %v2517_v0, %v7889_v17  ;;  %7913 = vst [vmem:[#allocation14_spill] sm:$0xff] %v6202_v30  ;;  %v2521_v0 = vrot.slane %v5939_v53, 1 }
 0x2b7   : > { %v1745_v34 = vpop.f32.mrf.mxu3  ;;  %v6185_v41 = vpop.f32.mrf.mxu1  ;;  %7912 = vst [vmem:[#allocation41_spill] sm:$0xff] %v6198_v1 }
 0x2b8   : > { %v6188_v55 = vmax.f32 %v2022_v24, 0.0  ;;  %v1801_v45 = vadd.f32 %v1745_v34, %v1651_v54 }
 0x2b9   : > { %4275 = vmatmul.msk.f32.gmra.mxu2 %vm408_vm1, %v6128_v6 }
 0x2ba   : > { %v1901_v37 = vpop.f32.mrf.mxu0  ;;  %v1951_v4 = vadd.f32 %v1895_v48, %v1801_v45  ;;  %4258 = vmatmul.msk.f32.gmra.mxu1 %vm408_vm1, %v6188_v55  ;;  %v2111_v45 = vrot.slane %v5967_v51, 7 }
 0x2bc   : > { %v1987_v34 = vmul.f32 %v5848_v32, %v1951_v4  ;;  %v1598_v54 = vpop.f32.mrf.mxu2  ;;  %4309 = vmatmul.msk.f32.gmra.mxu3 %vm408_vm1, %v6198_v1  ;;  %v2520_v1 = vrot.slane %v5924_v47, 1 }
 0x2bd   : > { %4344 = vmatmul.msk.f32.gmra.mxu0 %vm408_vm1, %v6202_v30  ;;  %v1652_v48 = vadd.f32 %v1598_v54, %v1502_v31  ;;  %v7914_v31 = vld [vmem:[#allocation30_spill] sm:$0xff] }
 0x2be   : > { %v2023_v58 = vadd.f32 %v5855_v9, %v1987_v34  ;;  %v1503_v34 = vadd.f32 %v5881_v10, %v7914_v31  ;;  %v6224_v54 = vsel %vm766_vm3, %v2520_v1, %v2521_v0  ;;  %v2113_v1 = vrot.slane %v5982_v33, 7 }
 0x2bf   : > { %v1748_v40 = vpop.f32.mrf.mxu3  ;;  %v6210_v24 = vpop.f32.mrf.mxu1  ;;  %7915 = vst [vmem:[#allocation46_spill] sm:$0xff] %v6224_v54 }
 0x2c0   : > { %v6214_v6 = vmax.f32 %v2023_v58, 0.0  ;;  %v1802_v4 = vadd.f32 %v1748_v40, %v1652_v48  ;;  %v6227_v58 = vsel %vm342_vm2, %v2109_v7, %v2111_v45 }
 0x2c1   : > { %4276 = vmatmul.msk.f32.gmra.mxu2 %vm408_vm1, %v6152_v19  ;;  %7916 = vst [vmem:[#allocation43_spill] sm:$0xff] %v6227_v58 }
 0x2c2   : > { %v1904_v63 = vpop.f32.mrf.mxu0  ;;  %v1952_v8 = vadd.f32 %v1898_v43, %v1802_v4  ;;  %4259 = vmatmul.msk.f32.gmra.mxu1 %vm408_vm1, %v6214_v6 }
 0x2c4   : > { %v1988_v48 = vmul.f32 %v5848_v32, %v1952_v8  ;;  %v1601_v40 = vpop.f32.mrf.mxu2  ;;  %4310 = vmatmul.msk.f32.gmra.mxu3 %vm408_vm1, %v6224_v54  ;;  %v7917_v54 = vld [vmem:[#allocation32_spill] sm:$0xff] }
 0x2c5   : > { %4345 = vmatmul.msk.f32.gmra.mxu0 %vm408_vm1, %v6227_v58  ;;  %v1653_v43 = vadd.f32 %v1601_v40, %v1503_v34  ;;  %v1504_v34 = vadd.f32 %v5900_v61, %v7917_v54  ;;  %v6252_v40 = vsel %vm342_vm2, %v7890_v44, %v2113_v1 }
 0x2c6   : > { %v2024_v4 = vadd.f32 %v5855_v9, %v1988_v48  ;;  %v6248_v48 = vsel %vm766_vm3, %v2521_v0, %v7889_v17  ;;  %7919 = vst [vmem:[#allocation48_spill] sm:$0xff] %v6252_v40  ;;  %v2525_v0 = vrot.slane %v5967_v51, 1 }
 0x2c7   : > { %v1751_v19 = vpop.f32.mrf.mxu3  ;;  %v6235_v10 = vpop.f32.mrf.mxu1  ;;  %7918 = vst [vmem:[#allocation17_spill] sm:$0xff] %v6248_v48 }
 0x2c8   : > { %v6238_v31 = vmax.f32 %v2024_v4, 0.0  ;;  %v1803_v7 = vadd.f32 %v1751_v19, %v1653_v43 }
 0x2c9   : > { %4277 = vmatmul.msk.f32.gmra.mxu2 %vm408_vm1, %v6177_v16 }
 0x2ca   : > { %v1907_v45 = vpop.f32.mrf.mxu0  ;;  %v1953_v8 = vadd.f32 %v1901_v37, %v1803_v7  ;;  %4260 = vmatmul.msk.f32.gmra.mxu1 %vm408_vm1, %v6238_v31  ;;  %v2115_v7 = vrot.slane %v5998_v57, 7 }
 0x2cc   : > { %v1989_v19 = vmul.f32 %v5848_v32, %v1953_v8  ;;  %v1604_v43 = vpop.f32.mrf.mxu2  ;;  %4311 = vmatmul.msk.f32.gmra.mxu3 %vm408_vm1, %v6248_v48  ;;  %v2524_v48 = vrot.slane %v5952_v62, 1 }
 0x2cd   : > { %4346 = vmatmul.msk.f32.gmra.mxu0 %vm408_vm1, %v6252_v40  ;;  %v1654_v37 = vadd.f32 %v1604_v43, %v1504_v34  ;;  %v7920_v34 = vld [vmem:[#allocation7_spill] sm:$0xff] }
 0x2ce   : > { %v2025_v61 = vadd.f32 %v5855_v9, %v1989_v19  ;;  %v1505_v19 = vadd.f32 %v5920_v11, %v7920_v34  ;;  %v6274_v43 = vsel %vm766_vm3, %v2524_v48, %v2525_v0  ;;  %v2117_v48 = vrot.slane %v6014_v35, 7 }
 0x2cf   : > { %v1754_v54 = vpop.f32.mrf.mxu3  ;;  %v6260_v4 = vpop.f32.mrf.mxu1  ;;  %7921 = vst [vmem:[#allocation45_spill] sm:$0xff] %v6274_v43 }
 0x2d0   : > { %v6264_v16 = vmax.f32 %v2025_v61, 0.0  ;;  %v1804_v8 = vadd.f32 %v1754_v54, %v1654_v37  ;;  %v6277_v61 = vsel %vm342_vm2, %v2113_v1, %v2115_v7 }
 0x2d1   : > { %4278 = vmatmul.msk.f32.gmra.mxu2 %vm408_vm1, %v6202_v30  ;;  %7922 = vst [vmem:[#allocation20_spill] sm:$0xff] %v6277_v61 }
 0x2d2   : > { %v1910_v60 = vpop.f32.mrf.mxu0  ;;  %v1954_v28 = vadd.f32 %v1904_v63, %v1804_v8  ;;  %4261 = vmatmul.msk.f32.gmra.mxu1 %vm408_vm1, %v6264_v16 }
 0x2d4   : > { %v1990_v37 = vmul.f32 %v5848_v32, %v1954_v28  ;;  %v1607_v54 = vpop.f32.mrf.mxu2  ;;  %4312 = vmatmul.msk.f32.gmra.mxu3 %vm408_vm1, %v6274_v43  ;;  %v7924_v43 = vld [vmem:[#allocation34_spill] sm:$0xff] }
 0x2d5   : > { %4347 = vmatmul.msk.f32.gmra.mxu0 %vm408_vm1, %v6277_v61  ;;  %v1655_v63 = vadd.f32 %v1607_v54, %v1505_v19  ;;  %v1506_v19 = vadd.f32 %v5937_v29, %v7924_v43  ;;  %v6302_v54 = vsel %vm342_vm2, %v7890_v44, %v2117_v48 }
 0x2d6   : > { %v2026_v8 = vadd.f32 %v5855_v9, %v1990_v37  ;;  %v6298_v37 = vsel %vm766_vm3, %v2525_v0, %v7889_v17  ;;  %7926 = vst [vmem:[#allocation23_spill] sm:$0xff] %v6302_v54  ;;  %v2529_v0 = vrot.slane %v5998_v57, 1 }
 0x2d7   : > { %v1757_v30 = vpop.f32.mrf.mxu3  ;;  %v6285_v11 = vpop.f32.mrf.mxu1  ;;  %7925 = vst [vmem:[#allocation47_spill] sm:$0xff] %v6298_v37 }
 0x2d8   : > { %7923 = vst [vmem:[#allocation50_spill] sm:$0xff] %v6285_v11  ;;  %v6288_v34 = vmax.f32 %v2026_v8, 0.0  ;;  %v1805_v1 = vadd.f32 %v1757_v30, %v1655_v63 }
 0x2d9   : > { %4279 = vmatmul.msk.f32.gmra.mxu2 %vm408_vm1, %v6227_v58 }
 0x2da   : > { %v1913_v7 = vpop.f32.mrf.mxu0  ;;  %v1955_v28 = vadd.f32 %v1907_v45, %v1805_v1  ;;  %4262 = vmatmul.msk.f32.gmra.mxu1 %vm408_vm1, %v6288_v34  ;;  %v2119_v1 = vrot.slane %v6028_v13, 7 }
 0x2dc   : > { %v1991_v30 = vmul.f32 %v5848_v32, %v1955_v28  ;;  %v1610_v63 = vpop.f32.mrf.mxu2  ;;  %4313 = vmatmul.msk.f32.gmra.mxu3 %vm408_vm1, %v6298_v37  ;;  %v2528_v37 = vrot.slane %v5982_v33, 1 }
 0x2dd   : > { %4348 = vmatmul.msk.f32.gmra.mxu0 %vm408_vm1, %v6302_v54  ;;  %v1656_v45 = vadd.f32 %v1610_v63, %v1506_v19  ;;  %v7927_v19 = vld [vmem:[#allocation31_spill] sm:$0xff] }
 0x2de   : > { %v2027_v29 = vadd.f32 %v5855_v9, %v1991_v30  ;;  %v1507_v30 = vadd.f32 %v5954_v38, %v7927_v19  ;;  %v6324_v63 = vsel %vm766_vm3, %v2528_v37, %v2529_v0  ;;  %v2121_v37 = vrot.slane %v6044_v49, 7 }
 0x2df   : > { %v1760_v43 = vpop.f32.mrf.mxu3  ;;  %v6310_v8 = vpop.f32.mrf.mxu1  ;;  %7928 = vst [vmem:[#allocation52_spill] sm:$0xff] %v6324_v63 }
 0x2e0   : > { %v6314_v58 = vmax.f32 %v2027_v29, 0.0  ;;  %v1806_v28 = vadd.f32 %v1760_v43, %v1656_v45  ;;  %v6327_v29 = vsel %vm342_vm2, %v2117_v48, %v2119_v1 }
 0x2e1   : > { %4280 = vmatmul.msk.f32.gmra.mxu2 %vm408_vm1, %v6252_v40  ;;  %7929 = vst [vmem:[#allocation49_spill] sm:$0xff] %v6327_v29 }
 0x2e2   : > { %v1916_v11 = vpop.f32.mrf.mxu0  ;;  %v1956_v50 = vadd.f32 %v1910_v60, %v1806_v28  ;;  %4263 = vmatmul.msk.f32.gmra.mxu1 %vm408_vm1, %v6314_v58 }
 0x2e4   : > { %v1992_v45 = vmul.f32 %v5848_v32, %v1956_v50  ;;  %v1613_v43 = vpop.f32.mrf.mxu2  ;;  %4314 = vmatmul.msk.f32.gmra.mxu3 %vm408_vm1, %v6324_v63  ;;  %v4404_v50 = vld [vmem:[%s7601_s4 + $0x14] sm:$0xf] }
 0x2e5   : > { %4349 = vmatmul.msk.f32.gmra.mxu0 %vm408_vm1, %v6327_v29  ;;  %v1657_v60 = vadd.f32 %v1613_v43, %v1507_v30  ;;  %4405 = vmatpush.msk.msra.mxu2 %vm471_vm0, %v4404_v50  ;;  %v7931_v30 = vld [vmem:[#allocation36_spill] sm:$0xff]  ;;  %v6356_v43 = vsel %vm342_vm2, %v7890_v44, %v2121_v37 }
 0x2e6   : > { %v2028_v28 = vadd.f32 %v5855_v9, %v1992_v45  ;;  %v1508_v45 = vadd.f32 %v5973_v27, %v7931_v30  ;;  %7933 = vst [vmem:[#allocation51_spill] sm:$0xff] %v6356_v43  ;;  %v2123_v30 = vrot.slane %v6060_v2, 7 }
 0x2e7   : > { %v1763_v40 = vpop.f32.mrf.mxu3  ;;  %v6335_v38 = vpop.f32.mrf.mxu1 }
 0x2e8   : > { %7930 = vst [vmem:[#allocation26_spill] sm:$0xff] %v6335_v38  ;;  %v6338_v19 = vmax.f32 %v2028_v28, 0.0  ;;  %v1807_v48 = vadd.f32 %v1763_v40, %v1657_v60  ;;  %v6352_v40 = vsel %vm766_vm3, %v2529_v0, %v7889_v17  ;;  %v2533_v0 = vrot.slane %v6028_v13, 1 }
 0x2e9   : > { %4281 = vmatmul.msk.f32.gmra.mxu2 %vm408_vm1, %v6277_v61  ;;  %7932 = vst [vmem:[#allocation54_spill] sm:$0xff] %v6352_v40 }
 0x2ea   : > { %v1919_v1 = vpop.f32.mrf.mxu0  ;;  %v1957_v63 = vadd.f32 %v1913_v7, %v1807_v48  ;;  %4264 = vmatmul.msk.f32.gmra.mxu1 %vm408_vm1, %v6338_v19 }
 0x2ec   : > { %v1993_v60 = vmul.f32 %v5848_v32, %v1957_v63  ;;  %v1616_v28 = vpop.f32.mrf.mxu2  ;;  %4315 = vmatmul.msk.f32.gmra.mxu3 %vm408_vm1, %v6352_v40  ;;  %v4438_v40 = vld [vmem:[%s7601_s4 + $0x18] sm:$0xf] }
 0x2ed   : > { %4350 = vmatmul.msk.f32.gmra.mxu0 %vm408_vm1, %v6356_v43  ;;  %v1658_v7 = vadd.f32 %v1616_v28, %v1508_v45  ;;  %v2532_v45 = vrot.slane %v6014_v35, 1  ;;  %4439 = vmatpush.msk.msra.mxu3 %vm471_vm0, %v4438_v40  ;;  %v1509_v28 = vadd.f32 %v5995_v39, %v5805_v36  ;;  %v2125_v39 = vrot.slane %v6077_v18, 7 }
 0x2ee   : > { %v2029_v27 = vadd.f32 %v5855_v9, %v1993_v60 }
 0x2ef   : > { %v1766_v48 = vpop.f32.mrf.mxu3  ;;  %v6364_v50 = vpop.f32.mrf.mxu1 }
 0x2f0   : > { %v6368_v61 = vmax.f32 %v2029_v27, 0.0  ;;  %v1808_v63 = vadd.f32 %v1766_v48, %v1658_v7  ;;  %v6382_v7 = vsel %vm766_vm3, %v2532_v45, %v2533_v0  ;;  %v6385_v27 = vsel %vm342_vm2, %v2121_v37, %v2123_v30  ;;  %v4472_v30 = vld [vmem:[%s7601_s4 + $0x1c] sm:$0xf] }
 0x2f1   : > { %4282 = vmatmul.msk.f32.gmra.mxu2 %vm408_vm1, %v6302_v54  ;;  %7934 = vst [vmem:[#allocation3_spill] sm:$0xff] %v6382_v7  ;;  %4473 = vmatpush.msk.msra.mxu0 %vm471_vm0, %v4472_v30  ;;  %v2127_v30 = vrot.slane %v6094_v25, 7 }
 0x2f2   : > { %v1922_v38 = vpop.f32.mrf.mxu0  ;;  %v1958_v60 = vadd.f32 %v1916_v11, %v1808_v63  ;;  %4265 = vmatmul.msk.f32.gmra.mxu1 %vm408_vm1, %v6368_v61  ;;  %7935 = vst [vmem:[#allocation53_spill] sm:$0xff] %v6385_v27 }
 0x2f4   : > { %v1994_v48 = vmul.f32 %v5848_v32, %v1958_v60  ;;  %v1619_v54 = vpop.f32.mrf.mxu2  ;;  %4316 = vmatmul.msk.f32.gmra.mxu3 %vm408_vm1, %v6382_v7  ;;  %v4504_v60 = vld [vmem:[%s7601_s4 + $0x20] sm:$0xf] }
 0x2f5   : > { %4351 = vmatmul.msk.f32.gmra.mxu0 %vm408_vm1, %v6385_v27  ;;  %v1659_v11 = vadd.f32 %v1619_v54, %v1509_v28  ;;  %v1510_v28 = vadd.f32 %v6012_v3, %v5816_v52  ;;  %4505 = vmatpush.msk.msra.mxu1 %vm471_vm0, %v4504_v60 }
 0x2f6   : > { %v2030_v40 = vadd.f32 %v5855_v9, %v1994_v48  ;;  %v6415_v48 = vsel %vm766_vm3, %v2533_v0, %v7889_v17 }
 0x2f7   : > { %v1769_v63 = vpop.f32.mrf.mxu3  ;;  %v6393_v36 = vpop.f32.mrf.mxu1  ;;  %7936 = vst [vmem:[#allocation4_spill] sm:$0xff] %v6415_v48 }
 0x2f8   : > { %v6396_v45 = vmax.f32 %v2030_v40, 0.0  ;;  %v1809_v37 = vadd.f32 %v1769_v63, %v1659_v11  ;;  %v6419_v11 = vsel %vm342_vm2, %v7890_v44, %v2125_v39 }
 0x2f9   : > { %4283 = vmatmul.msk.f32.gmra.mxu2 %vm408_vm1, %v6327_v29  ;;  %7937 = vst [vmem:[#allocation55_spill] sm:$0xff] %v6419_v11 }
 0x2fa   : > { %v6404_v7 = vpop.f32.mrf.mxu0  ;;  %v1959_v54 = vadd.f32 %v1919_v1, %v1809_v37  ;;  %4266 = vmatmul.msk.f32.gmra.mxu1 %vm408_vm1, %v6396_v45  ;;  %v2537_v37 = vrot.slane %v6060_v2, 1 }
 0x2fc   : > { %v1995_v40 = vmul.f32 %v5848_v32, %v1959_v54  ;;  %v1622_v63 = vpop.f32.mrf.mxu2  ;;  %4317 = vmatmul.msk.f32.gmra.mxu3 %vm408_vm1, %v6415_v48  ;;  %v2536_v48 = vrot.slane %v6044_v49, 1 }
 0x2fd   : > { %4352 = vmatmul.msk.f32.gmra.mxu0 %vm408_vm1, %v6419_v11  ;;  %v1660_v52 = vadd.f32 %v1622_v63, %v1510_v28  ;;  %v6445_v63 = vsel %vm342_vm2, %v2125_v39, %v2127_v30  ;;  %v6468_v30 = vsel %vm766_vm3, %v2537_v37, %v7889_v17 }
 0x2fe   : > { %v2031_v3 = vadd.f32 %v5855_v9, %v1995_v40  ;;  %v6442_v40 = vsel %vm766_vm3, %v2536_v48, %v2537_v37  ;;  %7940 = vst [vmem:[#allocation58_spill] sm:$0xff] %v6445_v63  ;;  %v2129_v48 = vrot.slane %v6116_v20, 7  ;;  %v2131_v37 = vrot.slane %v6139_v12, 7 }
 0x2ff   : > { %v1772_v1 = vpop.f32.mrf.mxu3  ;;  %v6428_v0 = vpop.f32.mrf.mxu1  ;;  %7939 = vst [vmem:[#allocation57_spill] sm:$0xff] %v6442_v40 }
 0x300   : > { %7938 = vst [vmem:[#allocation5_spill] sm:$0xff] %v6428_v0  ;;  %v6432_v60 = vmax.f32 %v2031_v3, 0.0  ;;  %v1810_v54 = vadd.f32 %v1772_v1, %v1660_v52 }
 0x301   : > { %4284 = vmatmul.msk.f32.gmra.mxu2 %vm408_vm1, %v6356_v43  ;;  %7942 = vst [vmem:[#allocation16_spill] sm:$0xff] %v6468_v30  ;;  %v2540_v43 = vrot.slane %v6077_v18, 1 }
 0x302   : > { %v6434_v29 = vpop.f32.mrf.mxu0  ;;  %v1960_v28 = vadd.f32 %v1922_v38, %v1810_v54  ;;  %4267 = vmatmul.msk.f32.gmra.mxu1 %vm408_vm1, %v6432_v60 }
 0x304   : > { %v1996_v3 = vmul.f32 %v5848_v32, %v1960_v28  ;;  %v6448_v52 = vpop.f32.mrf.mxu2  ;;  %4318 = vmatmul.msk.f32.gmra.mxu3 %vm408_vm1, %v6442_v40  ;;  %v2541_v40 = vrot.slane %v6094_v25, 1 }
 0x305   : > { %4353 = vmatmul.msk.f32.gmra.mxu0 %vm408_vm1, %v6445_v63 }
 0x306   : > { %v2032_v38 = vadd.f32 %v5855_v9, %v1996_v3  ;;  %v6472_v9 = vsel %vm342_vm2, %v7890_v44, %v2129_v48 }
 0x307   : > { %v6455_v1 = vpop.f32.mrf.mxu3  ;;  %v6457_v54 = vpop.f32.mrf.mxu1  ;;  %7943 = vst [vmem:[#allocation6_spill] sm:$0xff] %v6472_v9 }
 0x308   : > { %7941 = vst [vmem:[#allocation19_spill] sm:$0xff] %v6457_v54  ;;  %v6460_v39 = vmax.f32 %v2032_v38, 0.0  ;;  %v6495_v54 = vsel %vm342_vm2, %v2129_v48, %v2131_v37  ;;  %v6513_v37 = vsel %vm766_vm3, %v2541_v40, %v7889_v17 }
 0x309   : > { %4285 = vmatmul.msk.f32.gmra.mxu2 %vm408_vm1, %v6385_v27  ;;  %7946 = vst [vmem:[#allocation29_spill] sm:$0xff] %v6495_v54 }
 0x30a   : > { %v2814_v32 = vpop.f32.mrf.mxu0  ;;  %4268 = vmatmul.msk.f32.gmra.mxu1 %vm408_vm1, %v6460_v39  ;;  %7948 = vst [vmem:[#allocation22_spill] sm:$0xff] %v6513_v37 }
 0x30c   : > { %v6474_v28 = vpop.f32.mrf.mxu2  ;;  %4319 = vmatmul.msk.f32.gmra.mxu3 %vm408_vm1, %v6468_v30  ;;  %v6492_v30 = vsel %vm766_vm3, %v2540_v43, %v2541_v40  ;;  %v2135_v40 = vrot.slane %v6188_v55, 7 }
 0x30d   : > { %4354 = vmatmul.msk.f32.gmra.mxu0 %vm408_vm1, %v6472_v9  ;;  %7945 = vst [vmem:[#allocation15_spill] sm:$0xff] %v6492_v30 }
 0x30f   : > { %v6480_v3 = vpop.f32.mrf.mxu3  ;;  %v6482_v38 = vpop.f32.mrf.mxu1 }
 0x310   : > { %7944 = vst [vmem:[#allocation13_spill] sm:$0xff] %v6482_v38 }
 0x311   : > { %4286 = vmatmul.msk.f32.gmra.mxu2 %vm408_vm1, %v6419_v11 }
 0x312   : > { %v2817_v27 = vpop.f32.mrf.mxu0  ;;  %4372 = vmatmul.msk.f32.vlgmr.msrb.gmra.mxu1 %vm408_vm1, %v5866_v21  ;;  %v2133_v21 = vrot.slane %v6164_v15, 7 }
 0x314   : > { %v2416_v38 = vpop.f32.mrf.mxu2  ;;  %4320 = vmatmul.msk.f32.gmra.mxu3 %vm408_vm1, %v6492_v30  ;;  %v2544_v30 = vrot.slane %v6116_v20, 1 }
 0x315   : > { %4355 = vmatmul.msk.f32.gmra.mxu0 %vm408_vm1, %v6495_v54  ;;  %v2417_v11 = vadd.f32 %v2416_v38, %v6070_v5  ;;  %v6517_v5 = vsel %vm342_vm2, %v7890_v44, %v2133_v21 }
 0x316   : > { %7949 = vst [vmem:[#allocation8_spill] sm:$0xff] %v6517_v5 }
 0x317   : > { %v6502_v25 = vpop.f32.mrf.mxu1  ;;  %v2654_v0 = vpop.f32.mrf.mxu3 }
 0x318   : > { %v2750_v18 = vadd.f32 %v2654_v0, %v2417_v11  ;;  %v2545_v0 = vrot.slane %v6139_v12, 1 }
 0x319   : > { %4287 = vmatmul.msk.f32.gmra.mxu2 %vm408_vm1, %v6445_v63 }
 0x31a   : > { %v2820_v43 = vpop.f32.mrf.mxu0  ;;  %4373 = vmatmul.msk.f32.gmra.mxu1 %vm408_vm1, %v5879_v26  ;;  %v6509_v48 = vadd.f32 %v2814_v32, %v2750_v18 }
 0x31c   : > { %7947 = vst [vmem:[#allocation18_spill] sm:$0xff] %v6509_v48  ;;  %v2419_v38 = vpop.f32.mrf.mxu2  ;;  %4321 = vmatmul.msk.f32.gmra.mxu3 %vm408_vm1, %v6513_v37 }
 0x31d   : > { %4356 = vmatmul.msk.f32.gmra.mxu0 %vm408_vm1, %v6517_v5  ;;  %v2420_v11 = vadd.f32 %v2419_v38, %v6090_v59  ;;  %v6536_v59 = vsel %vm766_vm3, %v2544_v30, %v2545_v0  ;;  %v6539_v38 = vsel %vm342_vm2, %v2133_v21, %v2135_v40  ;;  %v6557_v40 = vsel %vm766_vm3, %v2545_v0, %v7889_v17 }
 0x31e   : > { %7951 = vst [vmem:[#allocation21_spill] sm:$0xff] %v6536_v59  ;;  %v2139_v0 = vrot.slane %v6238_v31, 7 }
 0x31f   : > { %v6524_v26 = vpop.f32.mrf.mxu1  ;;  %v2657_v18 = vpop.f32.mrf.mxu3  ;;  %7952 = vst [vmem:[#allocation24_spill] sm:$0xff] %v6539_v38 }
 0x320   : > { %v2751_v32 = vadd.f32 %v2657_v18, %v2420_v11  ;;  %7954 = vst [vmem:[#allocation56_spill] sm:$0xff] %v6557_v40 }
 0x321   : > { %4288 = vmatmul.msk.f32.gmra.mxu2 %vm408_vm1, %v6472_v9 }
 0x322   : > { %v2823_v48 = vpop.f32.mrf.mxu0  ;;  %4374 = vmatmul.msk.f32.gmra.mxu1 %vm408_vm1, %v5894_v14  ;;  %v6533_v37 = vadd.f32 %v2817_v27, %v2751_v32  ;;  %v2137_v27 = vrot.slane %v6214_v6, 7 }
 0x324   : > { %7950 = vst [vmem:[#allocation25_spill] sm:$0xff] %v6533_v37  ;;  %v2422_v63 = vpop.f32.mrf.mxu2  ;;  %4322 = vmatmul.msk.f32.gmra.mxu3 %vm408_vm1, %v6536_v59  ;;  %v2548_v59 = vrot.slane %v6164_v15, 1 }
 0x325   : > { %4357 = vmatmul.msk.f32.gmra.mxu0 %vm408_vm1, %v6539_v38  ;;  %v2423_v11 = vadd.f32 %v2422_v63, %v6112_v56  ;;  %v6561_v56 = vsel %vm342_vm2, %v7890_v44, %v2137_v27 }
 0x326   : > { %7955 = vst [vmem:[#allocation30_spill] sm:$0xff] %v6561_v56 }
 0x327   : > { %v6546_v18 = vpop.f32.mrf.mxu1  ;;  %v2660_v9 = vpop.f32.mrf.mxu3 }
 0x328   : > { %v2752_v32 = vadd.f32 %v2660_v9, %v2423_v11 }
 0x329   : > { %4289 = vmatmul.msk.f32.gmra.mxu2 %vm408_vm1, %v6495_v54 }
 0x32a   : > { %v2826_v30 = vpop.f32.mrf.mxu0  ;;  %4375 = vmatmul.msk.f32.gmra.mxu1 %vm408_vm1, %v5909_v23  ;;  %v6553_v21 = vadd.f32 %v2820_v43, %v2752_v32  ;;  %v2549_v32 = vrot.slane %v6188_v55, 1 }
 0x32c   : > { %7953 = vst [vmem:[#allocation27_spill] sm:$0xff] %v6553_v21  ;;  %v2425_v63 = vpop.f32.mrf.mxu2  ;;  %4323 = vmatmul.msk.f32.gmra.mxu3 %vm408_vm1, %v6557_v40 }
 0x32d   : > { %4358 = vmatmul.msk.f32.gmra.mxu0 %vm408_vm1, %v6561_v56  ;;  %v2426_v9 = vadd.f32 %v2425_v63, %v6136_v22  ;;  %v6580_v22 = vsel %vm766_vm3, %v2548_v59, %v2549_v32  ;;  %v6583_v63 = vsel %vm342_vm2, %v2137_v27, %v2139_v0  ;;  %v6601_v0 = vsel %vm766_vm3, %v2549_v32, %v7889_v17 }
 0x32e   : > { %7957 = vst [vmem:[#allocation7_spill] sm:$0xff] %v6580_v22  ;;  %v2143_v32 = vrot.slane %v6288_v34, 7 }
 0x32f   : > { %v6568_v11 = vpop.f32.mrf.mxu1  ;;  %v2663_v43 = vpop.f32.mrf.mxu3  ;;  %7958 = vst [vmem:[#allocation34_spill] sm:$0xff] %v6583_v63 }
 0x330   : > { %v2753_v21 = vadd.f32 %v2663_v43, %v2426_v9  ;;  %7960 = vst [vmem:[#allocation36_spill] sm:$0xff] %v6601_v0 }
 0x331   : > { %4290 = vmatmul.msk.f32.gmra.mxu2 %vm408_vm1, %v6517_v5 }
 0x332   : > { %v2829_v37 = vpop.f32.mrf.mxu0  ;;  %4376 = vmatmul.msk.f32.gmra.mxu1 %vm408_vm1, %v5924_v47  ;;  %v6577_v40 = vadd.f32 %v2823_v48, %v2753_v21  ;;  %v2141_v48 = vrot.slane %v6264_v16, 7 }
 0x334   : > { %7956 = vst [vmem:[#allocation32_spill] sm:$0xff] %v6577_v40  ;;  %v2428_v54 = vpop.f32.mrf.mxu2  ;;  %4324 = vmatmul.msk.f32.gmra.mxu3 %vm408_vm1, %v6580_v22  ;;  %v2552_v22 = vrot.slane %v6214_v6, 1 }
 0x335   : > { %4359 = vmatmul.msk.f32.gmra.mxu0 %vm408_vm1, %v6583_v63  ;;  %v2429_v9 = vadd.f32 %v2428_v54, %v6160_v46  ;;  %v6605_v46 = vsel %vm342_vm2, %v7890_v44, %v2141_v48 }
 0x336   : > { %7961 = vst [vmem:[#allocation59_spill] sm:$0xff] %v6605_v46 }
 0x337   : > { %v6590_v43 = vpop.f32.mrf.mxu1  ;;  %v2666_v5 = vpop.f32.mrf.mxu3 }
 0x338   : > { %v2754_v21 = vadd.f32 %v2666_v5, %v2429_v9 }
 0x339   : > { %4291 = vmatmul.msk.f32.gmra.mxu2 %vm408_vm1, %v6539_v38 }
 0x33a   : > { %v2832_v59 = vpop.f32.mrf.mxu0  ;;  %4377 = vmatmul.msk.f32.gmra.mxu1 %vm408_vm1, %v5939_v53  ;;  %v6597_v27 = vadd.f32 %v2826_v30, %v2754_v21  ;;  %v2553_v21 = vrot.slane %v6238_v31, 1 }
 0x33c   : > { %7959 = vst [vmem:[#allocation31_spill] sm:$0xff] %v6597_v27  ;;  %v2431_v54 = vpop.f32.mrf.mxu2  ;;  %4325 = vmatmul.msk.f32.gmra.mxu3 %vm408_vm1, %v6601_v0 }
 0x33d   : > { %4360 = vmatmul.msk.f32.gmra.mxu0 %vm408_vm1, %v6605_v46  ;;  %v2432_v5 = vadd.f32 %v2431_v54, %v6185_v41  ;;  %v6624_v41 = vsel %vm766_vm3, %v2552_v22, %v2553_v21  ;;  %v6627_v54 = vsel %vm342_vm2, %v2141_v48, %v2143_v32  ;;  %v6645_v32 = vsel %vm766_vm3, %v2553_v21, %v7889_v17 }
 0x33e   : > { %7963 = vst [vmem:[#allocation61_spill] sm:$0xff] %v6624_v41  ;;  %v2147_v21 = vrot.slane %v6338_v19, 7 }
 0x33f   : > { %v6612_v9 = vpop.f32.mrf.mxu1  ;;  %v2669_v30 = vpop.f32.mrf.mxu3  ;;  %7964 = vst [vmem:[#allocation62_spill] sm:$0xff] %v6627_v54 }
 0x340   : > { %v2755_v27 = vadd.f32 %v2669_v30, %v2432_v5  ;;  %7966 = vst [vmem:[#allocation64_spill] sm:$0xff] %v6645_v32 }
 0x341   : > { %4292 = vmatmul.msk.f32.gmra.mxu2 %vm408_vm1, %v6561_v56 }
 0x342   : > { %v2835_v40 = vpop.f32.mrf.mxu0  ;;  %4378 = vmatmul.msk.f32.gmra.mxu1 %vm408_vm1, %v5952_v62  ;;  %v6621_v0 = vadd.f32 %v2829_v37, %v2755_v27  ;;  %v2145_v37 = vrot.slane %v6314_v58, 7 }
 0x344   : > { %7962 = vst [vmem:[#allocation60_spill] sm:$0xff] %v6621_v0  ;;  %v2434_v38 = vpop.f32.mrf.mxu2  ;;  %4326 = vmatmul.msk.f32.gmra.mxu3 %vm408_vm1, %v6624_v41  ;;  %v2556_v41 = vrot.slane %v6264_v16, 1 }
 0x345   : > { %4361 = vmatmul.msk.f32.gmra.mxu0 %vm408_vm1, %v6627_v54  ;;  %v2435_v5 = vadd.f32 %v2434_v38, %v6210_v24  ;;  %v6649_v24 = vsel %vm342_vm2, %v7890_v44, %v2145_v37 }
 0x347   : > { %v6634_v30 = vpop.f32.mrf.mxu1  ;;  %v2672_v56 = vpop.f32.mrf.mxu3 }
 0x348   : > { %v2756_v27 = vadd.f32 %v2672_v56, %v2435_v5 }
 0x349   : > { %4293 = vmatmul.msk.f32.gmra.mxu2 %vm408_vm1, %v6583_v63 }
 0x34a   : > { %v2838_v22 = vpop.f32.mrf.mxu0  ;;  %4379 = vmatmul.msk.f32.gmra.mxu1 %vm408_vm1, %v5967_v51  ;;  %v6641_v48 = vadd.f32 %v2832_v59, %v2756_v27  ;;  %v2557_v27 = vrot.slane %v6288_v34, 1 }
 0x34c   : > { %7965 = vst [vmem:[#allocation63_spill] sm:$0xff] %v6641_v48  ;;  %v2437_v38 = vpop.f32.mrf.mxu2  ;;  %4327 = vmatmul.msk.f32.gmra.mxu3 %vm408_vm1, %v6645_v32 }
 0x34d   : > { %4362 = vmatmul.msk.f32.gmra.mxu0 %vm408_vm1, %v6649_v24  ;;  %v2438_v56 = vadd.f32 %v2437_v38, %v6235_v10  ;;  %v6668_v10 = vsel %vm766_vm3, %v2556_v41, %v2557_v27  ;;  %v6671_v38 = vsel %vm342_vm2, %v2145_v37, %v2147_v21  ;;  %v6689_v21 = vsel %vm766_vm3, %v2557_v27, %v7889_v17 }
 0x34e   : > { %7969 = vst [vmem:[#allocation67_spill] sm:$0xff] %v6668_v10 }
 0x34f   : > { %v6656_v5 = vpop.f32.mrf.mxu1  ;;  %v2675_v59 = vpop.f32.mrf.mxu3  ;;  %7972 = vst [vmem:[#allocation70_spill] sm:$0xff] %v6689_v21 }
 0x350   : > { %7967 = vst [vmem:[#allocation65_spill] sm:$0xff] %v6656_v5  ;;  %v2757_v48 = vadd.f32 %v2675_v59, %v2438_v56  ;;  %v2560_v5 = vrot.slane %v6314_v58, 1 }
 0x351   : > { %4294 = vmatmul.msk.f32.gmra.mxu2 %vm408_vm1, %v6605_v46 }
 0x352   : > { %v2841_v0 = vpop.f32.mrf.mxu0  ;;  %4380 = vmatmul.msk.f32.gmra.mxu1 %vm408_vm1, %v5982_v33  ;;  %v6665_v32 = vadd.f32 %v2835_v40, %v2757_v48  ;;  %v2149_v40 = vrot.slane %v6368_v61, 7 }
 0x354   : > { %7968 = vst [vmem:[#allocation66_spill] sm:$0xff] %v6665_v32  ;;  %v2440_v63 = vpop.f32.mrf.mxu2  ;;  %4328 = vmatmul.msk.f32.gmra.mxu3 %vm408_vm1, %v6668_v10  ;;  %v2561_v10 = vrot.slane %v6338_v19, 1 }
 0x355   : > { %4363 = vmatmul.msk.f32.gmra.mxu0 %vm408_vm1, %v6671_v38  ;;  %v2441_v56 = vadd.f32 %v2440_v63, %v6260_v4  ;;  %v6693_v4 = vsel %vm342_vm2, %v7890_v44, %v2149_v40 }
 0x357   : > { %v6678_v59 = vpop.f32.mrf.mxu1  ;;  %v2678_v46 = vpop.f32.mrf.mxu3 }
 0x358   : > { %7970 = vst [vmem:[#allocation68_spill] sm:$0xff] %v6678_v59  ;;  %v2758_v48 = vadd.f32 %v2678_v46, %v2441_v56  ;;  %v7973_v46 = vld [vmem:[#allocation9_spill] sm:$0xff] }
 0x359   : > { %4295 = vmatmul.msk.f32.gmra.mxu2 %vm408_vm1, %v6627_v54  ;;  %v1511_v56 = vadd.f32 %v7973_v46, %v5825_v42  ;;  %v2151_v54 = vrot.slane %v6396_v45, 7 }
 0x35a   : > { %v2844_v41 = vpop.f32.mrf.mxu0  ;;  %4381 = vmatmul.msk.f32.gmra.mxu1 %vm408_vm1, %v5998_v57  ;;  %v6685_v37 = vadd.f32 %v2838_v22, %v2758_v48  ;;  %v7974_v22 = vld [vmem:[#allocation50_spill] sm:$0xff] }
 0x35b   : > { %v6719_v46 = vsel %vm342_vm2, %v2149_v40, %v2151_v54  ;;  %v2153_v40 = vrot.slane %v6432_v60, 7 }
 0x35c   : > { %7971 = vst [vmem:[#allocation69_spill] sm:$0xff] %v6685_v37  ;;  %v2443_v63 = vpop.f32.mrf.mxu2  ;;  %4329 = vmatmul.msk.f32.gmra.mxu3 %vm408_vm1, %v6689_v21  ;;  %v1661_v37 = vadd.f32 %v6448_v52, %v1511_v56  ;;  %v7977_v56 = vld [vmem:[#allocation33_spill] sm:$0xff] }
 0x35d   : > { %4364 = vmatmul.msk.f32.gmra.mxu0 %vm408_vm1, %v6693_v4  ;;  %v2444_v48 = vadd.f32 %v2443_v63, %v7974_v22  ;;  %v6716_v63 = vsel %vm766_vm3, %v2560_v5, %v2561_v10  ;;  %v7978_v22 = vld [vmem:[#allocation38_spill] sm:$0xff] }
 0x35e   : > { %v1811_v52 = vadd.f32 %v6455_v1, %v1661_v37  ;;  %7976 = vst [vmem:[#allocation50_spill] sm:$0xff] %v6716_v63 }
 0x35f   : > { %v6703_v27 = vpop.f32.mrf.mxu1  ;;  %v2681_v32 = vpop.f32.mrf.mxu3 }
 0x360   : > { %v2759_v59 = vadd.f32 %v2681_v32, %v2444_v48  ;;  %v1512_v48 = vadd.f32 %v7978_v22, %v7977_v56  ;;  %v1961_v1 = vadd.f32 %v6404_v7, %v1811_v52  ;;  %v6745_v52 = vsel %vm766_vm3, %v2561_v10, %v7889_v17 }
 0x361   : > { %4296 = vmatmul.msk.f32.gmra.mxu2 %vm408_vm1, %v6649_v24  ;;  %7980 = vst [vmem:[#allocation38_spill] sm:$0xff] %v6745_v52 }
 0x362   : > { %v2847_v21 = vpop.f32.mrf.mxu0  ;;  %4382 = vmatmul.msk.f32.gmra.mxu1 %vm408_vm1, %v6014_v35  ;;  %v6712_v42 = vadd.f32 %v2841_v0, %v2759_v59  ;;  %v1662_v5 = vadd.f32 %v6474_v28, %v1512_v48 }
 0x364   : > { %7975 = vst [vmem:[#allocation9_spill] sm:$0xff] %v6712_v42  ;;  %v2446_v32 = vpop.f32.mrf.mxu2  ;;  %4330 = vmatmul.msk.f32.gmra.mxu3 %vm408_vm1, %v6716_v63  ;;  %v1812_v28 = vadd.f32 %v6480_v3, %v1662_v5  ;;  %v4586_v3 = vld [vmem:[%s7600_s3] ss:$0 sm:$0xff] }
 0x365   : > { %4365 = vmatmul.msk.f32.gmra.mxu0 %vm408_vm1, %v6719_v46  ;;  %v2447_v0 = vadd.f32 %v2446_v32, %v6310_v8  ;;  %v4585_v8 = vld [vmem:[%s7599_s2] ss:$0 sm:$0xff]  ;;  %v6749_v32 = vsel %vm342_vm2, %v7890_v44, %v2153_v40 }
 0x366   : > { %v1997_v7 = vmul.f32 %v4585_v8, %v1961_v1  ;;  %7981 = vst [vmem:[#allocation71_spill] sm:$0xff] %v6749_v32  ;;  %v1962_v10 = vadd.f32 %v6434_v29, %v1812_v28 }
 0x367   : > { %v6730_v59 = vpop.f32.mrf.mxu1  ;;  %v2684_v54 = vpop.f32.mrf.mxu3 }
 0x368   : > { %v2760_v37 = vadd.f32 %v2684_v54, %v2447_v0  ;;  %v2033_v0 = vadd.f32 %v4586_v3, %v1997_v7  ;;  %v2565_v54 = vrot.slane %v6396_v45, 1  ;;  %v1998_v28 = vmul.f32 %v4585_v8, %v1962_v10 }
 0x369   : > { %4297 = vmatmul.msk.f32.gmra.mxu2 %vm408_vm1, %v6671_v38 }
 0x36a   : > { %v2850_v42 = vpop.f32.mrf.mxu0  ;;  %4383 = vmatmul.msk.f32.gmra.mxu1 %vm408_vm1, %v6028_v13  ;;  %v6737_v56 = vadd.f32 %v2844_v41, %v2760_v37  ;;  %v7982_v41 = vld [vmem:[#allocation26_spill] sm:$0xff]  ;;  %v2155_v37 = vrot.slane %v6460_v39, 7  ;;  %v6771_v29 = vmax.f32 %v2033_v0, 0.0 }
 0x36c   : > { %7979 = vst [vmem:[#allocation33_spill] sm:$0xff] %v6737_v56  ;;  %v2449_v22 = vpop.f32.mrf.mxu2  ;;  %4331 = vmatmul.msk.f32.gmra.mxu3 %vm408_vm1, %v6745_v52  ;;  %v6777_v63 = vsel %vm342_vm2, %v2153_v40, %v2155_v37  ;;  %v2784_v8 = vrot.slane %v6771_v29, 7 }
 0x36d   : > { %4366 = vmatmul.msk.f32.gmra.mxu0 %vm408_vm1, %v6749_v32  ;;  %v2450_v48 = vadd.f32 %v2449_v22, %v7982_v41  ;;  %v2564_v22 = vrot.slane %v6368_v61, 1 }
 0x36f   : > { %v6760_v1 = vpop.f32.mrf.mxu1  ;;  %v2687_v5 = vpop.f32.mrf.mxu3  ;;  %v6774_v41 = vsel %vm766_vm3, %v2564_v22, %v2565_v54 }
 0x370   : > { %v2761_v56 = vadd.f32 %v2687_v5, %v2450_v48 }
 0x371   : > { %4298 = vmatmul.msk.f32.gmra.mxu2 %vm408_vm1, %v6693_v4 }
 0x372   : > { %v2853_v52 = vpop.f32.mrf.mxu0  ;;  %4384 = vmatmul.msk.f32.gmra.mxu1 %vm408_vm1, %v6044_v49  ;;  %v6769_v7 = vadd.f32 %v2847_v21, %v2761_v56  ;;  %v2034_v21 = vadd.f32 %v4586_v3, %v1998_v28  ;;  %v6801_v3 = vsel %vm342_vm2, %v7890_v44, %v2784_v8 }
 0x373   : > { %7986 = vst [vmem:[#allocation74_spill] sm:$0xff] %v6801_v3 }
 0x374   : > { %7983 = vst [vmem:[#allocation26_spill] sm:$0xff] %v6769_v7  ;;  %v2452_v48 = vpop.f32.mrf.mxu2  ;;  %4332 = vmatmul.msk.f32.gmra.mxu3 %vm408_vm1, %v6774_v41  ;;  %v6793_v22 = vmax.f32 %v2034_v21, 0.0  ;;  %v2569_v21 = vrot.slane %v6460_v39, 1  ;;  %v7987_v7 = vld [vmem:[#allocation35_spill] sm:$0xff] }
 0x375   : > { %4367 = vmatmul.msk.f32.gmra.mxu0 %vm408_vm1, %v6777_v63  ;;  %v2453_v5 = vadd.f32 %v2452_v48, %v6364_v50  ;;  %v6797_v50 = vsel %vm766_vm3, %v2565_v54, %v7889_v17 }
 0x376   : > { %7985 = vst [vmem:[#allocation73_spill] sm:$0xff] %v6797_v50  ;;  %v2786_v54 = vrot.slane %v6793_v22, 7 }
 0x377   : > { %v6784_v56 = vpop.f32.mrf.mxu1  ;;  %v2690_v0 = vpop.f32.mrf.mxu3 }
 0x378   : > { %v2762_v10 = vadd.f32 %v2690_v0, %v2453_v5 }
 0x379   : > { %4299 = vmatmul.msk.f32.gmra.mxu2 %vm408_vm1, %v6719_v46 }
 0x37a   : > { %v2856_v40 = vpop.f32.mrf.mxu0  ;;  %4385 = vmatmul.msk.f32.gmra.mxu1 %vm408_vm1, %v6060_v2  ;;  %v6791_v37 = vadd.f32 %v2850_v42, %v2762_v10 }
 0x37c   : > { %7984 = vst [vmem:[#allocation72_spill] sm:$0xff] %v6791_v37  ;;  %v2455_v28 = vpop.f32.mrf.mxu2  ;;  %4333 = vmatmul.msk.f32.gmra.mxu3 %vm408_vm1, %v6797_v50  ;;  %v2568_v37 = vrot.slane %v6432_v60, 1 }
 0x37d   : > { %4368 = vmatmul.msk.f32.gmra.mxu0 %vm408_vm1, %v6801_v3  ;;  %v2456_v42 = vadd.f32 %v2455_v28, %v6393_v36  ;;  %v6823_v28 = vsel %vm342_vm2, %v2784_v8, %v2786_v54  ;;  %v6840_v54 = vsel %vm766_vm3, %v2569_v21, %v7889_v17 }
 0x37e   : > { %v6820_v36 = vsel %vm766_vm3, %v2568_v37, %v2569_v21  ;;  %7990 = vst [vmem:[#allocation76_spill] sm:$0xff] %v6823_v28 }
 0x37f   : > { %v6808_v48 = vpop.f32.mrf.mxu1  ;;  %v2693_v5 = vpop.f32.mrf.mxu3  ;;  %7989 = vst [vmem:[#allocation75_spill] sm:$0xff] %v6820_v36 }
 0x380   : > { %v2763_v0 = vadd.f32 %v2693_v5, %v2456_v42  ;;  %v7991_v42 = vld [vmem:[#allocation5_spill] sm:$0xff] }
 0x381   : > { %4300 = vmatmul.msk.f32.gmra.mxu2 %vm408_vm1, %v6749_v32 }
 0x382   : > { %v2859_v10 = vpop.f32.mrf.mxu0  ;;  %4386 = vmatmul.msk.f32.gmra.mxu1 %vm408_vm1, %v7987_v7  ;;  %v6817_v44 = vadd.f32 %v2853_v52, %v2763_v0  ;;  %v7992_v0 = vld [vmem:[#allocation10_spill] sm:$0xff] }
 0x384   : > { %7988 = vst [vmem:[#allocation35_spill] sm:$0xff] %v6817_v44  ;;  %v2458_v3 = vpop.f32.mrf.mxu2  ;;  %4334 = vmatmul.msk.f32.gmra.mxu3 %vm408_vm1, %v6820_v36 }
 0x385   : > { %4369 = vmatmul.msk.f32.gmra.mxu0 %vm408_vm1, %v6823_v28  ;;  %v2459_v5 = vadd.f32 %v2458_v3, %v7991_v42 }
 0x387   : > { %v6830_v50 = vpop.f32.mrf.mxu1  ;;  %v2696_v32 = vpop.f32.mrf.mxu3 }
 0x388   : > { %v2764_v52 = vadd.f32 %v2696_v32, %v2459_v5  ;;  %v7994_v32 = vld [vmem:[#allocation19_spill] sm:$0xff] }
 0x389   : > { %4301 = vmatmul.msk.f32.gmra.mxu2 %vm408_vm1, %v6777_v63 }
 0x38a   : > { %v2862_v37 = vpop.f32.mrf.mxu0  ;;  %4387 = vmatmul.msk.f32.gmra.mxu1 %vm408_vm1, %v7992_v0  ;;  %v6836_v8 = vadd.f32 %v2856_v40, %v2764_v52  ;;  %v7995_v40 = vld [vmem:[#allocation37_spill] sm:$0xff] }
 0x38c   : > { %7993 = vst [vmem:[#allocation5_spill] sm:$0xff] %v6836_v8  ;;  %v2461_v44 = vpop.f32.mrf.mxu2  ;;  %4335 = vmatmul.msk.f32.gmra.mxu3 %vm408_vm1, %v6840_v54  ;;  %v7997_v8 = vld [vmem:[#allocation40_spill] sm:$0xff] }
 0x38d   : > { %4474 = vmatmul.msk.f32.vlgmr.msra.gmra.mxu0 %vm408_vm1, %v5894_v14  ;;  %v2462_v3 = vadd.f32 %v2461_v44, %v7994_v32  ;;  %v7998_v14 = vld [vmem:[#allocation13_spill] sm:$0xff] }
 0x38f   : > { %v2699_v42 = vpop.f32.mrf.mxu3  ;;  %v6847_v5 = vpop.f32.mrf.mxu1 }
 0x390   : > { %v2765_v28 = vadd.f32 %v2699_v42, %v2462_v3 }
 0x391   : > { %4406 = vmatmul.msk.f32.vlgmr.msra.gmra.mxu2 %vm408_vm1, %v7995_v40  ;;  %v7999_v40 = vld [vmem:[#allocation42_spill] sm:$0xff] }
 0x392   : > { %v2865_v36 = vpop.f32.mrf.mxu0  ;;  %4388 = vmatmul.msk.f32.gmra.mxu1 %vm408_vm1, %v6116_v20  ;;  %v6853_v21 = vadd.f32 %v2859_v10, %v2765_v28 }
 0x394   : > { %7996 = vst [vmem:[#allocation10_spill] sm:$0xff] %v6853_v21  ;;  %v2464_v52 = vpop.f32.mrf.mxu2  ;;  %4440 = vmatmul.msk.f32.vlgmr.msra.gmra.mxu3 %vm408_vm1, %v7997_v8  ;;  %v8001_v8 = vld [vmem:[#allocation11_spill] sm:$0xff]  ;;  %v8025_v21 = vld [vmem:[#allocation54_spill] sm:$0xff] }
 0x395   : > { %4475 = vmatmul.msk.f32.gmra.mxu0 %vm408_vm1, %v5909_v23  ;;  %v2465_v44 = vadd.f32 %v2464_v52, %v7998_v14 }
 0x397   : > { %v2702_v32 = vpop.f32.mrf.mxu3  ;;  %v6860_v3 = vpop.f32.mrf.mxu1 }
 0x398   : > { %v2766_v42 = vadd.f32 %v2702_v32, %v2465_v44 }
 0x399   : > { %4407 = vmatmul.msk.f32.gmra.mxu2 %vm408_vm1, %v7999_v40  ;;  %v8002_v40 = vld [vmem:[#allocation12_spill] sm:$0xff] }
 0x39a   : > { %v2868_v17 = vpop.f32.mrf.mxu0  ;;  %4389 = vmatmul.msk.f32.gmra.mxu1 %vm408_vm1, %v6139_v12  ;;  %v6866_v10 = vadd.f32 %v2862_v37, %v2766_v42 }
 0x39c   : > { %8000 = vst [vmem:[#allocation19_spill] sm:$0xff] %v6866_v10  ;;  %v2467_v28 = vpop.f32.mrf.mxu2  ;;  %4441 = vmatmul.msk.f32.gmra.mxu3 %vm408_vm1, %v8001_v8  ;;  %v8004_v8 = vld [vmem:[#allocation39_spill] sm:$0xff]  ;;  %v8005_v10 = vld [vmem:[#allocation41_spill] sm:$0xff] }
 0x39d   : > { %4476 = vmatmul.msk.f32.gmra.mxu0 %vm408_vm1, %v5924_v47  ;;  %v2468_v23 = vadd.f32 %v2467_v28, %v6502_v25 }
 0x39f   : > { %v2705_v52 = vpop.f32.mrf.mxu3  ;;  %v6873_v14 = vpop.f32.mrf.mxu1 }
 0x3a0   : > { %v2767_v44 = vadd.f32 %v2705_v52, %v2468_v23 }
 0x3a1   : > { %4408 = vmatmul.msk.f32.gmra.mxu2 %vm408_vm1, %v8002_v40 }
 0x3a2   : > { %v2871_v32 = vpop.f32.mrf.mxu0  ;;  %4390 = vmatmul.msk.f32.gmra.mxu1 %vm408_vm1, %v6164_v15  ;;  %v6879_v37 = vadd.f32 %v2865_v36, %v2767_v44 }
 0x3a4   : > { %8003 = vst [vmem:[#allocation37_spill] sm:$0xff] %v6879_v37  ;;  %v2470_v42 = vpop.f32.mrf.mxu2  ;;  %4442 = vmatmul.msk.f32.gmra.mxu3 %vm408_vm1, %v8004_v8  ;;  %v8007_v8 = vld [vmem:[#allocation44_spill] sm:$0xff]  ;;  %v8008_v37 = vld [vmem:[#allocation46_spill] sm:$0xff] }
 0x3a5   : > { %4477 = vmatmul.msk.f32.gmra.mxu0 %vm408_vm1, %v5939_v53  ;;  %v2471_v47 = vadd.f32 %v2470_v42, %v6524_v26 }
 0x3a7   : > { %v2708_v25 = vpop.f32.mrf.mxu3  ;;  %v6886_v28 = vpop.f32.mrf.mxu1 }
 0x3a8   : > { %v2768_v23 = vadd.f32 %v2708_v25, %v2471_v47 }
 0x3a9   : > { %4409 = vmatmul.msk.f32.gmra.mxu2 %vm408_vm1, %v8005_v10 }
 0x3aa   : > { %v2874_v52 = vpop.f32.mrf.mxu0  ;;  %4391 = vmatmul.msk.f32.gmra.mxu1 %vm408_vm1, %v6188_v55  ;;  %v6892_v36 = vadd.f32 %v2868_v17, %v2768_v23 }
 0x3ac   : > { %8006 = vst [vmem:[#allocation40_spill] sm:$0xff] %v6892_v36  ;;  %v2473_v44 = vpop.f32.mrf.mxu2  ;;  %4443 = vmatmul.msk.f32.gmra.mxu3 %vm408_vm1, %v8007_v8  ;;  %v8010_v8 = vld [vmem:[#allocation14_spill] sm:$0xff]  ;;  %v8011_v36 = vld [vmem:[#allocation17_spill] sm:$0xff] }
 0x3ad   : > { %4478 = vmatmul.msk.f32.gmra.mxu0 %vm408_vm1, %v5952_v62  ;;  %v2474_v53 = vadd.f32 %v2473_v44, %v6546_v18 }
 0x3af   : > { %v2711_v26 = vpop.f32.mrf.mxu3  ;;  %v6899_v42 = vpop.f32.mrf.mxu1 }
 0x3b0   : > { %v2769_v47 = vadd.f32 %v2711_v26, %v2474_v53 }
 0x3b1   : > { %4410 = vmatmul.msk.f32.gmra.mxu2 %vm408_vm1, %v8008_v37 }
 0x3b2   : > { %v2877_v25 = vpop.f32.mrf.mxu0  ;;  %4392 = vmatmul.msk.f32.gmra.mxu1 %vm408_vm1, %v6214_v6  ;;  %v6905_v17 = vadd.f32 %v2871_v32, %v2769_v47 }
 0x3b4   : > { %8009 = vst [vmem:[#allocation13_spill] sm:$0xff] %v6905_v17  ;;  %v2476_v23 = vpop.f32.mrf.mxu2  ;;  %4444 = vmatmul.msk.f32.gmra.mxu3 %vm408_vm1, %v8010_v8  ;;  %v8013_v8 = vld [vmem:[#allocation43_spill] sm:$0xff]  ;;  %v8014_v17 = vld [vmem:[#allocation45_spill] sm:$0xff] }
 0x3b5   : > { %4479 = vmatmul.msk.f32.gmra.mxu0 %vm408_vm1, %v5967_v51  ;;  %v2477_v62 = vadd.f32 %v2476_v23, %v6568_v11 }
 0x3b7   : > { %v2714_v18 = vpop.f32.mrf.mxu3  ;;  %v6912_v44 = vpop.f32.mrf.mxu1 }
 0x3b8   : > { %v2770_v53 = vadd.f32 %v2714_v18, %v2477_v62 }
 0x3b9   : > { %4411 = vmatmul.msk.f32.gmra.mxu2 %vm408_vm1, %v8011_v36 }
 0x3ba   : > { %v2880_v26 = vpop.f32.mrf.mxu0  ;;  %4393 = vmatmul.msk.f32.gmra.mxu1 %vm408_vm1, %v6238_v31  ;;  %v6918_v32 = vadd.f32 %v2874_v52, %v2770_v53 }
 0x3bc   : > { %8012 = vst [vmem:[#allocation42_spill] sm:$0xff] %v6918_v32  ;;  %v2479_v47 = vpop.f32.mrf.mxu2  ;;  %4445 = vmatmul.msk.f32.gmra.mxu3 %vm408_vm1, %v8013_v8  ;;  %v8016_v8 = vld [vmem:[#allocation48_spill] sm:$0xff]  ;;  %v8017_v32 = vld [vmem:[#allocation47_spill] sm:$0xff] }
 0x3bd   : > { %4480 = vmatmul.msk.f32.gmra.mxu0 %vm408_vm1, %v5982_v33  ;;  %v2480_v51 = vadd.f32 %v2479_v47, %v6590_v43 }
 0x3bf   : > { %v2717_v11 = vpop.f32.mrf.mxu3  ;;  %v6925_v23 = vpop.f32.mrf.mxu1 }
 0x3c0   : > { %v2771_v62 = vadd.f32 %v2717_v11, %v2480_v51 }
 0x3c1   : > { %4412 = vmatmul.msk.f32.gmra.mxu2 %vm408_vm1, %v8014_v17 }
 0x3c2   : > { %v2883_v18 = vpop.f32.mrf.mxu0  ;;  %4394 = vmatmul.msk.f32.gmra.mxu1 %vm408_vm1, %v6264_v16  ;;  %v6931_v52 = vadd.f32 %v2877_v25, %v2771_v62 }
 0x3c4   : > { %8015 = vst [vmem:[#allocation11_spill] sm:$0xff] %v6931_v52  ;;  %v2482_v53 = vpop.f32.mrf.mxu2  ;;  %4446 = vmatmul.msk.f32.gmra.mxu3 %vm408_vm1, %v8016_v8  ;;  %v8019_v8 = vld [vmem:[#allocation20_spill] sm:$0xff] }
 0x3c5   : > { %4481 = vmatmul.msk.f32.gmra.mxu0 %vm408_vm1, %v5998_v57  ;;  %v2483_v33 = vadd.f32 %v2482_v53, %v6612_v9  ;;  %v8020_v52 = vld [vmem:[#allocation52_spill] sm:$0xff] }
 0x3c7   : > { %v2720_v43 = vpop.f32.mrf.mxu3  ;;  %v6938_v47 = vpop.f32.mrf.mxu1 }
 0x3c8   : > { %v2772_v51 = vadd.f32 %v2720_v43, %v2483_v33 }
 0x3c9   : > { %4413 = vmatmul.msk.f32.gmra.mxu2 %vm408_vm1, %v8017_v32 }
 0x3ca   : > { %v2886_v11 = vpop.f32.mrf.mxu0  ;;  %4395 = vmatmul.msk.f32.gmra.mxu1 %vm408_vm1, %v6288_v34  ;;  %v6944_v25 = vadd.f32 %v2880_v26, %v2772_v51 }
 0x3cc   : > { %8018 = vst [vmem:[#allocation12_spill] sm:$0xff] %v6944_v25  ;;  %v2485_v62 = vpop.f32.mrf.mxu2  ;;  %4447 = vmatmul.msk.f32.gmra.mxu3 %vm408_vm1, %v8019_v8  ;;  %v8022_v8 = vld [vmem:[#allocation23_spill] sm:$0xff] }
 0x3cd   : > { %4482 = vmatmul.msk.f32.gmra.mxu0 %vm408_vm1, %v6014_v35  ;;  %v2486_v57 = vadd.f32 %v2485_v62, %v6634_v30  ;;  %v8023_v35 = vld [vmem:[#allocation65_spill] sm:$0xff] }
 0x3cf   : > { %v2723_v9 = vpop.f32.mrf.mxu3  ;;  %v6951_v53 = vpop.f32.mrf.mxu1 }
 0x3d0   : > { %v2773_v33 = vadd.f32 %v2723_v9, %v2486_v57 }
 0x3d1   : > { %4414 = vmatmul.msk.f32.gmra.mxu2 %vm408_vm1, %v8020_v52 }
 0x3d2   : > { %v2889_v43 = vpop.f32.mrf.mxu0  ;;  %4396 = vmatmul.msk.f32.gmra.mxu1 %vm408_vm1, %v6314_v58  ;;  %v6957_v26 = vadd.f32 %v2883_v18, %v2773_v33 }
 0x3d4   : > { %8021 = vst [vmem:[#allocation39_spill] sm:$0xff] %v6957_v26  ;;  %v2488_v51 = vpop.f32.mrf.mxu2  ;;  %4448 = vmatmul.msk.f32.gmra.mxu3 %vm408_vm1, %v8022_v8  ;;  %v8027_v8 = vld [vmem:[#allocation49_spill] sm:$0xff] }
 0x3d5   : > { %4483 = vmatmul.msk.f32.gmra.mxu0 %vm408_vm1, %v6028_v13  ;;  %v2489_v30 = vadd.f32 %v2488_v51, %v8023_v35  ;;  %v8028_v13 = vld [vmem:[#allocation68_spill] sm:$0xff] }
 0x3d7   : > { %v2726_v62 = vpop.f32.mrf.mxu3  ;;  %v6964_v57 = vpop.f32.mrf.mxu1 }
 0x3d8   : > { %8024 = vst [vmem:[#allocation41_spill] sm:$0xff] %v6964_v57  ;;  %v2774_v9 = vadd.f32 %v2726_v62, %v2489_v30  ;;  %v8029_v57 = vld [vmem:[#allocation3_spill] sm:$0xff] }
 0x3d9   : > { %4415 = vmatmul.msk.f32.gmra.mxu2 %vm408_vm1, %v8025_v21 }
 0x3da   : > { %v2892_v25 = vpop.f32.mrf.mxu0  ;;  %4397 = vmatmul.msk.f32.gmra.mxu1 %vm408_vm1, %v6338_v19  ;;  %v6970_v18 = vadd.f32 %v2886_v11, %v2774_v9 }
 0x3dc   : > { %8026 = vst [vmem:[#allocation44_spill] sm:$0xff] %v6970_v18  ;;  %v2491_v33 = vpop.f32.mrf.mxu2  ;;  %4449 = vmatmul.msk.f32.gmra.mxu3 %vm408_vm1, %v8027_v8  ;;  %v8031_v8 = vld [vmem:[#allocation51_spill] sm:$0xff]  ;;  %v8032_v18 = vld [vmem:[#allocation4_spill] sm:$0xff] }
 0x3dd   : > { %4484 = vmatmul.msk.f32.gmra.mxu0 %vm408_vm1, %v6044_v49  ;;  %v2492_v51 = vadd.f32 %v2491_v33, %v8028_v13 }
 0x3df   : > { %v2729_v35 = vpop.f32.mrf.mxu3  ;;  %v6977_v30 = vpop.f32.mrf.mxu1 }
 0x3e0   : > { %v2775_v62 = vadd.f32 %v2729_v35, %v2492_v51 }
 0x3e1   : > { %4416 = vmatmul.msk.f32.gmra.mxu2 %vm408_vm1, %v8029_v57 }
 0x3e2   : > { %v2895_v26 = vpop.f32.mrf.mxu0  ;;  %4398 = vmatmul.msk.f32.gmra.mxu1 %vm408_vm1, %v6368_v61  ;;  %v6983_v11 = vadd.f32 %v2889_v43, %v2775_v62 }
 0x3e4   : > { %8030 = vst [vmem:[#allocation46_spill] sm:$0xff] %v6983_v11  ;;  %v2494_v9 = vpop.f32.mrf.mxu2  ;;  %4450 = vmatmul.msk.f32.gmra.mxu3 %vm408_vm1, %v8031_v8  ;;  %v8034_v8 = vld [vmem:[#allocation53_spill] sm:$0xff] }
 0x3e5   : > { %4485 = vmatmul.msk.f32.gmra.mxu0 %vm408_vm1, %v6060_v2  ;;  %v2495_v49 = vadd.f32 %v2494_v9, %v6703_v27  ;;  %v8035_v11 = vld [vmem:[#allocation57_spill] sm:$0xff] }
 0x3e7   : > { %v2732_v33 = vpop.f32.mrf.mxu3  ;;  %v6990_v13 = vpop.f32.mrf.mxu1 }
 0x3e8   : > { %v2776_v51 = vadd.f32 %v2732_v33, %v2495_v49 }
 0x3e9   : > { %4417 = vmatmul.msk.f32.gmra.mxu2 %vm408_vm1, %v8032_v18 }
 0x3ea   : > { %v2898_v35 = vpop.f32.mrf.mxu0  ;;  %4399 = vmatmul.msk.f32.gmra.mxu1 %vm408_vm1, %v6396_v45  ;;  %v6996_v43 = vadd.f32 %v2892_v25, %v2776_v51 }
 0x3ec   : > { %8033 = vst [vmem:[#allocation14_spill] sm:$0xff] %v6996_v43  ;;  %v2497_v62 = vpop.f32.mrf.mxu2  ;;  %4451 = vmatmul.msk.f32.gmra.mxu3 %vm408_vm1, %v8034_v8  ;;  %v8037_v8 = vld [vmem:[#allocation55_spill] sm:$0xff]  ;;  %v8038_v43 = vld [vmem:[#allocation16_spill] sm:$0xff] }
 0x3ed   : > { %4486 = vmatmul.msk.f32.gmra.mxu0 %vm408_vm1, %v7987_v7  ;;  %v2498_v2 = vadd.f32 %v2497_v62, %v6730_v59 }
 0x3ef   : > { %v2735_v27 = vpop.f32.mrf.mxu3  ;;  %v7003_v9 = vpop.f32.mrf.mxu1 }
 0x3f0   : > { %v2777_v49 = vadd.f32 %v2735_v27, %v2498_v2 }
 0x3f1   : > { %4418 = vmatmul.msk.f32.gmra.mxu2 %vm408_vm1, %v8035_v11 }
 0x3f2   : > { %v2901_v33 = vpop.f32.mrf.mxu0  ;;  %4400 = vmatmul.msk.f32.gmra.mxu1 %vm408_vm1, %v6432_v60  ;;  %v7009_v25 = vadd.f32 %v2895_v26, %v2777_v49 }
 0x3f4   : > { %8036 = vst [vmem:[#allocation17_spill] sm:$0xff] %v7009_v25  ;;  %v2500_v51 = vpop.f32.mrf.mxu2  ;;  %4452 = vmatmul.msk.f32.gmra.mxu3 %vm408_vm1, %v8037_v8  ;;  %v8040_v8 = vld [vmem:[#allocation58_spill] sm:$0xff]  ;;  %v8041_v25 = vld [vmem:[#allocation15_spill] sm:$0xff] }
 0x3f5   : > { %4487 = vmatmul.msk.f32.gmra.mxu0 %vm408_vm1, %v7992_v0  ;;  %v2501_v59 = vadd.f32 %v2500_v51, %v6760_v1 }
 0x3f7   : > { %v2738_v7 = vpop.f32.mrf.mxu3  ;;  %v7016_v62 = vpop.f32.mrf.mxu1 }
 0x3f8   : > { %v2778_v2 = vadd.f32 %v2738_v7, %v2501_v59 }
 0x3f9   : > { %4419 = vmatmul.msk.f32.gmra.mxu2 %vm408_vm1, %v8038_v43 }
 0x3fa   : > { %v2904_v27 = vpop.f32.mrf.mxu0  ;;  %4401 = vmatmul.msk.f32.gmra.mxu1 %vm408_vm1, %v6460_v39  ;;  %v7022_v26 = vadd.f32 %v2898_v35, %v2778_v2 }
 0x3fc   : > { %8039 = vst [vmem:[#allocation43_spill] sm:$0xff] %v7022_v26  ;;  %v2503_v49 = vpop.f32.mrf.mxu2  ;;  %4453 = vmatmul.msk.f32.gmra.mxu3 %vm408_vm1, %v8040_v8  ;;  %v8043_v8 = vld [vmem:[#allocation6_spill] sm:$0xff] }
 0x3fd   : > { %4488 = vmatmul.msk.f32.gmra.mxu0 %vm408_vm1, %v6116_v20  ;;  %v2504_v1 = vadd.f32 %v2503_v49, %v6784_v56 }
 0x3ff   : > { %v2741_v0 = vpop.f32.mrf.mxu3  ;;  %v7029_v51 = vpop.f32.mrf.mxu1 }
 0x400   : > { %v2779_v59 = vadd.f32 %v2741_v0, %v2504_v1  ;;  %v8044_v0 = vld [vmem:[#allocation22_spill] sm:$0xff] }
 0x401   : > { %4420 = vmatmul.msk.f32.gmra.mxu2 %vm408_vm1, %v8041_v25 }
 0x402   : > { %v2907_v7 = vpop.f32.mrf.mxu0  ;;  %4402 = vmatmul.msk.f32.gmra.mxu1 %vm408_vm1, %v6771_v29  ;;  %v7035_v35 = vadd.f32 %v2901_v33, %v2779_v59 }
 0x404   : > { %8042 = vst [vmem:[#allocation45_spill] sm:$0xff] %v7035_v35  ;;  %v2506_v2 = vpop.f32.mrf.mxu2  ;;  %4454 = vmatmul.msk.f32.gmra.mxu3 %vm408_vm1, %v8043_v8  ;;  %v8046_v8 = vld [vmem:[#allocation29_spill] sm:$0xff] }
 0x405   : > { %4489 = vmatmul.msk.f32.gmra.mxu0 %vm408_vm1, %v6139_v12  ;;  %v2507_v20 = vadd.f32 %v2506_v2, %v6808_v48 }
 0x407   : > { %v2744_v56 = vpop.f32.mrf.mxu3  ;;  %v7042_v49 = vpop.f32.mrf.mxu1 }
 0x408   : > { %v2780_v1 = vadd.f32 %v2744_v56, %v2507_v20  ;;  %v8048_v56 = vld [vmem:[#allocation21_spill] sm:$0xff] }
 0x409   : > { %4421 = vmatmul.msk.f32.gmra.mxu2 %vm408_vm1, %v8044_v0 }
 0x40a   : > { %v3426_v26 = vpop.f32.mrf.mxu0  ;;  %4403 = vmatmul.msk.f32.gmra.mxu1 %vm408_vm1, %v6793_v22  ;;  %v7048_v33 = vadd.f32 %v2904_v27, %v2780_v1  ;;  %v8049_v1 = vld [vmem:[#allocation18_spill] sm:$0xff] }
 0x40c   : > { %8045 = vst [vmem:[#allocation48_spill] sm:$0xff] %v7048_v33  ;;  %v2509_v59 = vpop.f32.mrf.mxu2  ;;  %4455 = vmatmul.msk.f32.gmra.mxu3 %vm408_vm1, %v8046_v8  ;;  %v3064_v8 = vadd.f32 %v6847_v5, %v8049_v1  ;;  %v8053_v1 = vld [vmem:[#allocation24_spill] sm:$0xff] }
 0x40d   : > { %4490 = vmatmul.msk.f32.gmra.mxu0 %vm408_vm1, %v6164_v15  ;;  %v2510_v12 = vadd.f32 %v2509_v59, %v6830_v50  ;;  %v8050_v15 = vld [vmem:[#allocation8_spill] sm:$0xff] }
 0x40f   : > { %v2747_v48 = vpop.f32.mrf.mxu3  ;;  %v7055_v2 = vpop.f32.mrf.mxu1 }
 0x410   : > { %8047 = vst [vmem:[#allocation47_spill] sm:$0xff] %v7055_v2  ;;  %v2781_v20 = vadd.f32 %v2747_v48, %v2510_v12  ;;  %v8051_v2 = vld [vmem:[#allocation56_spill] sm:$0xff] }
 0x411   : > { %4422 = vmatmul.msk.f32.gmra.mxu2 %vm408_vm1, %v8048_v56 }
 0x412   : > { %4506 = vmatmul.msk.f32.vlgmr.msra.gmra.mxu1 %vm408_vm1, %v8002_v40  ;;  %v7061_v27 = vadd.f32 %v2907_v7, %v2781_v20  ;;  %v3429_v33 = vpop.f32.mrf.mxu0  ;;  %v8052_v40 = vld [vmem:[#allocation25_spill] sm:$0xff] }
 0x413   : > { %v3065_v7 = vadd.f32 %v6860_v3, %v8052_v40  ;;  %v8056_v40 = vld [vmem:[#allocation30_spill] sm:$0xff] }
 0x414   : > { %v3126_v35 = vpop.f32.mrf.mxu2  ;;  %4456 = vmatmul.msk.f32.gmra.mxu3 %vm408_vm1, %v8050_v15 }
 0x415   : > { %4491 = vmatmul.msk.f32.gmra.mxu0 %vm408_vm1, %v6188_v55  ;;  %v3222_v50 = vadd.f32 %v3126_v35, %v3064_v8 }
 0x417   : > { %v7069_v59 = vpop.f32.mrf.mxu1  ;;  %v3276_v12 = vpop.f32.mrf.mxu3 }
 0x418   : > { %v3372_v48 = vadd.f32 %v3276_v12, %v3222_v50  ;;  %v8054_v12 = vld [vmem:[#allocation7_spill] sm:$0xff] }
 0x419   : > { %4423 = vmatmul.msk.f32.gmra.mxu2 %vm408_vm1, %v8051_v2 }
 0x41a   : > { %4507 = vmatmul.msk.f32.gmra.mxu1 %vm408_vm1, %v8005_v10  ;;  %v7075_v5 = vadd.f32 %v3426_v26, %v3372_v48  ;;  %v3432_v35 = vpop.f32.mrf.mxu0  ;;  %v8055_v10 = vld [vmem:[#allocation27_spill] sm:$0xff] }
 0x41b   : > { %v3066_v26 = vadd.f32 %v6873_v14, %v8055_v10  ;;  %v8059_v10 = vld [vmem:[#allocation34_spill] sm:$0xff] }
 0x41c   : > { %v3129_v20 = vpop.f32.mrf.mxu2  ;;  %4457 = vmatmul.msk.f32.gmra.mxu3 %vm408_vm1, %v8053_v1 }
 0x41d   : > { %4492 = vmatmul.msk.f32.gmra.mxu0 %vm408_vm1, %v6214_v6  ;;  %v3223_v55 = vadd.f32 %v3129_v20, %v3065_v7 }
 0x41f   : > { %v7083_v8 = vpop.f32.mrf.mxu1  ;;  %v3279_v15 = vpop.f32.mrf.mxu3 }
 0x420   : > { %v3373_v50 = vadd.f32 %v3279_v15, %v3223_v55  ;;  %v8057_v15 = vld [vmem:[#allocation36_spill] sm:$0xff] }
 0x421   : > { %4424 = vmatmul.msk.f32.gmra.mxu2 %vm408_vm1, %v8054_v12 }
 0x422   : > { %4508 = vmatmul.msk.f32.gmra.mxu1 %vm408_vm1, %v8008_v37  ;;  %v7089_v3 = vadd.f32 %v3429_v33, %v3373_v50  ;;  %v3435_v1 = vpop.f32.mrf.mxu0  ;;  %v8058_v37 = vld [vmem:[#allocation32_spill] sm:$0xff] }
 0x423   : > { %v3067_v33 = vadd.f32 %v6886_v28, %v8058_v37  ;;  %v8062_v37 = vld [vmem:[#allocation59_spill] sm:$0xff] }
 0x424   : > { %v3132_v48 = vpop.f32.mrf.mxu2  ;;  %4458 = vmatmul.msk.f32.gmra.mxu3 %vm408_vm1, %v8056_v40 }
 0x425   : > { %4493 = vmatmul.msk.f32.gmra.mxu0 %vm408_vm1, %v6238_v31  ;;  %v3224_v6 = vadd.f32 %v3132_v48, %v3066_v26 }
 0x427   : > { %v7097_v7 = vpop.f32.mrf.mxu1  ;;  %v3282_v20 = vpop.f32.mrf.mxu3 }
 0x428   : > { %v3374_v55 = vadd.f32 %v3282_v20, %v3224_v6  ;;  %v8060_v6 = vld [vmem:[#allocation61_spill] sm:$0xff] }
 0x429   : > { %4425 = vmatmul.msk.f32.gmra.mxu2 %vm408_vm1, %v8057_v15 }
 0x42a   : > { %4509 = vmatmul.msk.f32.gmra.mxu1 %vm408_vm1, %v8011_v36  ;;  %v7103_v14 = vadd.f32 %v3432_v35, %v3374_v55  ;;  %v3438_v36 = vpop.f32.mrf.mxu0  ;;  %v8061_v35 = vld [vmem:[#allocation31_spill] sm:$0xff] }
 0x42b   : > { %v3068_v20 = vadd.f32 %v6899_v42, %v8061_v35  ;;  %v8064_v42 = vld [vmem:[#allocation60_spill] sm:$0xff]  ;;  %v8065_v35 = vld [vmem:[#allocation62_spill] sm:$0xff] }
 0x42c   : > { %v3135_v50 = vpop.f32.mrf.mxu2  ;;  %4459 = vmatmul.msk.f32.gmra.mxu3 %vm408_vm1, %v8059_v10 }
 0x42d   : > { %4494 = vmatmul.msk.f32.gmra.mxu0 %vm408_vm1, %v6264_v16  ;;  %v3225_v31 = vadd.f32 %v3135_v50, %v3067_v33 }
 0x42f   : > { %v7111_v26 = vpop.f32.mrf.mxu1  ;;  %v3285_v48 = vpop.f32.mrf.mxu3 }
 0x430   : > { %v3375_v40 = vadd.f32 %v3285_v48, %v3225_v31  ;;  %v8063_v31 = vld [vmem:[#allocation64_spill] sm:$0xff] }
 0x431   : > { %4426 = vmatmul.msk.f32.gmra.mxu2 %vm408_vm1, %v8060_v6 }
 0x432   : > { %4510 = vmatmul.msk.f32.gmra.mxu1 %vm408_vm1, %v8014_v17  ;;  %v7117_v28 = vadd.f32 %v3435_v1, %v3375_v40  ;;  %v3069_v1 = vadd.f32 %v6912_v44, %v8064_v42  ;;  %v3441_v48 = vpop.f32.mrf.mxu0 }
 0x434   : > { %v3138_v55 = vpop.f32.mrf.mxu2  ;;  %4460 = vmatmul.msk.f32.gmra.mxu3 %vm408_vm1, %v8062_v37 }
 0x435   : > { %4495 = vmatmul.msk.f32.gmra.mxu0 %vm408_vm1, %v6288_v34  ;;  %v3226_v16 = vadd.f32 %v3138_v55, %v3068_v20 }
 0x437   : > { %v7125_v33 = vpop.f32.mrf.mxu1  ;;  %v3288_v50 = vpop.f32.mrf.mxu3 }
 0x438   : > { %v3376_v10 = vadd.f32 %v3288_v50, %v3226_v16  ;;  %v8066_v16 = vld [vmem:[#allocation67_spill] sm:$0xff] }
 0x439   : > { %4427 = vmatmul.msk.f32.gmra.mxu2 %vm408_vm1, %v8063_v31 }
 0x43a   : > { %4511 = vmatmul.msk.f32.gmra.mxu1 %vm408_vm1, %v8017_v32  ;;  %v7131_v17 = vadd.f32 %v3438_v36, %v3376_v10  ;;  %v8067_v32 = vld [vmem:[#allocation63_spill] sm:$0xff]  ;;  %v3444_v10 = vpop.f32.mrf.mxu0 }
 0x43b   : > { %v3070_v36 = vadd.f32 %v6925_v23, %v8067_v32 }
 0x43c   : > { %v3141_v40 = vpop.f32.mrf.mxu2  ;;  %4461 = vmatmul.msk.f32.gmra.mxu3 %vm408_vm1, %v8065_v35  ;;  %v8068_v35 = vld [vmem:[#allocation70_spill] sm:$0xff] }
 0x43d   : > { %4496 = vmatmul.msk.f32.gmra.mxu0 %vm408_vm1, %v6314_v58  ;;  %v3227_v34 = vadd.f32 %v3141_v40, %v3069_v1 }
 0x43f   : > { %v7139_v20 = vpop.f32.mrf.mxu1  ;;  %v3291_v55 = vpop.f32.mrf.mxu3 }
 0x440   : > { %v3377_v37 = vadd.f32 %v3291_v55, %v3227_v34 }
 0x441   : > { %4428 = vmatmul.msk.f32.gmra.mxu2 %vm408_vm1, %v8066_v16 }
 0x442   : > { %4512 = vmatmul.msk.f32.gmra.mxu1 %vm408_vm1, %v8020_v52  ;;  %v7145_v44 = vadd.f32 %v3441_v48, %v3377_v37  ;;  %v8069_v52 = vld [vmem:[#allocation66_spill] sm:$0xff]  ;;  %v3447_v32 = vpop.f32.mrf.mxu0 }
 0x444   : > { %v3144_v50 = vpop.f32.mrf.mxu2  ;;  %4462 = vmatmul.msk.f32.gmra.mxu3 %vm408_vm1, %v6649_v24  ;;  %v3071_v24 = vadd.f32 %v6938_v47, %v8069_v52  ;;  %v7263_v52 = vld [vmem:[%s7603_s6] ss:$0 sm:$0xff] }
 0x445   : > { %4497 = vmatmul.msk.f32.gmra.mxu0 %vm408_vm1, %v6338_v19  ;;  %v3228_v58 = vadd.f32 %v3144_v50, %v3070_v36  ;;  %v8070_v36 = vld [vmem:[#allocation50_spill] sm:$0xff] }
 0x447   : > { %v7153_v42 = vpop.f32.mrf.mxu1  ;;  %v3294_v1 = vpop.f32.mrf.mxu3 }
 0x448   : > { %v3378_v40 = vadd.f32 %v3294_v1, %v3228_v58 }
 0x449   : > { %4429 = vmatmul.msk.f32.gmra.mxu2 %vm408_vm1, %v8068_v35 }
 0x44a   : > { %4513 = vmatmul.msk.f32.gmra.mxu1 %vm408_vm1, %v8025_v21  ;;  %v7159_v23 = vadd.f32 %v3444_v10, %v3378_v40 }
 0x44c   : > { %v3147_v48 = vpop.f32.mrf.mxu2  ;;  %4463 = vmatmul.msk.f32.gmra.mxu3 %vm408_vm1, %v6671_v38  ;;  %v8071_v38 = vld [vmem:[#allocation38_spill] sm:$0xff] }
 0x44d   : > { %4498 = vmatmul.msk.f32.gmra.mxu0 %vm408_vm1, %v6368_v61  ;;  %v3229_v19 = vadd.f32 %v3147_v48, %v3071_v24 }
 0x44f   : > { %v7167_v34 = vpop.f32.mrf.mxu1  ;;  %v3297_v55 = vpop.f32.mrf.mxu3 }
 0x450   : > { %v3379_v37 = vadd.f32 %v3297_v55, %v3229_v19  ;;  %v4587_v19 = vld [vmem:[%s4711_s16] sm:$0xff] }
 0x451   : > { %4430 = vmatmul.msk.f32.gmra.mxu2 %vm408_vm1, %v8070_v36 }
 0x452   : > { %4514 = vmatmul.msk.f32.gmra.mxu1 %vm408_vm1, %v8029_v57  ;;  %v7173_v21 = vadd.f32 %v3447_v32, %v3379_v37  ;;  %v8074_v57 = vld [vmem:[#allocation75_spill] sm:$0xff] }
 0x454   : > { %4464 = vmatmul.msk.f32.gmra.mxu3 %vm408_vm1, %v6693_v4  ;;  %v7269_v48 = vpop.f32.mrf.mxu2 }
 0x455   : > { %4499 = vmatmul.msk.f32.gmra.mxu0 %vm408_vm1, %v6396_v45  ;;  %v8072_v45 = vld [vmem:[#allocation71_spill] sm:$0xff] }
 0x457   : > { %v7179_v61 = vpop.f32.mrf.mxu1 }
 0x459   : > { %4431 = vmatmul.msk.f32.gmra.mxu2 %vm408_vm1, %v8071_v38 }
 0x45a   : > { %4515 = vmatmul.msk.f32.gmra.mxu1 %vm408_vm1, %v8032_v18 }
 0x45c   : > { %4465 = vmatmul.msk.f32.gmra.mxu3 %vm408_vm1, %v6719_v46  ;;  %v8073_v46 = vld [vmem:[#allocation73_spill] sm:$0xff] }
 0x45d   : > { %4500 = vmatmul.msk.f32.gmra.mxu0 %vm408_vm1, %v6432_v60 }
 0x45f   : > { %v7189_v47 = vpop.f32.mrf.mxu1 }
 0x461   : > { %4432 = vmatmul.msk.f32.gmra.mxu2 %vm408_vm1, %v6774_v41 }
 0x462   : > { %4516 = vmatmul.msk.f32.gmra.mxu1 %vm408_vm1, %v8035_v11  ;;  %v3097_v11 = vrot.slane %v6793_v22, 1 }
 0x464   : > { %4466 = vmatmul.msk.f32.gmra.mxu3 %vm408_vm1, %v8072_v45  ;;  %v7280_v45 = vpop.f32.mrf.mxu3 }
 0x465   : > { %4501 = vmatmul.msk.f32.gmra.mxu0 %vm408_vm1, %v6460_v39  ;;  %v8075_v39 = vld [vmem:[#allocation74_spill] sm:$0xff] }
 0x467   : > { %v7199_v4 = vpop.f32.mrf.mxu1 }
 0x469   : > { %4433 = vmatmul.msk.f32.gmra.mxu2 %vm408_vm1, %v8073_v46 }
 0x46a   : > { %4517 = vmatmul.msk.f32.gmra.mxu1 %vm408_vm1, %v8038_v43  ;;  %v8077_v43 = vmov 0.0  }
 0x46c   : > { %4467 = vmatmul.msk.f32.gmra.mxu3 %vm408_vm1, %v6777_v63  ;;  %v8076_v63 = vld [vmem:[#allocation76_spill] sm:$0xff] }
 0x46d   : > { %4502 = vmatmul.msk.f32.gmra.mxu0 %vm408_vm1, %v6771_v29 }
 0x46f   : > { %v7209_v60 = vpop.f32.mrf.mxu1 }
 0x471   : > { %4434 = vmatmul.msk.f32.gmra.mxu2 %vm408_vm1, %v8074_v57 }
 0x472   : > { %4518 = vmatmul.msk.f32.gmra.mxu1 %vm408_vm1, %v8041_v25  ;;  %v3096_v25 = vrot.slane %v6771_v29, 1  ;;  %v8079_v29 = vld [vmem:[#allocation28_spill] sm:$0xff] }
 0x473   : > { %v7246_v10 = vsel %vm766_vm3, %v3097_v11, %v8079_v29 }
 0x474   : > { %4468 = vmatmul.msk.f32.gmra.mxu3 %vm408_vm1, %v8075_v39  ;;  %v7233_v58 = vsel %vm766_vm3, %v3096_v25, %v3097_v11  ;;  %v4588_v11 = vld [vmem:[%s4711_s16 + $0x8] sm:$0xff]  ;;  %v7291_v25 = vpop.f32.mrf.mxu2 }
 0x475   : > { %4503 = vmatmul.msk.f32.gmra.mxu0 %vm408_vm1, %v6793_v22 }
 0x477   : > { %v7219_v18 = vpop.f32.mrf.mxu1 }
 0x479   : > { %4435 = vmatmul.msk.f32.gmra.mxu2 %vm408_vm1, %v6840_v54 }
 0x47a   : > { %4519 = vmatmul.msk.f32.gmra.mxu1 %vm408_vm1, %v8044_v0  ;;  %v8078_v0 = vld [vmem:[#allocation2_spill] sm:$0xff] }
 0x47c   : > { %4469 = vmatmul.msk.f32.gmra.mxu3 %vm408_vm1, %v8076_v63  ;;  %v7288_v63 = vpop.f32.mrf.mxu0 }
 0x47d   : > { %3515 = vmatmul.f32.gmra.mxu0 %v8077_v43 }
 0x47f   : > { %v7230_v50 = vpop.f32.mrf.mxu1 }
 0x481   : > { %4436 = vmatmul.msk.f32.gmra.mxu2 %vm408_vm1, %v7233_v58 }
 0x482   : > { %4520 = vmatmul.msk.f32.gmra.mxu1 %vm408_vm1, %v8048_v56  ;;  %v7257_v56 = vld [vmem:[%s7602_s5] ss:$0 sm:$0xff] }
 0x484   : > { %4470 = vmatmul.msk.f32.gmra.mxu3 %vm408_vm1, %v8078_v0 }
 0x485   : > { %3518 = vmatmul.f32.gmra.mxu0 %v8077_v43 }
 0x487   : > { %v7242_v22 = vpop.f32.mrf.mxu1 }
 0x489   : > { %4437 = vmatmul.msk.f32.gmra.mxu2 %vm408_vm1, %v7246_v10 }
 0x48a   : > { %4521 = vmatmul.msk.f32.gmra.mxu1 %vm408_vm1, %v8051_v2 }
 0x48c   : > { %4471 = vmatmul.msk.f32.gmra.mxu3 %vm408_vm1, %v8078_v0 }
 0x48f   : > { %v3576_v1 = vpop.f32.mrf.mxu1 }
 0x490   : > { %v3672_v40 = vadd.f32 %v3576_v1, %v7075_v5 }
 0x492   : > { %v3708_v24 = vmul.f32 %v7257_v56, %v3672_v40  ;;  %4522 = vmatmul.msk.f32.gmra.mxu1 %vm408_vm1, %v8054_v12 }
 0x494   : > { %v3744_v2 = vadd.f32 %v7263_v52, %v3708_v24 }
 0x496   : > { %v3776_v55 = vadd.f32 %v4587_v19, %v3744_v2  ;;  %v4589_v2 = vld [vmem:[%s4711_s16 + $0x10] sm:$0xff] }
 0x497   : > { %v3579_v5 = vpop.f32.mrf.mxu1 }
 0x498   : > { %v3808_v37 = vmax.f32 %v3776_v55, 0.0  ;;  %v3673_v32 = vadd.f32 %v3579_v5, %v7089_v3  ;;  %v7303_v5 = vpop.f32.mrf.mxu0 }
 0x49a   : > { %3840 = vst.msk [vmem:[%s7277_s19] sm:$0xff] %vm408_vm1, %v3808_v37  ;;  %v3709_v12 = vmul.f32 %v7257_v56, %v3673_v32  ;;  %4523 = vmatmul.msk.f32.gmra.mxu1 %vm408_vm1, %v8057_v15  ;;  %v7299_v15 = vpop.f32.mrf.mxu3  ;;  %v7306_v32 = vpop.f32.mrf.mxu2 }
 0x49c   : > { %v3745_v39 = vadd.f32 %v7263_v52, %v3709_v12 }
 0x49e   : > { %v3777_v43 = vadd.f32 %v4588_v11, %v3745_v39  ;;  %v4590_v11 = vld [vmem:[%s4711_s16 + $0x18] sm:$0xff] }
 0x49f   : > { %v3582_v3 = vpop.f32.mrf.mxu1 }
 0x4a0   : > { %v3809_v0 = vmax.f32 %v3777_v43, 0.0  ;;  %v3674_v1 = vadd.f32 %v3582_v3, %v7103_v14 }
 0x4a2   : > { %3841 = vst.msk [vmem:[%s7277_s19 + $0x8] sm:$0xff] %vm408_vm1, %v3809_v0  ;;  %v3710_v40 = vmul.f32 %v7257_v56, %v3674_v1  ;;  %4524 = vmatmul.msk.f32.gmra.mxu1 %vm408_vm1, %v8060_v6  ;;  %v7314_v39 = vpop.f32.mrf.mxu3  ;;  %v7318_v1 = vpop.f32.mrf.mxu0 }
 0x4a4   : > { %v3746_v24 = vadd.f32 %v7263_v52, %v3710_v40 }
 0x4a6   : > { %v3778_v19 = vadd.f32 %v4589_v2, %v3746_v24  ;;  %v4591_v2 = vld [vmem:[%s4711_s16 + $0x20] sm:$0xff] }
 0x4a7   : > { %v3585_v55 = vpop.f32.mrf.mxu1 }
 0x4a8   : > { %v3810_v37 = vmax.f32 %v3778_v19, 0.0  ;;  %v3675_v14 = vadd.f32 %v3585_v55, %v7117_v28 }
 0x4aa   : > { %3842 = vst.msk [vmem:[%s7277_s19 + $0x10] sm:$0xff] %vm408_vm1, %v3810_v37  ;;  %v3711_v6 = vmul.f32 %v7257_v56, %v3675_v14  ;;  %4525 = vmatmul.msk.f32.gmra.mxu1 %vm408_vm1, %v8063_v31  ;;  %v7325_v31 = vpop.f32.mrf.mxu2  ;;  %v7329_v55 = vpop.f32.mrf.mxu3 }
 0x4ac   : > { %v3747_v12 = vadd.f32 %v7263_v52, %v3711_v6 }
 0x4ae   : > { %v3779_v43 = vadd.f32 %v4590_v11, %v3747_v12 }
 0x4af   : > { %v3588_v3 = vpop.f32.mrf.mxu1 }
 0x4b0   : > { %v3811_v0 = vmax.f32 %v3779_v43, 0.0  ;;  %v3676_v28 = vadd.f32 %v3588_v3, %v7131_v17  ;;  %v4592_v43 = vld [vmem:[%s4711_s16 + $0x28] sm:$0xff] }
 0x4b2   : > { %3843 = vst.msk [vmem:[%s7277_s19 + $0x18] sm:$0xff] %vm408_vm1, %v3811_v0  ;;  %v3712_v40 = vmul.f32 %v7257_v56, %v3676_v28  ;;  %4526 = vmatmul.msk.f32.gmra.mxu1 %vm408_vm1, %v8066_v16  ;;  %v7337_v16 = vpop.f32.mrf.mxu0  ;;  %v7340_v11 = vpop.f32.mrf.mxu2 }
 0x4b4   : > { %v3748_v24 = vadd.f32 %v7263_v52, %v3712_v40  ;;  %v7344_v40 = vpop.f32.mrf.mxu3 }
 0x4b6   : > { %v3780_v19 = vadd.f32 %v4591_v2, %v3748_v24  ;;  %v8080_v24 = vld [vmem:[#allocation69_spill] sm:$0xff] }
 0x4b7   : > { %v3591_v17 = vpop.f32.mrf.mxu1  ;;  %v3072_v2 = vadd.f32 %v6951_v53, %v8080_v24 }
 0x4b8   : > { %v3812_v37 = vmax.f32 %v3780_v19, 0.0  ;;  %v3677_v14 = vadd.f32 %v3591_v17, %v7145_v44 }
 0x4b9   : > { %v3230_v17 = vadd.f32 %v7269_v48, %v3072_v2 }
 0x4ba   : > { %3844 = vst.msk [vmem:[%s7277_s19 + $0x20] sm:$0xff] %vm408_vm1, %v3812_v37  ;;  %v3713_v6 = vmul.f32 %v7257_v56, %v3677_v14  ;;  %4527 = vmatmul.msk.f32.gmra.mxu1 %vm408_vm1, %v8068_v35  ;;  %v7355_v37 = vpop.f32.mrf.mxu0 }
 0x4bc   : > { %v3749_v12 = vadd.f32 %v7263_v52, %v3713_v6  ;;  %v7358_v6 = vpop.f32.mrf.mxu2  ;;  %v7367_v48 = vpop.f32.mrf.mxu3 }
 0x4be   : > { %v3781_v3 = vadd.f32 %v4592_v43, %v3749_v12 }
 0x4bf   : > { %v3594_v0 = vpop.f32.mrf.mxu1 }
 0x4c0   : > { %v3813_v28 = vmax.f32 %v3781_v3, 0.0  ;;  %v3678_v44 = vadd.f32 %v3594_v0, %v7159_v23  ;;  %v4593_v23 = vld [vmem:[%s4711_s16 + $0x30] sm:$0xff]  ;;  %v8081_v0 = vld [vmem:[#allocation9_spill] sm:$0xff] }
 0x4c2   : > { %3845 = vst.msk [vmem:[%s7277_s19 + $0x28] sm:$0xff] %vm408_vm1, %v3813_v28  ;;  %v3714_v35 = vmul.f32 %v7257_v56, %v3678_v44  ;;  %4528 = vmatmul.msk.f32.gmra.mxu1 %vm408_vm1, %v8070_v36  ;;  %v3380_v36 = vadd.f32 %v7280_v45, %v3230_v17  ;;  %v8082_v28 = vld [vmem:[#allocation41_spill] sm:$0xff]  ;;  %v7375_v17 = vpop.f32.mrf.mxu0 }
 0x4c3   : > { %v3073_v44 = vadd.f32 %v8082_v28, %v8081_v0  ;;  %v4595_v0 = vld [vmem:[%s4711_s16 + $0x40] sm:$0xff] }
 0x4c4   : > { %v3750_v19 = vadd.f32 %v7263_v52, %v3714_v35  ;;  %v3530_v2 = vadd.f32 %v7288_v63, %v3380_v36  ;;  %v7388_v36 = vpop.f32.mrf.mxu3 }
 0x4c5   : > { %v3231_v24 = vadd.f32 %v7291_v25, %v3073_v44  ;;  %v8083_v25 = vld [vmem:[#allocation33_spill] sm:$0xff] }
 0x4c6   : > { %v3782_v14 = vadd.f32 %v4593_v23, %v3750_v19  ;;  %v3074_v63 = vadd.f32 %v6977_v30, %v8083_v25 }
 0x4c7   : > { %v3597_v12 = vpop.f32.mrf.mxu1 }
 0x4c8   : > { %v3814_v43 = vmax.f32 %v3782_v14, 0.0  ;;  %v3679_v3 = vadd.f32 %v3597_v12, %v7173_v21  ;;  %v4594_v21 = vld [vmem:[%s4711_s16 + $0x38] sm:$0xff]  ;;  %v3381_v12 = vadd.f32 %v7299_v15, %v3231_v24 }
 0x4ca   : > { %3846 = vst.msk [vmem:[%s7277_s19 + $0x30] sm:$0xff] %vm408_vm1, %v3814_v43  ;;  %v3715_v53 = vmul.f32 %v7257_v56, %v3679_v3  ;;  %4529 = vmatmul.msk.f32.gmra.mxu1 %vm408_vm1, %v8071_v38  ;;  %v7377_v38 = vpop.f32.mrf.mxu2  ;;  %v3531_v28 = vadd.f32 %v7303_v5, %v3381_v12 }
 0x4cc   : > { %v3751_v35 = vadd.f32 %v7263_v52, %v3715_v53  ;;  %v3232_v53 = vadd.f32 %v7306_v32, %v3074_v63  ;;  %v7409_v12 = vpop.f32.mrf.mxu3 }
 0x4ce   : > { %v3783_v45 = vadd.f32 %v4594_v21, %v3751_v35  ;;  %v3382_v21 = vadd.f32 %v7314_v39, %v3232_v53  ;;  %v4596_v39 = vld [vmem:[%s4711_s16 + $0x48] sm:$0xff] }
 0x4cf   : > { %v3600_v19 = vpop.f32.mrf.mxu1 }
 0x4d0   : > { %v3815_v23 = vmax.f32 %v3783_v45, 0.0  ;;  %v3680_v14 = vadd.f32 %v3600_v19, %v3530_v2  ;;  %v8084_v45 = vld [vmem:[#allocation26_spill] sm:$0xff] }
 0x4d1   : > { %v3075_v5 = vadd.f32 %v6990_v13, %v8084_v45 }
 0x4d2   : > { %3847 = vst.msk [vmem:[%s7277_s19 + $0x38] sm:$0xff] %vm408_vm1, %v3815_v23  ;;  %v3716_v43 = vmul.f32 %v7257_v56, %v3680_v14  ;;  %4530 = vmatmul.msk.f32.gmra.mxu1 %vm408_vm1, %v6774_v41  ;;  %v7394_v41 = vpop.f32.mrf.mxu0  ;;  %v7401_v32 = vpop.f32.mrf.mxu2  ;;  %v3532_v14 = vadd.f32 %v7318_v1, %v3382_v21 }
 0x4d3   : > { %v3233_v19 = vadd.f32 %v7325_v31, %v3075_v5  ;;  %v8085_v31 = vld [vmem:[#allocation72_spill] sm:$0xff] }
 0x4d4   : > { %v3752_v3 = vadd.f32 %v7263_v52, %v3716_v43 }
 0x4d6   : > { %v3784_v15 = vadd.f32 %v4595_v0, %v3752_v3  ;;  %v3076_v3 = vadd.f32 %v7003_v9, %v8085_v31  ;;  %v4599_v31 = vld [vmem:[%s4711_s16 + $0x60] sm:$0xff] }
 0x4d7   : > { %v3603_v44 = vpop.f32.mrf.mxu1 }
 0x4d8   : > { %v3816_v35 = vmax.f32 %v3784_v15, 0.0  ;;  %v3681_v24 = vadd.f32 %v3603_v44, %v3531_v28  ;;  %v3234_v15 = vadd.f32 %v7340_v11, %v3076_v3  ;;  %v8086_v11 = vld [vmem:[#allocation35_spill] sm:$0xff] }
 0x4d9   : > { %v3077_v45 = vadd.f32 %v7016_v62, %v8086_v11 }
 0x4da   : > { %3848 = vst.msk [vmem:[%s7277_s19 + $0x40] sm:$0xff] %vm408_vm1, %v3816_v35  ;;  %v3717_v30 = vmul.f32 %v7257_v56, %v3681_v24  ;;  %4531 = vmatmul.msk.f32.gmra.mxu1 %vm408_vm1, %v8073_v46  ;;  %v3383_v46 = vadd.f32 %v7329_v55, %v3233_v19  ;;  %v7419_v53 = vpop.f32.mrf.mxu0  ;;  %v3174_v0 = vpop.f32.mrf.mxu2  ;;  %v4597_v55 = vld [vmem:[%s4711_s16 + $0x50] sm:$0xff]  ;;  %v4598_v19 = vld [vmem:[%s4711_s16 + $0x58] sm:$0xff] }
 0x4dc   : > { %v3753_v2 = vadd.f32 %v7263_v52, %v3717_v30  ;;  %v3533_v44 = vadd.f32 %v7337_v16, %v3383_v46  ;;  %v3324_v30 = vpop.f32.mrf.mxu3  ;;  %v3235_v16 = vadd.f32 %v7358_v6, %v3077_v45 }
 0x4de   : > { %v3785_v23 = vadd.f32 %v4596_v39, %v3753_v2 }
 0x4df   : > { %v3606_v43 = vpop.f32.mrf.mxu1 }
 0x4e0   : > { %v3817_v25 = vmax.f32 %v3785_v23, 0.0  ;;  %v3682_v63 = vadd.f32 %v3606_v43, %v3532_v14 }
 0x4e2   : > { %3849 = vst.msk [vmem:[%s7277_s19 + $0x48] sm:$0xff] %vm408_vm1, %v3817_v25  ;;  %v3718_v13 = vmul.f32 %v7257_v56, %v3682_v63  ;;  %4532 = vmatmul.msk.f32.gmra.mxu1 %vm408_vm1, %v8074_v57  ;;  %v3384_v57 = vadd.f32 %v7344_v40, %v3234_v15  ;;  %v7435_v2 = vpop.f32.mrf.mxu0  ;;  %v3177_v23 = vpop.f32.mrf.mxu2  ;;  %v8087_v63 = vld [vmem:[#allocation5_spill] sm:$0xff] }
 0x4e3   : > { %v3078_v46 = vadd.f32 %v7029_v51, %v8087_v63 }
 0x4e4   : > { %v3754_v1 = vadd.f32 %v7263_v52, %v3718_v13  ;;  %v3534_v39 = vadd.f32 %v7355_v37, %v3384_v57  ;;  %v3327_v6 = vpop.f32.mrf.mxu3  ;;  %v4600_v57 = vld [vmem:[%s4711_s16 + $0x68] sm:$0xff] }
 0x4e5   : > { %v3236_v13 = vadd.f32 %v7377_v38, %v3078_v46  ;;  %v8088_v38 = vld [vmem:[#allocation10_spill] sm:$0xff] }
 0x4e6   : > { %v3786_v28 = vadd.f32 %v4597_v55, %v3754_v1 }
 0x4e7   : > { %v3609_v35 = vpop.f32.mrf.mxu1 }
 0x4e8   : > { %v3818_v24 = vmax.f32 %v3786_v28, 0.0  ;;  %v3683_v21 = vadd.f32 %v3609_v35, %v3533_v44  ;;  %v3079_v35 = vadd.f32 %v7042_v49, %v8088_v38 }
 0x4ea   : > { %3850 = vst.msk [vmem:[%s7277_s19 + $0x50] sm:$0xff] %vm408_vm1, %v3818_v24  ;;  %v3719_v9 = vmul.f32 %v7257_v56, %v3683_v21  ;;  %4533 = vmatmul.msk.f32.gmra.mxu1 %vm408_vm1, %v6840_v54  ;;  %v3385_v54 = vadd.f32 %v7367_v48, %v3235_v16  ;;  %v3477_v15 = vpop.f32.mrf.mxu0  ;;  %v3180_v44 = vpop.f32.mrf.mxu2  ;;  %v3237_v21 = vadd.f32 %v7401_v32, %v3079_v35  ;;  %v8089_v32 = vld [vmem:[#allocation19_spill] sm:$0xff] }
 0x4ec   : > { %v3755_v5 = vadd.f32 %v7263_v52, %v3719_v9  ;;  %v3535_v48 = vadd.f32 %v7375_v17, %v3385_v54  ;;  %v3330_v24 = vpop.f32.mrf.mxu3  ;;  %v3387_v16 = vadd.f32 %v7409_v12, %v3237_v21 }
 0x4ee   : > { %v3787_v40 = vadd.f32 %v4598_v19, %v3755_v5  ;;  %v3537_v12 = vadd.f32 %v7419_v53, %v3387_v16 }
 0x4ef   : > { %v3612_v14 = vpop.f32.mrf.mxu1 }
 0x4f0   : > { %v3819_v43 = vmax.f32 %v3787_v40, 0.0  ;;  %v3684_v25 = vadd.f32 %v3612_v14, %v3534_v39  ;;  %v8090_v40 = vld [vmem:[#allocation47_spill] sm:$0xff] }
 0x4f1   : > { %v3080_v39 = vadd.f32 %v8090_v40, %v8089_v32 }
 0x4f2   : > { %3851 = vst.msk [vmem:[%s7277_s19 + $0x58] sm:$0xff] %vm408_vm1, %v3819_v43  ;;  %v3720_v62 = vmul.f32 %v7257_v56, %v3684_v25  ;;  %4534 = vmatmul.msk.f32.gmra.mxu1 %vm408_vm1, %v7233_v58  ;;  %v3386_v58 = vadd.f32 %v7388_v36, %v3236_v13  ;;  %v3480_v19 = vpop.f32.mrf.mxu0  ;;  %v4601_v43 = vld [vmem:[%s4711_s16 + $0x70] sm:$0xff] }
 0x4f3   : > { %v3238_v14 = vadd.f32 %v3174_v0, %v3080_v39 }
 0x4f4   : > { %v3756_v37 = vadd.f32 %v7263_v52, %v3720_v62  ;;  %v3536_v36 = vadd.f32 %v7394_v41, %v3386_v58  ;;  %v3333_v54 = vpop.f32.mrf.mxu3 }
 0x4f6   : > { %v3788_v3 = vadd.f32 %v4599_v31, %v3756_v37  ;;  %v3388_v37 = vadd.f32 %v3324_v30, %v3238_v14  ;;  %v8091_v31 = vld [vmem:[#allocation37_spill] sm:$0xff]  ;;  %v4604_v14 = vld [vmem:[%s4711_s16 + $0x88] sm:$0xff] }
 0x4f7   : > { %v3615_v1 = vpop.f32.mrf.mxu1  ;;  %v3081_v0 = vadd.f32 %v7069_v59, %v8091_v31 }
 0x4f8   : > { %v3820_v55 = vmax.f32 %v3788_v3, 0.0  ;;  %v3685_v28 = vadd.f32 %v3615_v1, %v3535_v48  ;;  %v3538_v30 = vadd.f32 %v7435_v2, %v3388_v37 }
 0x4f9   : > { %v3239_v1 = vadd.f32 %v3177_v23, %v3081_v0 }
 0x4fa   : > { %3852 = vst.msk [vmem:[%s7277_s19 + $0x60] sm:$0xff] %vm408_vm1, %v3820_v55  ;;  %v3721_v51 = vmul.f32 %v7257_v56, %v3685_v28  ;;  %4535 = vmatmul.msk.f32.gmra.mxu1 %vm408_vm1, %v7246_v10  ;;  %v3183_v10 = vpop.f32.mrf.mxu2  ;;  %v3483_v3 = vpop.f32.mrf.mxu0  ;;  %v4602_v55 = vld [vmem:[%s4711_s16 + $0x78] sm:$0xff] }
 0x4fc   : > { %v3757_v17 = vadd.f32 %v7263_v52, %v3721_v51  ;;  %v3336_v35 = vpop.f32.mrf.mxu3 }
 0x4fe   : > { %v3789_v9 = vadd.f32 %v4600_v57, %v3757_v17  ;;  %v3389_v17 = vadd.f32 %v3327_v6, %v3239_v1 }
 0x4ff   : > { %v3618_v11 = vpop.f32.mrf.mxu1 }
 0x500   : > { %v3821_v45 = vmax.f32 %v3789_v9, 0.0  ;;  %v3686_v5 = vadd.f32 %v3618_v11, %v3536_v36  ;;  %v4603_v36 = vld [vmem:[%s4711_s16 + $0x80] sm:$0xff]  ;;  %v3539_v11 = vadd.f32 %v3477_v15, %v3389_v17 }
 0x502   : > { %3853 = vst.msk [vmem:[%s7277_s19 + $0x68] sm:$0xff] %vm408_vm1, %v3821_v45  ;;  %v3722_v49 = vmul.f32 %v7257_v56, %v3686_v5  ;;  %4536 = vmatmul.msk.f32.gmra.mxu1 %vm408_vm1, %v8079_v29  ;;  %v3186_v53 = vpop.f32.mrf.mxu2  ;;  %v3486_v9 = vpop.f32.mrf.mxu0 }
 0x504   : > { %v3758_v41 = vadd.f32 %v7263_v52, %v3722_v49  ;;  %v3339_v40 = vpop.f32.mrf.mxu3 }
 0x506   : > { %v3790_v25 = vadd.f32 %v4601_v43, %v3758_v41 }
 0x507   : > { %v3621_v62 = vpop.f32.mrf.mxu1 }
 0x508   : > { %v3822_v63 = vmax.f32 %v3790_v25, 0.0  ;;  %v3687_v46 = vadd.f32 %v3621_v62, %v3537_v12 }
 0x50a   : > { %3854 = vst.msk [vmem:[%s7277_s19 + $0x70] sm:$0xff] %vm408_vm1, %v3822_v63  ;;  %v3723_v13 = vmul.f32 %v7257_v56, %v3687_v46  ;;  %4537 = vmatmul.msk.f32.gmra.mxu1 %vm408_vm1, %v8079_v29  ;;  %v8092_v29 = vld [vmem:[#allocation40_spill] sm:$0xff]  ;;  %v3189_v45 = vpop.f32.mrf.mxu2  ;;  %v3489_v12 = vpop.f32.mrf.mxu0 }
 0x50b   : > { %v3082_v21 = vadd.f32 %v7083_v8, %v8092_v29  ;;  %v8093_v8 = vld [vmem:[#allocation13_spill] sm:$0xff] }
 0x50c   : > { %v3759_v48 = vadd.f32 %v7263_v52, %v3723_v13  ;;  %v3083_v39 = vadd.f32 %v7097_v7, %v8093_v8  ;;  %v8094_v13 = vld [vmem:[#allocation42_spill] sm:$0xff]  ;;  %v3342_v31 = vpop.f32.mrf.mxu3  ;;  %v4606_v29 = vld [vmem:[%s4711_s16 + $0x98] sm:$0xff] }
 0x50d   : > { %v3240_v23 = vadd.f32 %v3180_v44, %v3082_v21  ;;  %v3084_v7 = vadd.f32 %v7111_v26, %v8094_v13  ;;  %v8095_v26 = vld [vmem:[#allocation11_spill] sm:$0xff] }
 0x50e   : > { %v3791_v28 = vadd.f32 %v4602_v55, %v3759_v48  ;;  %v3241_v41 = vadd.f32 %v3183_v10, %v3083_v39  ;;  %v3085_v17 = vadd.f32 %v7125_v33, %v8095_v26 }
 0x50f   : > { %v3624_v58 = vpop.f32.mrf.mxu1  ;;  %v3390_v6 = vadd.f32 %v3330_v24, %v3240_v23  ;;  %v3242_v0 = vadd.f32 %v3186_v53, %v3084_v7 }
 0x510   : > { %v3823_v51 = vmax.f32 %v3791_v28, 0.0  ;;  %v3688_v38 = vadd.f32 %v3624_v58, %v3538_v30  ;;  %v3391_v46 = vadd.f32 %v3333_v54, %v3241_v41  ;;  %v3243_v53 = vadd.f32 %v3189_v45, %v3085_v17 }
 0x511   : > { %v3540_v43 = vadd.f32 %v3480_v19, %v3390_v6  ;;  %v4605_v19 = vld [vmem:[%s4711_s16 + $0x90] sm:$0xff]  ;;  %v3392_v58 = vadd.f32 %v3336_v35, %v3242_v0 }
 0x512   : > { %3855 = vst.msk [vmem:[%s7277_s19 + $0x78] sm:$0xff] %vm408_vm1, %v3823_v51  ;;  %v3724_v59 = vmul.f32 %v7257_v56, %v3688_v38  ;;  %v3192_v63 = vpop.f32.mrf.mxu2  ;;  %v3541_v1 = vadd.f32 %v3483_v3, %v3391_v46  ;;  %v3492_v54 = vpop.f32.mrf.mxu0 }
 0x513   : > { %v3542_v21 = vadd.f32 %v3486_v9, %v3392_v58  ;;  %v4607_v9 = vld [vmem:[%s4711_s16 + $0xa0] sm:$0xff] }
 0x514   : > { %v3760_v57 = vadd.f32 %v7263_v52, %v3724_v59 }
 0x516   : > { %v3792_v2 = vadd.f32 %v4603_v36, %v3760_v57  ;;  %v3345_v57 = vpop.f32.mrf.mxu3 }
 0x517   : > { %v3627_v5 = vpop.f32.mrf.mxu1 }
 0x518   : > { %v3824_v16 = vmax.f32 %v3792_v2, 0.0  ;;  %v3689_v49 = vadd.f32 %v3627_v5, %v3539_v11  ;;  %v3393_v2 = vadd.f32 %v3339_v40, %v3243_v53  ;;  %v8096_v5 = vld [vmem:[#allocation12_spill] sm:$0xff] }
 0x519   : > { %v3086_v33 = vadd.f32 %v7139_v20, %v8096_v5  ;;  %v8097_v20 = vld [vmem:[#allocation39_spill] sm:$0xff] }
 0x51a   : > { %3856 = vst.msk [vmem:[%s7277_s19 + $0x80] sm:$0xff] %vm408_vm1, %v3824_v16  ;;  %v3725_v32 = vmul.f32 %v7257_v56, %v3689_v49  ;;  %v3195_v38 = vpop.f32.mrf.mxu2  ;;  %v3495_v16 = vpop.f32.mrf.mxu0  ;;  %v3543_v8 = vadd.f32 %v3489_v12, %v3393_v2 }
 0x51b   : > { %v3244_v6 = vadd.f32 %v3192_v63, %v3086_v33  ;;  %v4608_v63 = vld [vmem:[%s4711_s16 + $0xa8] sm:$0xff] }
 0x51c   : > { %v3761_v44 = vadd.f32 %v7263_v52, %v3725_v32 }
 0x51e   : > { %v3793_v15 = vadd.f32 %v4604_v14, %v3761_v44  ;;  %v3348_v41 = vpop.f32.mrf.mxu3  ;;  %v3394_v14 = vadd.f32 %v3342_v31, %v3244_v6 }
 0x51f   : > { %v3630_v25 = vpop.f32.mrf.mxu1 }
 0x520   : > { %v3825_v62 = vmax.f32 %v3793_v15, 0.0  ;;  %v3690_v24 = vadd.f32 %v3630_v25, %v3540_v43  ;;  %v3087_v43 = vadd.f32 %v7153_v42, %v8097_v20  ;;  %v3544_v46 = vadd.f32 %v3492_v54, %v3394_v14  ;;  %v8098_v42 = vld [vmem:[#allocation44_spill] sm:$0xff] }
 0x522   : > { %3857 = vst.msk [vmem:[%s7277_s19 + $0x88] sm:$0xff] %vm408_vm1, %v3825_v62  ;;  %v3726_v37 = vmul.f32 %v7257_v56, %v3690_v24  ;;  %v3198_v49 = vpop.f32.mrf.mxu2  ;;  %v3498_v62 = vpop.f32.mrf.mxu0  ;;  %v3245_v24 = vadd.f32 %v3195_v38, %v3087_v43 }
 0x524   : > { %v3762_v10 = vadd.f32 %v7263_v52, %v3726_v37  ;;  %v3395_v31 = vadd.f32 %v3345_v57, %v3245_v24 }
 0x526   : > { %v3794_v48 = vadd.f32 %v4605_v19, %v3762_v10  ;;  %v3351_v19 = vpop.f32.mrf.mxu3  ;;  %v3545_v58 = vadd.f32 %v3495_v16, %v3395_v31 }
 0x527   : > { %v3633_v55 = vpop.f32.mrf.mxu1 }
 0x528   : > { %v3826_v28 = vmax.f32 %v3794_v48, 0.0  ;;  %v3691_v30 = vadd.f32 %v3633_v55, %v3541_v1  ;;  %v3088_v48 = vadd.f32 %v7167_v34, %v8098_v42 }
 0x52a   : > { %3858 = vst.msk [vmem:[%s7277_s19 + $0x90] sm:$0xff] %vm408_vm1, %v3826_v28  ;;  %v3727_v51 = vmul.f32 %v7257_v56, %v3691_v30  ;;  %v3201_v37 = vpop.f32.mrf.mxu2  ;;  %v3246_v55 = vadd.f32 %v3198_v49, %v3088_v48  ;;  %v4609_v28 = vld [vmem:[%s4711_s16 + $0xb0] sm:$0xff] }
 0x52c   : > { %v3763_v59 = vadd.f32 %v7263_v52, %v3727_v51  ;;  %v3501_v51 = vpop.f32.mrf.mxu0 }
 0x52e   : > { %v3795_v3 = vadd.f32 %v4606_v29, %v3763_v59  ;;  %v3396_v59 = vadd.f32 %v3348_v41, %v3246_v55  ;;  %v8099_v29 = vld [vmem:[#allocation46_spill] sm:$0xff] }
 0x52f   : > { %v3636_v23 = vpop.f32.mrf.mxu1  ;;  %v3089_v34 = vadd.f32 %v7179_v61, %v8099_v29  ;;  %v8100_v61 = vld [vmem:[#allocation14_spill] sm:$0xff] }
 0x530   : > { %v3827_v35 = vmax.f32 %v3795_v3, 0.0  ;;  %v3692_v36 = vadd.f32 %v3636_v23, %v3542_v21  ;;  %v3354_v21 = vpop.f32.mrf.mxu3  ;;  %v4610_v23 = vld [vmem:[%s4711_s16 + $0xb8] sm:$0xff]  ;;  %v3090_v6 = vadd.f32 %v7189_v47, %v8100_v61 }
 0x531   : > { %v3247_v57 = vadd.f32 %v3201_v37, %v3089_v34 }
 0x532   : > { %3859 = vst.msk [vmem:[%s7277_s19 + $0x98] sm:$0xff] %vm408_vm1, %v3827_v35  ;;  %v3728_v11 = vmul.f32 %v7257_v56, %v3692_v36  ;;  %v3204_v17 = vpop.f32.mrf.mxu2  ;;  %v3546_v36 = vadd.f32 %v3498_v62, %v3396_v59 }
 0x533   : > { %v3397_v16 = vadd.f32 %v3351_v19, %v3247_v57  ;;  %v4614_v57 = vld [vmem:[%s4711_s16 + $0xd8] sm:$0xff] }
 0x534   : > { %v3764_v45 = vadd.f32 %v7263_v52, %v3728_v11  ;;  %v3504_v33 = vpop.f32.mrf.mxu0 }
 0x536   : > { %v3796_v32 = vadd.f32 %v4607_v9, %v3764_v45 }
 0x537   : > { %v3639_v39 = vpop.f32.mrf.mxu1 }
 0x538   : > { %v3828_v44 = vmax.f32 %v3796_v32, 0.0  ;;  %v3693_v40 = vadd.f32 %v3639_v39, %v3543_v8  ;;  %v3248_v32 = vadd.f32 %v3204_v17, %v3090_v6  ;;  %v4611_v8 = vld [vmem:[%s4711_s16 + $0xc0] sm:$0xff] }
 0x53a   : > { %3860 = vst.msk [vmem:[%s7277_s19 + $0xa0] sm:$0xff] %vm408_vm1, %v3828_v44  ;;  %v3729_v15 = vmul.f32 %v7257_v56, %v3693_v40  ;;  %v3207_v49 = vpop.f32.mrf.mxu2  ;;  %v3547_v44 = vadd.f32 %v3501_v51, %v3397_v16  ;;  %v3357_v40 = vpop.f32.mrf.mxu3  ;;  %v3398_v20 = vadd.f32 %v3354_v21, %v3248_v32  ;;  %v4615_v32 = vld [vmem:[%s4711_s16 + $0xe0] sm:$0xff] }
 0x53c   : > { %v3765_v25 = vadd.f32 %v7263_v52, %v3729_v15  ;;  %v3507_v62 = vpop.f32.mrf.mxu0 }
 0x53e   : > { %v3797_v12 = vadd.f32 %v4608_v63, %v3765_v25  ;;  %v8101_v25 = vld [vmem:[#allocation17_spill] sm:$0xff] }
 0x53f   : > { %v3642_v13 = vpop.f32.mrf.mxu1  ;;  %v3091_v47 = vadd.f32 %v7199_v4, %v8101_v25  ;;  %v8102_v4 = vld [vmem:[#allocation43_spill] sm:$0xff] }
 0x540   : > { %v3829_v7 = vmax.f32 %v3797_v12, 0.0  ;;  %v3694_v10 = vadd.f32 %v3642_v13, %v3544_v46  ;;  %v4612_v46 = vld [vmem:[%s4711_s16 + $0xc8] sm:$0xff]  ;;  %v3548_v13 = vadd.f32 %v3504_v33, %v3398_v20  ;;  %v3092_v48 = vadd.f32 %v7209_v60, %v8102_v4  ;;  %v8103_v60 = vld [vmem:[#allocation45_spill] sm:$0xff] }
 0x541   : > { %v3249_v12 = vadd.f32 %v3207_v49, %v3091_v47  ;;  %v3093_v34 = vadd.f32 %v7219_v18, %v8103_v60  ;;  %v8104_v49 = vld [vmem:[#allocation48_spill] sm:$0xff] }
 0x542   : > { %3861 = vst.msk [vmem:[%s7277_s19 + $0xa8] sm:$0xff] %vm408_vm1, %v3829_v7  ;;  %v3730_v0 = vmul.f32 %v7257_v56, %v3694_v10  ;;  %v3210_v63 = vpop.f32.mrf.mxu2  ;;  %v3094_v18 = vadd.f32 %v7230_v50, %v8104_v49  ;;  %v3095_v50 = vadd.f32 %v7242_v22, %v7061_v27 }
 0x543   : > { %v3399_v19 = vadd.f32 %v3357_v40, %v3249_v12 }
 0x544   : > { %v3766_v1 = vadd.f32 %v7263_v52, %v3730_v0  ;;  %v3360_v0 = vpop.f32.mrf.mxu3  ;;  %v3510_v55 = vpop.f32.mrf.mxu0 }
 0x546   : > { %v3798_v30 = vadd.f32 %v4609_v28, %v3766_v1  ;;  %v3250_v28 = vadd.f32 %v3210_v63, %v3092_v48 }
 0x547   : > { %v3645_v54 = vpop.f32.mrf.mxu1 }
 0x548   : > { %v3830_v38 = vmax.f32 %v3798_v30, 0.0  ;;  %v3695_v26 = vadd.f32 %v3645_v54, %v3545_v58  ;;  %v4613_v30 = vld [vmem:[%s4711_s16 + $0xd0] sm:$0xff]  ;;  %v3549_v54 = vadd.f32 %v3507_v62, %v3399_v19  ;;  %v3400_v59 = vadd.f32 %v3360_v0, %v3250_v28  ;;  %v4618_v28 = vld [vmem:[%s4711_s16 + $0xf8] sm:$0xff] }
 0x549   : > { %v4617_v0 = vld [vmem:[%s4711_s16 + $0xf0] sm:$0xff] }
 0x54a   : > { %3862 = vst.msk [vmem:[%s7277_s19 + $0xb0] sm:$0xff] %vm408_vm1, %v3830_v38  ;;  %v3731_v53 = vmul.f32 %v7257_v56, %v3695_v26  ;;  %v3213_v51 = vpop.f32.mrf.mxu2 }
 0x54b   : > { %v3251_v21 = vadd.f32 %v3213_v51, %v3093_v34 }
 0x54c   : > { %v3767_v3 = vadd.f32 %v7263_v52, %v3731_v53  ;;  %v3363_v29 = vpop.f32.mrf.mxu3 }
 0x54d   : > { %v3401_v16 = vadd.f32 %v3363_v29, %v3251_v21 }
 0x54e   : > { %v3799_v35 = vadd.f32 %v4610_v23, %v3767_v3 }
 0x54f   : > { %v3648_v2 = vpop.f32.mrf.mxu1 }
 0x550   : > { %v3831_v11 = vmax.f32 %v3799_v35, 0.0  ;;  %v3696_v5 = vadd.f32 %v3648_v2, %v3546_v36  ;;  %v3550_v35 = vadd.f32 %v3510_v55, %v3400_v59 }
 0x552   : > { %3863 = vst.msk [vmem:[%s7277_s19 + $0xb8] sm:$0xff] %vm408_vm1, %v3831_v11  ;;  %v3732_v45 = vmul.f32 %v7257_v56, %v3696_v5  ;;  %v3513_v5 = vpop.f32.mrf.mxu0  ;;  %v3216_v33 = vpop.f32.mrf.mxu2 }
 0x554   : > { %v3768_v9 = vadd.f32 %v7263_v52, %v3732_v45  ;;  %v3366_v6 = vpop.f32.mrf.mxu3 }
 0x556   : > { %v3800_v39 = vadd.f32 %v4611_v8, %v3768_v9  ;;  %v3252_v9 = vadd.f32 %v3216_v33, %v3094_v18 }
 0x557   : > { %v3651_v41 = vpop.f32.mrf.mxu1 }
 0x558   : > { %v3832_v14 = vmax.f32 %v3800_v39, 0.0  ;;  %v3697_v15 = vadd.f32 %v3651_v41, %v3547_v44  ;;  %v3551_v39 = vadd.f32 %v3513_v5, %v3401_v16 }
 0x55a   : > { %3864 = vst.msk [vmem:[%s7277_s19 + $0xc0] sm:$0xff] %vm408_vm1, %v3832_v14  ;;  %v3733_v43 = vmul.f32 %v7257_v56, %v3697_v15  ;;  %v3516_v14 = vpop.f32.mrf.mxu0  ;;  %v3402_v15 = vadd.f32 %v3366_v6, %v3252_v9 }
 0x55c   : > { %v3769_v24 = vadd.f32 %v7263_v52, %v3733_v43  ;;  %v3219_v43 = vpop.f32.mrf.mxu2  ;;  %v3552_v47 = vadd.f32 %v3516_v14, %v3402_v15  ;;  %v3369_v12 = vpop.f32.mrf.mxu3 }
 0x55d   : > { %v3253_v62 = vadd.f32 %v3219_v43, %v3095_v50 }
 0x55e   : > { %v3801_v37 = vadd.f32 %v4612_v46, %v3769_v24  ;;  %v4616_v24 = vld [vmem:[%s4711_s16 + $0xe8] sm:$0xff] }
 0x55f   : > { %v3654_v7 = vpop.f32.mrf.mxu1 }
 0x560   : > { %v3833_v10 = vmax.f32 %v3801_v37, 0.0  ;;  %v3698_v31 = vadd.f32 %v3654_v7, %v3548_v13  ;;  %v3403_v7 = vadd.f32 %v3369_v12, %v3253_v62 }
 0x562   : > { %3865 = vst.msk [vmem:[%s7277_s19 + $0xc8] sm:$0xff] %vm408_vm1, %v3833_v10  ;;  %v3734_v42 = vmul.f32 %v7257_v56, %v3698_v31  ;;  %v3519_v27 = vpop.f32.mrf.mxu0 }
 0x563   : > { %v3553_v31 = vadd.f32 %v3519_v27, %v3403_v7 }
 0x564   : > { %v3770_v1 = vadd.f32 %v7263_v52, %v3734_v42 }
 0x566   : > { %v3802_v58 = vadd.f32 %v4613_v30, %v3770_v1 }
 0x567   : > { %v3657_v38 = vpop.f32.mrf.mxu1 }
 0x568   : > { %v3834_v26 = vmax.f32 %v3802_v58, 0.0  ;;  %v3699_v17 = vadd.f32 %v3657_v38, %v3549_v54 }
 0x56a   : > { %3866 = vst.msk [vmem:[%s7277_s19 + $0xd0] sm:$0xff] %vm408_vm1, %v3834_v26  ;;  %v3735_v53 = vmul.f32 %v7257_v56, %v3699_v17 }
 0x56c   : > { %v3771_v3 = vadd.f32 %v7263_v52, %v3735_v53 }
 0x56e   : > { %v3803_v23 = vadd.f32 %v4614_v57, %v3771_v3 }
 0x56f   : > { %v3660_v36 = vpop.f32.mrf.mxu1 }
 0x570   : > { %v3835_v2 = vmax.f32 %v3803_v23, 0.0  ;;  %v3700_v11 = vadd.f32 %v3660_v36, %v3550_v35 }
 0x572   : > { %3867 = vst.msk [vmem:[%s7277_s19 + $0xd8] sm:$0xff] %vm408_vm1, %v3835_v2  ;;  %v3736_v45 = vmul.f32 %v7257_v56, %v3700_v11 }
 0x574   : > { %v3772_v61 = vadd.f32 %v7263_v52, %v3736_v45 }
 0x576   : > { %v3804_v8 = vadd.f32 %v4615_v32, %v3772_v61 }
 0x577   : > { %v3663_v44 = vpop.f32.mrf.mxu1 }
 0x578   : > { %v3836_v40 = vmax.f32 %v3804_v8, 0.0  ;;  %v3701_v41 = vadd.f32 %v3663_v44, %v3551_v39 }
 0x57a   : > { %3868 = vst.msk [vmem:[%s7277_s19 + $0xe0] sm:$0xff] %vm408_vm1, %v3836_v40  ;;  %v3737_v20 = vmul.f32 %v7257_v56, %v3701_v41 }
 0x57c   : > { %v3773_v25 = vadd.f32 %v7263_v52, %v3737_v20 }
 0x57e   : > { %v3805_v63 = vadd.f32 %v4616_v24, %v3773_v25 }
 0x57f   : > { %v3666_v46 = vpop.f32.mrf.mxu1 }
 0x580   : > { %v3837_v37 = vmax.f32 %v3805_v63, 0.0  ;;  %v3702_v13 = vadd.f32 %v3666_v46, %v3552_v47 }
 0x582   : > { %3869 = vst.msk [vmem:[%s7277_s19 + $0xe8] sm:$0xff] %vm408_vm1, %v3837_v37  ;;  %v3738_v10 = vmul.f32 %v7257_v56, %v3702_v13 }
 0x584   : > { %v3774_v22 = vadd.f32 %v7263_v52, %v3738_v10 }
 0x586   : > { %v3806_v19 = vadd.f32 %v4617_v0, %v3774_v22 }
 0x587   : > { %v3669_v42 = vpop.f32.mrf.mxu1 }
 0x588   : > { %v3838_v4 = vmax.f32 %v3806_v19, 0.0  ;;  %v3703_v48 = vadd.f32 %v3669_v42, %v3553_v31 }
 0x58a   : > { %3870 = vst.msk [vmem:[%s7277_s19 + $0xf0] sm:$0xff] %vm408_vm1, %v3838_v4  ;;  %v3739_v1 = vmul.f32 %v7257_v56, %v3703_v48 }
 0x58c   : > { %v3775_v55 = vadd.f32 %v7263_v52, %v3739_v1 }
 0x58e   : > { %v3807_v30 = vadd.f32 %v4618_v28, %v3775_v55 }
 0x590   : > { %v3839_v58 = vmax.f32 %v3807_v30, 0.0 }
 0x592   : > { %3871 = vst.msk [vmem:[%s7277_s19 + $0xf8] sm:$0xff] %vm408_vm1, %v3839_v58 }
 0x593 PF: > { %s17_s24 = sadd.s32 1, %s4625_s24  }
 0x594   : > { %p14_p4 = scmp.ge.s32.totalorder %s17_s24, 4  }
 0x596   :  { %16 = sbr.rel (!%p14_p4) target bundleno = 1 (0x1), region = 94 }

</bundles_post_ra>
